<compile_context>
chip_gen: v7x
topology: tpu7x:2x2x1
jax: 0.10.0
libtpu: 0.0.40
codegen_flags: <defaults>
</compile_context>

<pallas_src>
import math
from functools import partial

import jax
import jax.numpy as jnp
from jax.experimental import pallas as pl
from jax.experimental.pallas import tpu as pltpu

BN_EPS = 1e-5

# Per-grid-step working-set target (fits comfortably inside every
# generation's scoped VMEM once vmem_limit_bytes below is applied).
FUSED_VMEM_BUDGET = 24 * 1024 * 1024
MATMUL_VMEM_BUDGET = 24 * 1024 * 1024
VMEM_LIMIT_BYTES = 48 * 1024 * 1024     # < v7x 64 MiB physical, fine on v5e/v6e


def _rup(x, m):
    return (x + m - 1) // m * m


def _layout_bytes(shape, itemsize):
    """Approximate VMEM footprint of one buffer with (sublane, lane) tiling."""
    s = list(shape)
    if len(s) >= 1:
        s[-1] = _rup(s[-1], 128)
    if len(s) >= 2:
        s[-2] = _rup(s[-2], 32 // itemsize)
    n = 1
    for d in s:
        n *= int(d)
    return n * itemsize


def _act(y, act):
    if act == "relu":
        return jnp.maximum(y, 0.0)
    if act == "hswish":
        return y * (jnp.clip(y + 3.0, 0.0, 6.0) / 6.0)
    return y  # "none"


# ----------------------------------------------------------------------------
# Fused kernel (stride == 1): conv (im2col done in-kernel via static shifted
# slices) + folded BN bias + activation.  One grid step = one batch element.
#   x_ref : (Hpad, Wpad, Cin)   bf16   spatially padded NHWC image
#   w_ref : (k*k, Cin, Cout)    bf16   BN scale folded in
#   b_ref : (1, Cout)           f32    folded BN bias
#   o_ref : (Ho*Wo, Cout)       out_dtype
# ----------------------------------------------------------------------------
def _fused_conv_kernel(x_ref, w_ref, b_ref, o_ref, *, k, Ho, Wo, act):
    Cin = x_ref.shape[-1]
    acc = jnp.zeros(o_ref.shape, jnp.float32)
    for t in range(k * k):                       # static unroll over taps
        dy, dx = divmod(t, k)
        xs = x_ref[dy:dy + Ho, dx:dx + Wo, :].reshape(Ho * Wo, Cin)
        acc = acc + jnp.dot(xs, w_ref[t], preferred_element_type=jnp.float32)
    o_ref[...] = _act(acc + b_ref[...], act).astype(o_ref.dtype)


def _fused_vmem_estimate(Hpad, Wpad, Cin, k, Ho, Wo, Cout):
    x = _layout_bytes((Hpad, Wpad, Cin), 2)
    w = _layout_bytes((k * k, Cin, Cout), 2)
    o = _layout_bytes((Ho * Wo, Cout), 2)
    acc = _layout_bytes((Ho * Wo, Cout), 4)
    xs = _layout_bytes((Ho * Wo, Cin), 2)
    return 2 * (x + w + o) + acc + 2 * xs


def _fused_conv_bn_act(xpad, w3, bias, k, Ho, Wo, act, out_dtype):
    B, Hpad, Wpad, Cin = xpad.shape
    Cout = w3.shape[-1]
    out_isz = jnp.dtype(out_dtype).itemsize
    cost = pl.CostEstimate(
        flops=2 * B * Ho * Wo * k * k * Cin * Cout,
        transcendentals=0,
        bytes_accessed=int(xpad.size * 2 + w3.size * 2 + Cout * 4
                           + B * Ho * Wo * Cout * out_isz))
    out = pl.pallas_call(
        partial(_fused_conv_kernel, k=k, Ho=Ho, Wo=Wo, act=act),
        out_shape=jax.ShapeDtypeStruct((B, Ho * Wo, Cout), out_dtype),
        grid=(B,),
        in_specs=[
            pl.BlockSpec((None, Hpad, Wpad, Cin), lambda b: (b, 0, 0, 0)),
            pl.BlockSpec((k * k, Cin, Cout), lambda b: (0, 0, 0)),
            pl.BlockSpec((1, Cout), lambda b: (0, 0)),
        ],
        out_specs=pl.BlockSpec((None, Ho * Wo, Cout), lambda b: (b, 0, 0)),
        compiler_params=pltpu.CompilerParams(
            dimension_semantics=("parallel",),
            vmem_limit_bytes=VMEM_LIMIT_BYTES),
        cost_estimate=cost,
    )(xpad, w3, bias.reshape(1, Cout).astype(jnp.float32))
    return out.reshape(B, Ho, Wo, Cout)


# ----------------------------------------------------------------------------
# Fallback kernel: tiled matmul with fused bias + activation epilogue
# (used for stride > 1 or feature maps too large for the fused path).
#   x_ref : (TM, K)  bf16   im2col patches
#   w_ref : (K, TN)  bf16   BN scale folded in
#   b_ref : (1, TN)  f32
#   o_ref : (TM, TN) out_dtype
# ----------------------------------------------------------------------------
def _matmul_bias_act_kernel(x_ref, w_ref, b_ref, o_ref, *, act):
    acc = jnp.dot(x_ref[...], w_ref[...], preferred_element_type=jnp.float32)
    o_ref[...] = _act(acc + b_ref[...], act).astype(o_ref.dtype)


def _pick_tiles(M, K, N):
    """K-/VMEM-aware tile pick; TN == N means the N axis is not tiled."""
    def est(tm, tn):
        return (2 * _layout_bytes((tm, K), 2) + 2 * _layout_bytes((K, tn), 2)
                + 3 * _layout_bytes((tm, tn), 4))
    TN = N
    if N > 128 and est(16, TN) > MATMUL_VMEM_BUDGET:
        # 256-wide output tiles fill the 256x256 MXU on v6e/v7x; harmless on v5e.
        TN = 256 if N % 256 == 0 else 128
    TM = 16
    for cand in (512, 256, 128, 64, 32, 16):     # biggest tile that fits VMEM
        if est(cand, TN) <= MATMUL_VMEM_BUDGET:
            TM = cand
            break
    TM = min(TM, max(16, _rup(M, 16)))           # bf16 sublane packing => x16
    if pl.cdiv(M, TM) == 1 and M > 16:
        TM = max(16, _rup(pl.cdiv(M, 2), 16))    # 2 blocks -> both v7x cores busy
    return TM, TN


def _matmul_bias_act(x, w, bias, act, out_dtype):
    """act((x @ w) + bias); x:(M,K) bf16, w:(K,N) bf16, bias:(N,) f32."""
    M, K = x.shape
    K2, N = w.shape
    assert K == K2
    TM, TN = _pick_tiles(M, K, N)
    out_isz = jnp.dtype(out_dtype).itemsize
    cost = pl.CostEstimate(flops=2 * M * K * N, transcendentals=0,
                           bytes_accessed=int(M * K * 2 + K * N * 2 + N * 4
                                              + M * N * out_isz))
    if TN == N:
        grid = (pl.cdiv(M, TM),)
        in_specs = [pl.BlockSpec((TM, K), lambda i: (i, 0)),
                    pl.BlockSpec((K, N), lambda i: (0, 0)),
                    pl.BlockSpec((1, N), lambda i: (0, 0))]
        out_specs = pl.BlockSpec((TM, N), lambda i: (i, 0))
        dims = ("parallel",)
    else:
        grid = (pl.cdiv(M, TM), pl.cdiv(N, TN))
        in_specs = [pl.BlockSpec((TM, K), lambda i, j: (i, 0)),
                    pl.BlockSpec((K, TN), lambda i, j: (0, j)),
                    pl.BlockSpec((1, TN), lambda i, j: (0, j))]
        out_specs = pl.BlockSpec((TM, TN), lambda i, j: (i, j))
        dims = ("parallel", "parallel")
    return pl.pallas_call(
        partial(_matmul_bias_act_kernel, act=act),
        out_shape=jax.ShapeDtypeStruct((M, N), out_dtype),
        grid=grid, in_specs=in_specs, out_specs=out_specs,
        compiler_params=pltpu.CompilerParams(
            dimension_semantics=dims, vmem_limit_bytes=VMEM_LIMIT_BYTES),
        cost_estimate=cost,
    )(x, w, bias.reshape(1, N).astype(jnp.float32))


def _im2col_nhwc(x, k, stride, pad):
    """x: (B,H,W,C) bf16 -> patches (B*Ho*Wo, k*k*C) bf16, Ho, Wo."""
    B, H, W, C = x.shape
    if k == 1 and stride == 1 and pad == 0:
        return x.reshape(B * H * W, C), H, W
    xp = jnp.pad(x, ((0, 0), (pad, pad), (pad, pad), (0, 0)))
    Ho = (H + 2 * pad - k) // stride + 1
    Wo = (W + 2 * pad - k) // stride + 1
    cols = [xp[:, dy:dy + (Ho - 1) * stride + 1:stride,
               dx:dx + (Wo - 1) * stride + 1:stride, :]
            for dy in range(k) for dx in range(k)]
    patches = jnp.concatenate(cols, axis=-1)          # (B, Ho, Wo, k*k*C)
    return patches.reshape(B * Ho * Wo, k * k * C), Ho, Wo


# ----------------------------------------------------------------------------
# Host-side glue (BN folding + layout).
# ----------------------------------------------------------------------------
def conv_bn_act_nhwc(x_nhwc, conv_w, bn, *, stride=1, padding=0, act="relu",
                     out_dtype=jnp.bfloat16):
    """NHWC-native ConvBNAct (eval-mode BN).  Returns (B, Ho, Wo, Cout)."""
    Cout, Cin, kh, kw = conv_w.shape
    assert kh == kw, "square kernels only"
    k = kh
    B, H, W, C = x_nhwc.shape
    # TODO(synk): grouped / depthwise conv (groups > 1) not implemented.
    assert C == Cin, "groups != 1 not supported"

    # Fold eval-mode BN: scale into the weights, additive part as bias.
    scale = bn["gamma"] * jax.lax.rsqrt(bn["var"] + BN_EPS)          # (Cout,)
    bias = (bn["beta"] - scale * bn["mean"]).astype(jnp.float32)     # (Cout,)
    w4 = jnp.transpose(conv_w, (2, 3, 1, 0)) * scale[None, None, None, :]

    x = x_nhwc.astype(jnp.bfloat16)                                  # bf16 once
    Ho = (H + 2 * padding - k) // stride + 1
    Wo = (W + 2 * padding - k) // stride + 1

    fused_ok = (stride == 1) and (_fused_vmem_estimate(
        H + 2 * padding, W + 2 * padding, Cin, k, Ho, Wo, Cout)
        <= FUSED_VMEM_BUDGET)
    if fused_ok:
        xpad = x if padding == 0 else jnp.pad(
            x, ((0, 0), (padding, padding), (padding, padding), (0, 0)))
        w3 = w4.reshape(k * k, Cin, Cout).astype(jnp.bfloat16)
        return _fused_conv_bn_act(xpad, w3, bias, k, Ho, Wo, act, out_dtype)

    # TODO(synk): fuse im2col for stride > 1 / very large feature maps too
    # (needs element-indexed / strided BlockSpecs); falls back to bf16 im2col.
    patches, Ho, Wo = _im2col_nhwc(x, k, stride, padding)
    wmat = w4.reshape(k * k * Cin, Cout).astype(jnp.bfloat16)
    y = _matmul_bias_act(patches, wmat, bias, act, out_dtype)
    return y.reshape(B, Ho, Wo, Cout)


def conv_bn_act(x_nchw, conv_w, bn, *, stride=1, padding=0, act="relu",
                out_dtype=jnp.bfloat16):
    """PyTorch ConvBNAct forward (inference semantics), NCHW in / NCHW out.
       Prefer conv_bn_act_nhwc for NHWC pipelines (avoids the two transposes).
    """
    x = jnp.transpose(x_nchw, (0, 2, 3, 1))               # NCHW -> NHWC
    y = conv_bn_act_nhwc(x, conv_w, bn, stride=stride, padding=padding,
                         act=act, out_dtype=out_dtype)
    return jnp.transpose(y, (0, 3, 1, 2))                  # NHWC -> NCHW


# ----------------------------------------------------------------------------
# Pure-JAX reference (same bf16 operand rounding) for correctness checks.
# ----------------------------------------------------------------------------
def _reference(x, w, bn, *, stride, pad, act):
    scale = bn["gamma"] * jax.lax.rsqrt(bn["var"] + BN_EPS)
    bias = bn["beta"] - scale * bn["mean"]
    wf = (w * scale[:, None, None, None]).astype(jnp.bfloat16)
    y = jax.lax.conv_general_dilated(
        x.astype(jnp.bfloat16), wf,
        window_strides=(stride, stride),
        padding=[(pad, pad), (pad, pad)],
        dimension_numbers=("NCHW", "OIHW", "NCHW"),
        preferred_element_type=jnp.float32)
    return _act(y + bias[None, :, None, None], act)


# ----------------------------------------------------------------------------
if __name__ == "__main__":
    root = jax.random.PRNGKey(0)
    fwd = jax.jit(conv_bn_act, static_argnames=("stride", "padding", "act"))

    def run_case(key, B, Cin, H, W, Cout, k, stride, pad, act):
        kx, kw, kg, kb, km, kv = jax.random.split(key, 6)
        x = jax.random.normal(kx, (B, Cin, H, W), jnp.float32)
        w = jax.random.normal(kw, (Cout, Cin, k, k), jnp.float32) * math.sqrt(
            2.0 / (Cin * k * k))
        bn = {
            "gamma": 1.0 + 0.1 * jax.random.normal(kg, (Cout,), jnp.float32),
            "beta": 0.1 * jax.random.normal(kb, (Cout,), jnp.float32),
            "mean": 0.1 * jax.random.normal(km, (Cout,), jnp.float32),
            "var": jax.random.uniform(kv, (Cout,), jnp.float32,
                                      minval=0.5, maxval=1.5),
        }
        out = fwd(x, w, bn, stride=stride, padding=pad, act=act)
        out = jax.block_until_ready(out)
        Ho = (H + 2 * pad - k) // stride + 1
        Wo = (W + 2 * pad - k) // stride + 1
        assert out.shape == (B, Cout, Ho, Wo), out.shape
        out32 = out.astype(jnp.float32)
        assert bool(jnp.all(jnp.isfinite(out32)))
        ref = _reference(x, w, bn, stride=stride, pad=pad, act=act)
        ok = bool(jnp.allclose(out32, ref, atol=3e-2, rtol=3e-2))
        assert ok, "max abs diff = %g (k=%d s=%d act=%s)" % (
            float(jnp.max(jnp.abs(out32 - ref))), k, stride, act)

    k1, k2, k3 = jax.random.split(root, 3)
    run_case(k1, 2, 4, 16, 16, 8, 3, 1, 1, "relu")     # fused in-kernel im2col
    run_case(k2, 2, 4, 16, 16, 8, 3, 2, 1, "hswish")   # stride-2 fallback path
    run_case(k3, 2, 4, 16, 16, 8, 1, 1, 0, "relu")     # 1x1 conv, fused path
    print("KERNEL_OK")
</pallas_src>

<mosaic_0001>
module attributes {stable_mosaic.version = 11 : i64} {
  func.func @_fused_conv_kernel(%arg0: i32, %arg1: memref<1x18x18x4xbf16, #tpu.memory_space<vmem>>, %arg2: memref<9x4x8xbf16, #tpu.memory_space<vmem>>, %arg3: memref<1x8xf32, #tpu.memory_space<vmem>>, %arg4: memref<1x256x8xbf16, #tpu.memory_space<vmem>>) attributes {dimension_semantics = [#tpu.dimension_semantics<parallel>], iteration_bounds = array<i64: 2>, scalar_prefetch = 0 : i64, scratch_operands = 0 : i64, tpu.core_type = #tpu.core_type<tc>, window_params = [{transform_indices = @transform_0, window_bounds = array<i64: 1, 18, 18, 4>}, {pipeline_mode = #tpu.pipeline_mode<synchronous>, transform_indices = @transform_1, window_bounds = array<i64: 9, 4, 8>}, {pipeline_mode = #tpu.pipeline_mode<synchronous>, transform_indices = @transform_2, window_bounds = array<i64: 1, 8>}, {transform_indices = @transform_3, window_bounds = array<i64: 1, 256, 8>}]} {
    %cst = arith.constant 0.000000e+00 : f32
    %0 = vector.broadcast %cst : f32 to vector<256x8xf32>
    %c0 = arith.constant 0 : index
    %c0_0 = arith.constant 0 : index
    %c0_1 = arith.constant 0 : index
    %c0_2 = arith.constant 0 : index
    %1 = vector.load %arg1[%c0, %c0_0, %c0_1, %c0_2] : memref<1x18x18x4xbf16, #tpu.memory_space<vmem>>, vector<1x16x16x4xbf16>
    %2 = vector.shape_cast %1 : vector<1x16x16x4xbf16> to vector<16x16x4xbf16>
    %3 = vector.shape_cast %2 : vector<16x16x4xbf16> to vector<256x4xbf16>
    %c0_3 = arith.constant 0 : index
    %c0_4 = arith.constant 0 : index
    %c0_5 = arith.constant 0 : index
    %4 = vector.load %arg2[%c0_3, %c0_4, %c0_5] : memref<9x4x8xbf16, #tpu.memory_space<vmem>>, vector<1x4x8xbf16>
    %5 = vector.shape_cast %4 : vector<1x4x8xbf16> to vector<4x8xbf16>
    %cst_6 = arith.constant dense<0.000000e+00> : vector<256x8xf32>
    %6 = tpu.matmul %3, %5, %cst_6 {dimension_numbers = #tpu.dot_dimension_numbers<[1], [0], [0], [1], [0, 0, 1, 1], [], []>} : vector<256x4xbf16>, vector<4x8xbf16>, vector<256x8xf32> -> vector<256x8xf32>
    %7 = arith.addf %0, %6 : vector<256x8xf32>
    %c0_7 = arith.constant 0 : index
    %c0_8 = arith.constant 0 : index
    %c1 = arith.constant 1 : index
    %c0_9 = arith.constant 0 : index
    %8 = vector.load %arg1[%c0_7, %c0_8, %c1, %c0_9] : memref<1x18x18x4xbf16, #tpu.memory_space<vmem>>, vector<1x16x16x4xbf16>
    %9 = vector.shape_cast %8 : vector<1x16x16x4xbf16> to vector<16x16x4xbf16>
    %10 = vector.shape_cast %9 : vector<16x16x4xbf16> to vector<256x4xbf16>
    %c1_10 = arith.constant 1 : index
    %c0_11 = arith.constant 0 : index
    %c0_12 = arith.constant 0 : index
    %11 = vector.load %arg2[%c1_10, %c0_11, %c0_12] : memref<9x4x8xbf16, #tpu.memory_space<vmem>>, vector<1x4x8xbf16>
    %12 = vector.shape_cast %11 : vector<1x4x8xbf16> to vector<4x8xbf16>
    %cst_13 = arith.constant dense<0.000000e+00> : vector<256x8xf32>
    %13 = tpu.matmul %10, %12, %cst_13 {dimension_numbers = #tpu.dot_dimension_numbers<[1], [0], [0], [1], [0, 0, 1, 1], [], []>} : vector<256x4xbf16>, vector<4x8xbf16>, vector<256x8xf32> -> vector<256x8xf32>
    %14 = arith.addf %7, %13 : vector<256x8xf32>
    %c0_14 = arith.constant 0 : index
    %c0_15 = arith.constant 0 : index
    %c2 = arith.constant 2 : index
    %c0_16 = arith.constant 0 : index
    %15 = vector.load %arg1[%c0_14, %c0_15, %c2, %c0_16] : memref<1x18x18x4xbf16, #tpu.memory_space<vmem>>, vector<1x16x16x4xbf16>
    %16 = vector.shape_cast %15 : vector<1x16x16x4xbf16> to vector<16x16x4xbf16>
    %17 = vector.shape_cast %16 : vector<16x16x4xbf16> to vector<256x4xbf16>
    %c2_17 = arith.constant 2 : index
    %c0_18 = arith.constant 0 : index
    %c0_19 = arith.constant 0 : index
    %18 = vector.load %arg2[%c2_17, %c0_18, %c0_19] : memref<9x4x8xbf16, #tpu.memory_space<vmem>>, vector<1x4x8xbf16>
    %19 = vector.shape_cast %18 : vector<1x4x8xbf16> to vector<4x8xbf16>
    %cst_20 = arith.constant dense<0.000000e+00> : vector<256x8xf32>
    %20 = tpu.matmul %17, %19, %cst_20 {dimension_numbers = #tpu.dot_dimension_numbers<[1], [0], [0], [1], [0, 0, 1, 1], [], []>} : vector<256x4xbf16>, vector<4x8xbf16>, vector<256x8xf32> -> vector<256x8xf32>
    %21 = arith.addf %14, %20 : vector<256x8xf32>
    %c0_21 = arith.constant 0 : index
    %c1_22 = arith.constant 1 : index
    %c0_23 = arith.constant 0 : index
    %c0_24 = arith.constant 0 : index
    %22 = vector.load %arg1[%c0_21, %c1_22, %c0_23, %c0_24] : memref<1x18x18x4xbf16, #tpu.memory_space<vmem>>, vector<1x16x16x4xbf16>
    %23 = vector.shape_cast %22 : vector<1x16x16x4xbf16> to vector<16x16x4xbf16>
    %24 = vector.shape_cast %23 : vector<16x16x4xbf16> to vector<256x4xbf16>
    %c3 = arith.constant 3 : index
    %c0_25 = arith.constant 0 : index
    %c0_26 = arith.constant 0 : index
    %25 = vector.load %arg2[%c3, %c0_25, %c0_26] : memref<9x4x8xbf16, #tpu.memory_space<vmem>>, vector<1x4x8xbf16>
    %26 = vector.shape_cast %25 : vector<1x4x8xbf16> to vector<4x8xbf16>
    %cst_27 = arith.constant dense<0.000000e+00> : vector<256x8xf32>
    %27 = tpu.matmul %24, %26, %cst_27 {dimension_numbers = #tpu.dot_dimension_numbers<[1], [0], [0], [1], [0, 0, 1, 1], [], []>} : vector<256x4xbf16>, vector<4x8xbf16>, vector<256x8xf32> -> vector<256x8xf32>
    %28 = arith.addf %21, %27 : vector<256x8xf32>
    %c0_28 = arith.constant 0 : index
    %c1_29 = arith.constant 1 : index
    %c1_30 = arith.constant 1 : index
    %c0_31 = arith.constant 0 : index
    %29 = vector.load %arg1[%c0_28, %c1_29, %c1_30, %c0_31] : memref<1x18x18x4xbf16, #tpu.memory_space<vmem>>, vector<1x16x16x4xbf16>
    %30 = vector.shape_cast %29 : vector<1x16x16x4xbf16> to vector<16x16x4xbf16>
    %31 = vector.shape_cast %30 : vector<16x16x4xbf16> to vector<256x4xbf16>
    %c4 = arith.constant 4 : index
    %c0_32 = arith.constant 0 : index
    %c0_33 = arith.constant 0 : index
    %32 = vector.load %arg2[%c4, %c0_32, %c0_33] : memref<9x4x8xbf16, #tpu.memory_space<vmem>>, vector<1x4x8xbf16>
    %33 = vector.shape_cast %32 : vector<1x4x8xbf16> to vector<4x8xbf16>
    %cst_34 = arith.constant dense<0.000000e+00> : vector<256x8xf32>
    %34 = tpu.matmul %31, %33, %cst_34 {dimension_numbers = #tpu.dot_dimension_numbers<[1], [0], [0], [1], [0, 0, 1, 1], [], []>} : vector<256x4xbf16>, vector<4x8xbf16>, vector<256x8xf32> -> vector<256x8xf32>
    %35 = arith.addf %28, %34 : vector<256x8xf32>
    %c0_35 = arith.constant 0 : index
    %c1_36 = arith.constant 1 : index
    %c2_37 = arith.constant 2 : index
    %c0_38 = arith.constant 0 : index
    %36 = vector.load %arg1[%c0_35, %c1_36, %c2_37, %c0_38] : memref<1x18x18x4xbf16, #tpu.memory_space<vmem>>, vector<1x16x16x4xbf16>
    %37 = vector.shape_cast %36 : vector<1x16x16x4xbf16> to vector<16x16x4xbf16>
    %38 = vector.shape_cast %37 : vector<16x16x4xbf16> to vector<256x4xbf16>
    %c5 = arith.constant 5 : index
    %c0_39 = arith.constant 0 : index
    %c0_40 = arith.constant 0 : index
    %39 = vector.load %arg2[%c5, %c0_39, %c0_40] : memref<9x4x8xbf16, #tpu.memory_space<vmem>>, vector<1x4x8xbf16>
    %40 = vector.shape_cast %39 : vector<1x4x8xbf16> to vector<4x8xbf16>
    %cst_41 = arith.constant dense<0.000000e+00> : vector<256x8xf32>
    %41 = tpu.matmul %38, %40, %cst_41 {dimension_numbers = #tpu.dot_dimension_numbers<[1], [0], [0], [1], [0, 0, 1, 1], [], []>} : vector<256x4xbf16>, vector<4x8xbf16>, vector<256x8xf32> -> vector<256x8xf32>
    %42 = arith.addf %35, %41 : vector<256x8xf32>
    %c0_42 = arith.constant 0 : index
    %c2_43 = arith.constant 2 : index
    %c0_44 = arith.constant 0 : index
    %c0_45 = arith.constant 0 : index
    %43 = vector.load %arg1[%c0_42, %c2_43, %c0_44, %c0_45] : memref<1x18x18x4xbf16, #tpu.memory_space<vmem>>, vector<1x16x16x4xbf16>
    %44 = vector.shape_cast %43 : vector<1x16x16x4xbf16> to vector<16x16x4xbf16>
    %45 = vector.shape_cast %44 : vector<16x16x4xbf16> to vector<256x4xbf16>
    %c6 = arith.constant 6 : index
    %c0_46 = arith.constant 0 : index
    %c0_47 = arith.constant 0 : index
    %46 = vector.load %arg2[%c6, %c0_46, %c0_47] : memref<9x4x8xbf16, #tpu.memory_space<vmem>>, vector<1x4x8xbf16>
    %47 = vector.shape_cast %46 : vector<1x4x8xbf16> to vector<4x8xbf16>
    %cst_48 = arith.constant dense<0.000000e+00> : vector<256x8xf32>
    %48 = tpu.matmul %45, %47, %cst_48 {dimension_numbers = #tpu.dot_dimension_numbers<[1], [0], [0], [1], [0, 0, 1, 1], [], []>} : vector<256x4xbf16>, vector<4x8xbf16>, vector<256x8xf32> -> vector<256x8xf32>
    %49 = arith.addf %42, %48 : vector<256x8xf32>
    %c0_49 = arith.constant 0 : index
    %c2_50 = arith.constant 2 : index
    %c1_51 = arith.constant 1 : index
    %c0_52 = arith.constant 0 : index
    %50 = vector.load %arg1[%c0_49, %c2_50, %c1_51, %c0_52] : memref<1x18x18x4xbf16, #tpu.memory_space<vmem>>, vector<1x16x16x4xbf16>
    %51 = vector.shape_cast %50 : vector<1x16x16x4xbf16> to vector<16x16x4xbf16>
    %52 = vector.shape_cast %51 : vector<16x16x4xbf16> to vector<256x4xbf16>
    %c7 = arith.constant 7 : index
    %c0_53 = arith.constant 0 : index
    %c0_54 = arith.constant 0 : index
    %53 = vector.load %arg2[%c7, %c0_53, %c0_54] : memref<9x4x8xbf16, #tpu.memory_space<vmem>>, vector<1x4x8xbf16>
    %54 = vector.shape_cast %53 : vector<1x4x8xbf16> to vector<4x8xbf16>
    %cst_55 = arith.constant dense<0.000000e+00> : vector<256x8xf32>
    %55 = tpu.matmul %52, %54, %cst_55 {dimension_numbers = #tpu.dot_dimension_numbers<[1], [0], [0], [1], [0, 0, 1, 1], [], []>} : vector<256x4xbf16>, vector<4x8xbf16>, vector<256x8xf32> -> vector<256x8xf32>
    %56 = arith.addf %49, %55 : vector<256x8xf32>
    %c0_56 = arith.constant 0 : index
    %c2_57 = arith.constant 2 : index
    %c2_58 = arith.constant 2 : index
    %c0_59 = arith.constant 0 : index
    %57 = vector.load %arg1[%c0_56, %c2_57, %c2_58, %c0_59] : memref<1x18x18x4xbf16, #tpu.memory_space<vmem>>, vector<1x16x16x4xbf16>
    %58 = vector.shape_cast %57 : vector<1x16x16x4xbf16> to vector<16x16x4xbf16>
    %59 = vector.shape_cast %58 : vector<16x16x4xbf16> to vector<256x4xbf16>
    %c8 = arith.constant 8 : index
    %c0_60 = arith.constant 0 : index
    %c0_61 = arith.constant 0 : index
    %60 = vector.load %arg2[%c8, %c0_60, %c0_61] : memref<9x4x8xbf16, #tpu.memory_space<vmem>>, vector<1x4x8xbf16>
    %61 = vector.shape_cast %60 : vector<1x4x8xbf16> to vector<4x8xbf16>
    %cst_62 = arith.constant dense<0.000000e+00> : vector<256x8xf32>
    %62 = tpu.matmul %59, %61, %cst_62 {dimension_numbers = #tpu.dot_dimension_numbers<[1], [0], [0], [1], [0, 0, 1, 1], [], []>} : vector<256x4xbf16>, vector<4x8xbf16>, vector<256x8xf32> -> vector<256x8xf32>
    %63 = arith.addf %56, %62 : vector<256x8xf32>
    %c0_63 = arith.constant 0 : index
    %c0_64 = arith.constant 0 : index
    %64 = vector.load %arg3[%c0_63, %c0_64] : memref<1x8xf32, #tpu.memory_space<vmem>>, vector<1x8xf32>
    %65 = vector.broadcast %64 : vector<1x8xf32> to vector<256x8xf32>
    %66 = arith.addf %63, %65 : vector<256x8xf32>
    %cst_65 = arith.constant 0.000000e+00 : f32
    %67 = vector.broadcast %cst_65 : f32 to vector<256x8xf32>
    %68 = arith.maximumf %66, %67 : vector<256x8xf32>
    %69 = arith.truncf %68 : vector<256x8xf32> to vector<256x8xbf16>
    %c0_66 = arith.constant 0 : index
    %c0_67 = arith.constant 0 : index
    %c0_68 = arith.constant 0 : index
    %70 = vector.load %arg4[%c0_66, %c0_67, %c0_68] : memref<1x256x8xbf16, #tpu.memory_space<vmem>>, vector<1x256x8xbf16>
    %71 = vector.shape_cast %70 : vector<1x256x8xbf16> to vector<256x8xbf16>
    %72 = vector.shape_cast %69 : vector<256x8xbf16> to vector<1x256x8xbf16>
    tpu.vector_store %arg4[%c0_66, %c0_67, %c0_68], %72 {strides = array<i32>} : memref<1x256x8xbf16, #tpu.memory_space<vmem>>, vector<1x256x8xbf16>,
    return
  }
  func.func @transform_0(%arg0: i32) -> (i32, i32, i32, i32) {
    %c0_i32 = arith.constant 0 : i32
    %c0_i32_0 = arith.constant 0 : i32
    %c0_i32_1 = arith.constant 0 : i32
    %c0_i32_2 = arith.constant 0 : i32
    return %arg0, %c0_i32, %c0_i32_0, %c0_i32_1 : i32, i32, i32, i32
  }
  func.func @transform_1(%arg0: i32) -> (i32, i32, i32) {
    %c0_i32 = arith.constant 0 : i32
    %c0_i32_0 = arith.constant 0 : i32
    %c0_i32_1 = arith.constant 0 : i32
    %c0_i32_2 = arith.constant 0 : i32
    return %c0_i32, %c0_i32_0, %c0_i32_1 : i32, i32, i32
  }
  func.func @transform_2(%arg0: i32) -> (i32, i32) {
    %c0_i32 = arith.constant 0 : i32
    %c0_i32_0 = arith.constant 0 : i32
    %c0_i32_1 = arith.constant 0 : i32
    return %c0_i32, %c0_i32_0 : i32, i32
  }
  func.func @transform_3(%arg0: i32) -> (i32, i32, i32) {
    %c0_i32 = arith.constant 0 : i32
    %c0_i32_0 = arith.constant 0 : i32
    %c0_i32_1 = arith.constant 0 : i32
    return %arg0, %c0_i32, %c0_i32_0 : i32, i32, i32
  }
}

</mosaic_0001>

<bundles_post_ra>
// kernel: conv_bn_act.1
= control target key start
LH: loop header
LB: loop body
LE: loop exit
PB: predicated region body
PF: predicated region fallthrough
CT: control target
= control target key end

     0   :  { %s6499_s12 = smov 0   ;;  %s8338_s0 = inlined_call_operand.vmem [shape: bf16[2,18,18,4], index: 0, kind: input, shape index: {}]   ;;  %s8339_s1 = inlined_call_operand.vmem [shape: bf16[9,4,8], index: 1, kind: input, shape index: {}]   ;;  %s8340_s2 = inlined_call_operand.vmem [shape: f32[1,8], index: 2, kind: input, shape index: {}]   ;;  %s8341_s3 = inlined_call_operand.vmem [shape: bf16[2,256,8], index: 3, kind: output, shape index: {}]  }
   0x1 LB: > { %s5018_s13 = sadd.s32 4294967295, %s6477_s12   ;;  %p5022_p0 = scmp.ge.s32.totalorder %s6477_s12, 1  ;;  %s6477_s12 = sphi %s6499_s12, %s13_s12  }
   0x2   : > { %p137_p1 = scmp.lt.s32.totalorder %s6477_s12, 3 }
   0x4   : > { %p138_p2 = pnand %p5022_p0, %p137_p1 }
   0x6   : > { %141 = sbr.rel (%p138_p2) target bundleno = 589 (0x24d), region = 32 }
   0xd   : > { %v5026_v0 = vld [vmem:[%s8339_s1 + $0x2] sm:$0x3]  ;;  %vm707_vm0 = vcmask 1041408   ;;  %v5253_v1 = vld [vmem:[%s8339_s1 + $0x8] sm:$0x3]  ;;  %p161_p3 = scmp.lt.s32.totalorder %s5018_s13, 1 }
   0xe   : > { %6347 = vmatprep.subr.msk.bf16.mxu1 %vm707_vm0, %v5026_v0  ;;  %6351 = vmatprep.subr.msk.bf16.mxu0 %vm707_vm0, %v5253_v1  ;;  %v709_v2 = vsel %vm707_vm0, %v5026_v0, 0  ;;  %v6517_v3 = vsel %vm707_vm0, %v5253_v1, 0  ;;  %v204_v4 = vld [vmem:[%s8339_s1] sm:$0x3]  ;;  %v5318_v5 = vld [vmem:[%s8339_s1 + $0xa] sm:$0x3] }
   0xf   : > { %8355 = vst [vmem:[#allocation2_spill] sm:$0xff] %v6517_v3  ;;  %5784 = vmatpush3.bf16.msra.mxu1 %v709_v2  ;;  %5920 = vmatpush3.bf16.msra.mxu0 %v6517_v3  ;;  %s8410_s13 = smov (!%p161_p3, %s5018_s13), 1  ;;  %vm221_vm1 = vsmask.f32 3328  ;;  %vm222_vm2 = vsmask.f32 7440 }
  0x10   : > { %6348 = vmatprep.subr.msk.bf16.mxu1 %vm707_vm0, %v204_v4  ;;  %6353 = vmatprep.subr.msk.bf16.mxu0 %vm707_vm0, %v5318_v5  ;;  %s6357_s22 = smul.u32 216, %s8410_s13  ;;  %vm658_vm3 = vcmask 31744   ;;  %v6547_v17 = vsel %vm707_vm0, %v204_v4, 0  ;;  %v6553_v26 = vld [vmem:[%s8339_s1 + $0xc] sm:$0x3]  ;;  %vm6560_vm4 = vmor %vm221_vm1, %vm222_vm2  ;;  %v6566_v37 = vsel %vm707_vm0, %v5318_v5, 0 }
  0x11   : > { %v6570_v41 = vsel %vm707_vm0, %v6553_v26, 0  ;;  %vm1212_vm5 = vcmask 1042432   ;;  %vm1213_vm6 = vcmask 1046532   ;;  %s5597_s17 = sshll.u32 %s8410_s13, 7  ;;  %vm4930_vm8 = vcmask 60416  }
  0x12   : > { %s6534_s25 = scalar_lea.vmem %s8338_s0, %s6357_s22  ;;  %vm6786_vm7 = vmor %vm1212_vm5, %vm1213_vm6  ;;  %s8234_s20 = scalar_lea.vmem %s8341_s3, %s5597_s17 }
  0x13   : > { %v172_v6 = vld [vmem:[%s6534_s25] sm:$0xf]  ;;  %v173_v7 = vld [vmem:[%s6534_s25 + $0x4] sm:$0xf]  ;;  %v205_v8 = vld [vmem:[%s6534_s25 + $0x8] sm:$0x1] }
  0x14   : > { %v225_v9 = vshrl.u32 %v172_v6, 16  ;;  %v228_v10 = vshll.u32 %v172_v6, 16  ;;  %v234_v11 = vshll.u32 %v173_v7, 16  ;;  %v238_v12 = vshrl.u32 %v173_v7, 16  ;;  %v5205_v13 = vld [vmem:[%s6534_s25 + $0xc] sm:$0xf] }
  0x15   : > { %v244_v14 = vshll.u32 %v205_v8, 16  ;;  %v6541_v15 = vld [vmem:[%s6534_s25 + $0x10] sm:$0xf]  ;;  %v6544_v16 = vld [vmem:[%s6534_s25 + $0x14] sm:$0x1]  ;;  %v2029_v23 = vshrl.u32 %v5205_v13, 16 }
  0x16   : > { %v227_v18 = vrot.slane %v225_v9, 4  ;;  %v230_v19 = vrot.slane %v228_v10, 5  ;;  %v236_v20 = vrot.slane %v234_v11, 5  ;;  %v240_v21 = vrot.slane %v238_v12, 4  ;;  %v174_v31 = vld [vmem:[%s6534_s25 + $0xc] sm:$0xf] }
  0x17   : > { %v246_v22 = vrot.slane %v244_v14, 5  ;;  %v2032_v24 = vshll.u32 %v5205_v13, 16  ;;  %v2038_v25 = vshll.u32 %v6541_v15, 16  ;;  %v2042_v29 = vshrl.u32 %v6541_v15, 16  ;;  %v175_v36 = vld [vmem:[%s6534_s25 + $0x10] sm:$0xf] }
  0x18   : > { %v231_v27 = vor.u32 %v230_v19, %v227_v18  ;;  %v241_v28 = vor.u32 %v240_v21, %v236_v20  ;;  %v2048_v30 = vshll.u32 %v6544_v16, 16  ;;  %v2031_v33 = vrot.slane %v2029_v23, 4  ;;  %v206_v44 = vld [vmem:[%s6534_s25 + $0x14] sm:$0x1]  ;;  %v5208_v55 = vld [vmem:[%s6534_s25 + $0x18] sm:$0xf] }
  0x19   : > { %v2034_v34 = vrot.slane %v2032_v24, 5  ;;  %v2040_v35 = vrot.slane %v2038_v25, 5  ;;  %v2044_v40 = vrot.slane %v2042_v29, 4  ;;  %v249_v45 = vshrl.u32 %v174_v31, 16  ;;  %v6579_v60 = vld [vmem:[%s6534_s25 + $0x1c] sm:$0xf] }
  0x1a   : > { %v232_v38 = vrot.slane %v231_v27, 4  ;;  %v242_v39 = vrot.slane %v241_v28, 4  ;;  %v2050_v43 = vrot.slane %v2048_v30, 5  ;;  %v252_v46 = vshll.u32 %v174_v31, 16  ;;  %v6587_v1 = vld [vmem:[%s6534_s25 + $0x20] sm:$0x1] }
  0x1b   : > { %v2035_v42 = vor.u32 %v2034_v34, %v2031_v33  ;;  %v2045_v49 = vor.u32 %v2044_v40, %v2040_v35  ;;  %v258_v50 = vshll.u32 %v175_v36, 16  ;;  %v251_v53 = vrot.slane %v249_v45, 4  ;;  %v176_v18 = vld [vmem:[%s6534_s25 + $0x18] sm:$0xf]  ;;  %v177_v23 = vld [vmem:[%s6534_s25 + $0x1c] sm:$0xf] }
  0x1c   : > { %v237_v47 = vsel %vm6560_vm4, %v232_v38, %v236_v20  ;;  %v247_v48 = vsel %vm6560_vm4, %v242_v39, %v246_v22  ;;  %v254_v54 = vrot.slane %v252_v46, 5  ;;  %v262_v58 = vshrl.u32 %v175_v36, 16  ;;  %v207_v31 = vld [vmem:[%s6534_s25 + $0x20] sm:$0x1]  ;;  %v5211_v40 = vld [vmem:[%s6534_s25 + $0x24] sm:$0xf] }
  0x1d   : > { %v5027_v51 = vcombine.low %v237_v47, %v247_v48  ;;  %v2036_v52 = vrot.slane %v2035_v42, 4  ;;  %v2046_v56 = vrot.slane %v2045_v49, 4  ;;  %v260_v57 = vrot.slane %v258_v50, 5  ;;  %v6610_v46 = vld [vmem:[%s6534_s25 + $0x28] sm:$0xf] }
  0x1e   : > { %v268_v59 = vshll.u32 %v206_v44, 16  ;;  %v2772_v62 = vrot.slane %v6541_v15, 5  ;;  %v2775_v63 = vrot.slane %v6544_v16, 5  ;;  %v255_v0 = vor.u32 %v254_v54, %v251_v53  ;;  %v6619_v54 = vld [vmem:[%s6534_s25 + $0x2c] sm:$0x1] }
  0x1f   : > { %5785 = vmatprep.mubr.msk.bf16.mxu1 %vm658_vm3, %v5027_v51  ;;  %v2041_v61 = vsel %vm6560_vm4, %v2036_v52, %v2040_v35  ;;  %v2051_v2 = vsel %vm6560_vm4, %v2046_v56, %v2050_v43  ;;  %v264_v4 = vrot.slane %v262_v58, 4  ;;  %v2053_v6 = vshrl.u32 %v5208_v55, 16  ;;  %v5107_v51 = vld [vmem:[%s8339_s1 + $0x4] sm:$0x3]  ;;  %v6819_v16 = vld [vmem:[%s6534_s25 + $0x7c] sm:$0xf] }
  0x20   : > { %v270_v5 = vrot.slane %v268_v59, 5  ;;  %v5254_v7 = vcombine.low %v2041_v61, %v2051_v2  ;;  %v256_v8 = vrot.slane %v255_v0, 4  ;;  %v2056_v9 = vshll.u32 %v5208_v55, 16  ;;  %v178_v0 = vld [vmem:[%s6534_s25 + $0x24] sm:$0xf] }
  0x21   : > { %v2062_v10 = vshll.u32 %v6579_v60, 16  ;;  %v265_v11 = vor.u32 %v264_v4, %v260_v57  ;;  %v2055_v12 = vrot.slane %v2053_v6, 4  ;;  %v2066_v13 = vshrl.u32 %v6579_v60, 16 }
  0x22   : > { %v2072_v14 = vshll.u32 %v6587_v1, 16  ;;  %5921 = vmatprep.mubr.msk.bf16.mxu0 %vm658_vm3, %v5254_v7  ;;  %v261_v19 = vsel %vm6560_vm4, %v256_v8, %v260_v57  ;;  %v2058_v20 = vrot.slane %v2056_v9, 5  ;;  %v2779_v22 = vrot.slane %v6579_v60, 5  ;;  %v179_v7 = vld [vmem:[%s6534_s25 + $0x28] sm:$0xf] }
  0x23   : > { %v2064_v21 = vrot.slane %v2062_v10, 5  ;;  %v266_v24 = vrot.slane %v265_v11, 4  ;;  %v2068_v25 = vrot.slane %v2066_v13, 4  ;;  %v2782_v28 = vrot.slane %v6587_v1, 5  ;;  %v208_v13 = vld [vmem:[%s6534_s25 + $0x2c] sm:$0x1] }
  0x24   : > { %v2074_v27 = vrot.slane %v2072_v14, 5  ;;  %v2059_v29 = vor.u32 %v2058_v20, %v2055_v12  ;;  %v6603_v30 = vrot.slane %v2779_v22, 4  ;;  %v273_v33 = vshrl.u32 %v176_v18, 16 }
  0x25   : > { %v276_v34 = vshll.u32 %v176_v18, 16  ;;  %v271_v35 = vsel %vm6560_vm4, %v266_v24, %v270_v5  ;;  %v2069_v36 = vor.u32 %v2068_v25, %v2064_v21  ;;  %v282_v38 = vshll.u32 %v177_v23, 16  ;;  %v5214_v24 = vld [vmem:[%s6534_s25 + $0x30] sm:$0xf] }
  0x26   : > { %v286_v39 = vshrl.u32 %v177_v23, 16  ;;  %v5028_v42 = vcombine.low %v261_v19, %v271_v35  ;;  %v2060_v43 = vrot.slane %v2059_v29, 4  ;;  %v275_v44 = vrot.slane %v273_v33, 4  ;;  %v6639_v33 = vld [vmem:[%s6534_s25 + $0x34] sm:$0xf] }
  0x27   : > { %v278_v45 = vrot.slane %v276_v34, 5  ;;  %v2070_v47 = vrot.slane %v2069_v36, 4  ;;  %v284_v48 = vrot.slane %v282_v38, 5  ;;  %v292_v50 = vshll.u32 %v207_v31, 16 }
  0x28   : > { %v288_v49 = vrot.slane %v286_v39, 4  ;;  %5786 = vmatmul.mubr.msk.bf16.vlgmr.msra.gmra.mrb[0].mxu1 %vm658_vm3, %v5028_v42  ;;  %v2065_v52 = vsel %vm6560_vm4, %v2060_v43, %v2064_v21  ;;  %v2077_v55 = vshrl.u32 %v5211_v40, 16  ;;  %v2080_v56 = vshll.u32 %v5211_v40, 16  ;;  %v6647_v40 = vld [vmem:[%s6534_s25 + $0x38] sm:$0x1] }
  0x29   : > { %v279_v53 = vor.u32 %v278_v45, %v275_v44  ;;  %5818 = vmatpush3.bf16.msra.mxu1 %v6547_v17  ;;  %v2075_v57 = vsel %vm6560_vm4, %v2070_v47, %v2074_v27  ;;  %v294_v59 = vrot.slane %v292_v50, 5  ;;  %v2086_v61 = vshll.u32 %v6610_v46, 16 }
  0x2a   : > { %v289_v58 = vor.u32 %v288_v49, %v284_v48  ;;  %v5255_v2 = vcombine.low %v2065_v52, %v2075_v57  ;;  %v2079_v5 = vrot.slane %v2077_v55, 4  ;;  %v2082_v6 = vrot.slane %v2080_v56, 5  ;;  %6349 = vmatprep.subr.msk.bf16.mxu1 %vm707_vm0, %v5107_v51  ;;  %v180_v52 = vld [vmem:[%s6534_s25 + $0x30] sm:$0xf] }
  0x2b   : > { %v280_v4 = vrot.slane %v279_v53, 4  ;;  %v2088_v9 = vrot.slane %v2086_v61, 5  ;;  %v2090_v17 = vshrl.u32 %v6610_v46, 16  ;;  %v2096_v10 = vshll.u32 %v6619_v54, 16 }
  0x2c   : > { %v290_v8 = vrot.slane %v289_v58, 4  ;;  %5922 = vmatmul.mubr.msk.bf16.vlgmr.msra.gmra.mrb[0].mxu0 %vm658_vm3, %v5255_v2  ;;  %v2083_v12 = vor.u32 %v2082_v6, %v2079_v5  ;;  %v297_v14 = vshrl.u32 %v178_v0, 16  ;;  %v300_v18 = vshll.u32 %v178_v0, 16  ;;  %v181_v58 = vld [vmem:[%s6534_s25 + $0x34] sm:$0xf] }
  0x2d   : > { %v285_v11 = vsel %vm6560_vm4, %v280_v4, %v284_v48  ;;  %5954 = vmatpush3.bf16.msra.mxu0 %v6566_v37  ;;  %v2092_v20 = vrot.slane %v2090_v17, 4  ;;  %v2098_v21 = vrot.slane %v2096_v10, 5  ;;  %v306_v23 = vshll.u32 %v179_v7, 16  ;;  %v209_v4 = vld [vmem:[%s6534_s25 + $0x38] sm:$0x1] }
  0x2e   : > { %v295_v19 = vsel %vm6560_vm4, %v290_v8, %v294_v59  ;;  %v2084_v27 = vrot.slane %v2083_v12, 4  ;;  %v299_v29 = vrot.slane %v297_v14, 4  ;;  %v302_v31 = vrot.slane %v300_v18, 5  ;;  %6354 = vmatprep.subr.msk.bf16.mxu0 %vm707_vm0, %v6553_v26  ;;  %v5217_v12 = vld [vmem:[%s6534_s25 + $0x3c] sm:$0xf] }
  0x2f   : > { %v5029_v25 = vcombine.low %v285_v11, %v295_v19  ;;  %v2093_v34 = vor.u32 %v2092_v20, %v2088_v9  ;;  %v308_v35 = vrot.slane %v306_v23, 5  ;;  %v310_v37 = vshrl.u32 %v179_v7, 16  ;;  %v6664_v20 = vld [vmem:[%s6534_s25 + $0x40] sm:$0xf] }
  0x30   : > { %v316_v36 = vshll.u32 %v208_v13, 16  ;;  %v2089_v38 = vsel %vm6560_vm4, %v2084_v27, %v2088_v9  ;;  %v303_v39 = vor.u32 %v302_v31, %v299_v29  ;;  %v2101_v42 = vshrl.u32 %v5214_v24, 16 }
  0x31   : > { %5789 = vmatprep.mubr.msk.bf16.mxu1 %vm658_vm3, %v5029_v25  ;;  %v2104_v43 = vshll.u32 %v5214_v24, 16  ;;  %v2094_v44 = vrot.slane %v2093_v34, 4  ;;  %v312_v45 = vrot.slane %v310_v37, 4  ;;  %v2110_v26 = vshll.u32 %v6639_v33, 16  ;;  %v6669_v34 = vld [vmem:[%s6534_s25 + $0x44] sm:$0x1] }
  0x32   : > { %v318_v47 = vrot.slane %v316_v36, 5  ;;  %v304_v48 = vrot.slane %v303_v39, 4  ;;  %v2103_v49 = vrot.slane %v2101_v42, 4  ;;  %v2114_v51 = vshrl.u32 %v6639_v33, 16  ;;  %v182_v42 = vld [vmem:[%s6534_s25 + $0x3c] sm:$0xf] }
  0x33   : > { %v2106_v50 = vrot.slane %v2104_v43, 5  ;;  %v2099_v53 = vsel %vm6560_vm4, %v2094_v44, %v2098_v21  ;;  %v313_v55 = vor.u32 %v312_v45, %v308_v35  ;;  %v2112_v56 = vrot.slane %v2110_v26, 5  ;;  %v183_v26 = vld [vmem:[%s6534_s25 + $0x40] sm:$0xf] }
  0x34   : > { %v2120_v57 = vshll.u32 %v6647_v40, 16  ;;  %v5256_v59 = vcombine.low %v2089_v38, %v2099_v53  ;;  %v309_v61 = vsel %vm6560_vm4, %v304_v48, %v308_v35  ;;  %v2116_v2 = vrot.slane %v2114_v51, 4 }
  0x35   : > { %v2107_v0 = vor.u32 %v2106_v50, %v2103_v49  ;;  %v314_v5 = vrot.slane %v313_v55, 4  ;;  %v321_v7 = vshrl.u32 %v180_v52, 16  ;;  %v324_v8 = vshll.u32 %v180_v52, 16 }
  0x36   : > { %v2122_v6 = vrot.slane %v2120_v57, 5  ;;  %5925 = vmatprep.mubr.msk.bf16.mxu0 %vm658_vm3, %v5256_v59  ;;  %v2117_v17 = vor.u32 %v2116_v2, %v2112_v56  ;;  %v330_v10 = vshll.u32 %v181_v58, 16  ;;  %v334_v11 = vshrl.u32 %v181_v58, 16  ;;  %v5220_v2 = vld [vmem:[%s6534_s25 + $0x48] sm:$0xf] }
  0x37   : > { %v2108_v9 = vrot.slane %v2107_v0, 4  ;;  %v319_v13 = vsel %vm6560_vm4, %v314_v5, %v318_v47  ;;  %v323_v14 = vrot.slane %v321_v7, 4  ;;  %v326_v18 = vrot.slane %v324_v8, 5  ;;  %v6687_v8 = vld [vmem:[%s6534_s25 + $0x4c] sm:$0xf] }
  0x38   : > { %v340_v19 = vshll.u32 %v209_v4, 16  ;;  %v5030_v21 = vcombine.low %v309_v61, %v319_v13  ;;  %v2118_v24 = vrot.slane %v2117_v17, 4  ;;  %v332_v25 = vrot.slane %v330_v10, 5  ;;  %v210_v61 = vld [vmem:[%s6534_s25 + $0x44] sm:$0x1] }
  0x39   : > { %v2113_v23 = vsel %vm6560_vm4, %v2108_v9, %v2112_v56  ;;  %v327_v27 = vor.u32 %v326_v18, %v323_v14  ;;  %v336_v29 = vrot.slane %v334_v11, 4  ;;  %v2125_v35 = vshrl.u32 %v5217_v12, 16 }
  0x3a   : > { %v342_v31 = vrot.slane %v340_v19, 5  ;;  %5790 = vmatmul.mubr.msk.bf16.gmra.mrb[4].mxu1 %vm658_vm3, %v5030_v21  ;;  %v2123_v37 = vsel %vm6560_vm4, %v2118_v24, %v2122_v6  ;;  %v2128_v36 = vshll.u32 %v5217_v12, 16  ;;  %v2134_v38 = vshll.u32 %v6664_v20, 16 }
  0x3b   : > { %v2138_v39 = vshrl.u32 %v6664_v20, 16  ;;  %v5257_v43 = vcombine.low %v2113_v23, %v2123_v37  ;;  %v328_v44 = vrot.slane %v327_v27, 4  ;;  %v337_v45 = vor.u32 %v336_v29, %v332_v25  ;;  %v6695_v23 = vld [vmem:[%s6534_s25 + $0x50] sm:$0x1]  ;;  %v6699_v27 = vld [vmem:[%s6534_s25 + $0x48] sm:$0xf] }
  0x3c   : > { %v2127_v47 = vrot.slane %v2125_v35, 4  ;;  %v2130_v48 = vrot.slane %v2128_v36, 5  ;;  %v2136_v49 = vrot.slane %v2134_v38, 5  ;;  %v2144_v51 = vshll.u32 %v6669_v34, 16  ;;  %v6702_v36 = vld [vmem:[%s6534_s25 + $0x4c] sm:$0xf] }
  0x3d   : > { %v2140_v50 = vrot.slane %v2138_v39, 4  ;;  %5926 = vmatmul.mubr.msk.bf16.gmra.mrb[4].mxu0 %vm658_vm3, %v5257_v43  ;;  %v333_v52 = vsel %vm6560_vm4, %v328_v44, %v332_v25  ;;  %v338_v53 = vrot.slane %v337_v45, 4  ;;  %v345_v55 = vshrl.u32 %v182_v42, 16 }
  0x3e   : > { %v348_v56 = vshll.u32 %v182_v42, 16  ;;  %v2131_v57 = vor.u32 %v2130_v48, %v2127_v47  ;;  %v2146_v59 = vrot.slane %v2144_v51, 5  ;;  %v354_v0 = vshll.u32 %v183_v26, 16 }
  0x3f   : > { %v2141_v58 = vor.u32 %v2140_v50, %v2136_v49  ;;  %v343_v4 = vsel %vm6560_vm4, %v338_v53, %v342_v31  ;;  %v347_v5 = vrot.slane %v345_v55, 4  ;;  %v358_v7 = vshrl.u32 %v183_v26, 16  ;;  %v211_v26 = vld [vmem:[%s6534_s25 + $0x50] sm:$0x1]  ;;  %v5223_v53 = vld [vmem:[%s6534_s25 + $0x54] sm:$0xf] }
  0x40   : > { %v350_v6 = vrot.slane %v348_v56, 5  ;;  %v5031_v9 = vcombine.low %v333_v52, %v343_v4  ;;  %v2132_v17 = vrot.slane %v2131_v57, 4  ;;  %v356_v11 = vrot.slane %v354_v0, 5  ;;  %v6718_v4 = vld [vmem:[%s6534_s25 + $0x58] sm:$0xf] }
  0x41   : > { %v2142_v10 = vrot.slane %v2141_v58, 4  ;;  %v360_v13 = vrot.slane %v358_v7, 4  ;;  %v364_v14 = vshll.u32 %v210_v61, 16  ;;  %v2149_v18 = vshrl.u32 %v5220_v2, 16 }
  0x42   : > { %v351_v12 = vor.u32 %v350_v6, %v347_v5  ;;  %5793 = vmatprep.mubr.msk.bf16.mxu1 %vm658_vm3, %v5031_v9  ;;  %v2137_v19 = vsel %vm6560_vm4, %v2132_v17, %v2136_v49  ;;  %v2152_v24 = vshll.u32 %v5220_v2, 16  ;;  %v2158_v25 = vshll.u32 %v6687_v8, 16 }
  0x43   : > { %v2147_v21 = vsel %vm6560_vm4, %v2142_v10, %v2146_v59  ;;  %v361_v35 = vor.u32 %v360_v13, %v356_v11  ;;  %v366_v37 = vrot.slane %v364_v14, 5  ;;  %v2151_v38 = vrot.slane %v2149_v18, 4 }
  0x44   : > { %v5258_v29 = vcombine.low %v2137_v19, %v2147_v21  ;;  %v352_v31 = vrot.slane %v351_v12, 4  ;;  %v2154_v39 = vrot.slane %v2152_v24, 5  ;;  %v2160_v42 = vrot.slane %v2158_v25, 5  ;;  %v6724_v12 = vld [vmem:[%s6534_s25 + $0x5c] sm:$0x1] }
  0x45   : > { %v2162_v43 = vshrl.u32 %v6687_v8, 16  ;;  %v362_v45 = vrot.slane %v361_v35, 4  ;;  %v2168_v47 = vshll.u32 %v6695_v23, 16  ;;  %v369_v48 = vshrl.u32 %v6699_v27, 16  ;;  %v6728_v24 = vld [vmem:[%s6534_s25 + $0x54] sm:$0xf] }
  0x46   : > { %5929 = vmatprep.mubr.msk.bf16.mxu0 %vm658_vm3, %v5258_v29  ;;  %v357_v44 = vsel %vm6560_vm4, %v352_v31, %v356_v11  ;;  %v2155_v49 = vor.u32 %v2154_v39, %v2151_v38  ;;  %v372_v51 = vshll.u32 %v6699_v27, 16  ;;  %v378_v52 = vshll.u32 %v6702_v36, 16 }
  0x47   : > { %v2164_v50 = vrot.slane %v2162_v43, 4  ;;  %v367_v55 = vsel %vm6560_vm4, %v362_v45, %v366_v37  ;;  %v2170_v56 = vrot.slane %v2168_v47, 5  ;;  %v371_v57 = vrot.slane %v369_v48, 4  ;;  %v6734_v37 = vld [vmem:[%s6534_s25 + $0x58] sm:$0xf] }
  0x48   : > { %v382_v58 = vshrl.u32 %v6702_v36, 16  ;;  %v5032_v59 = vcombine.low %v357_v44, %v367_v55  ;;  %v2156_v61 = vrot.slane %v2155_v49, 4  ;;  %v374_v2 = vrot.slane %v372_v51, 5 }
  0x49   : > { %v2165_v0 = vor.u32 %v2164_v50, %v2160_v42  ;;  %v380_v5 = vrot.slane %v378_v52, 5  ;;  %v388_v7 = vshll.u32 %v211_v26, 16  ;;  %v2173_v9 = vshrl.u32 %v5223_v53, 16  ;;  %v212_v26 = vld [vmem:[%s6534_s25 + $0x5c] sm:$0x1] }
  0x4a   : > { %v384_v6 = vrot.slane %v382_v58, 4  ;;  %5794 = vmatmul.mubr.msk.bf16.gmra.mrb[8].mxu1 %vm658_vm3, %v5032_v59  ;;  %v2161_v17 = vsel %vm6560_vm4, %v2156_v61, %v2160_v42  ;;  %v375_v11 = vor.u32 %v374_v2, %v371_v57  ;;  %v2176_v13 = vshll.u32 %v5223_v53, 16  ;;  %v5226_v53 = vld [vmem:[%s6534_s25 + $0x60] sm:$0xf]  ;;  %v6748_v59 = vld [vmem:[%s6534_s25 + $0x64] sm:$0xf] }
  0x4b   : > { %v2166_v10 = vrot.slane %v2165_v0, 4  ;;  %v390_v18 = vrot.slane %v388_v7, 5  ;;  %v2175_v19 = vrot.slane %v2173_v9, 4  ;;  %v2182_v21 = vshll.u32 %v6718_v4, 16  ;;  %v6755_v9 = vld [vmem:[%s6534_s25 + $0x68] sm:$0x1] }
  0x4c   : > { %v385_v14 = vor.u32 %v384_v6, %v380_v5  ;;  %v376_v29 = vrot.slane %v375_v11, 4  ;;  %v2178_v31 = vrot.slane %v2176_v13, 5  ;;  %v2186_v35 = vshrl.u32 %v6718_v4, 16 }
  0x4d   : > { %v2171_v25 = vsel %vm6560_vm4, %v2166_v10, %v2170_v56  ;;  %v2184_v42 = vrot.slane %v2182_v21, 5  ;;  %v2192_v43 = vshll.u32 %v6724_v12, 16  ;;  %v393_v48 = vshrl.u32 %v6728_v24, 16 }
  0x4e   : > { %v5259_v38 = vcombine.low %v2161_v17, %v2171_v25  ;;  %v386_v39 = vrot.slane %v385_v14, 4  ;;  %v381_v44 = vsel %vm6560_vm4, %v376_v29, %v380_v5  ;;  %v2179_v45 = vor.u32 %v2178_v31, %v2175_v19  ;;  %v6759_v19 = vld [vmem:[%s6534_s25 + $0x60] sm:$0xf] }
  0x4f   : > { %v2188_v47 = vrot.slane %v2186_v35, 4  ;;  %v2194_v50 = vrot.slane %v2192_v43, 5  ;;  %v396_v51 = vshll.u32 %v6728_v24, 16  ;;  %v402_v52 = vshll.u32 %v6734_v37, 16  ;;  %v6765_v35 = vld [vmem:[%s6534_s25 + $0x64] sm:$0xf] }
  0x50   : > { %5930 = vmatmul.mubr.msk.bf16.gmra.mrb[8].mxu0 %vm658_vm3, %v5259_v38  ;;  %v391_v49 = vsel %vm6560_vm4, %v386_v39, %v390_v18  ;;  %v2180_v56 = vrot.slane %v2179_v45, 4  ;;  %v395_v58 = vrot.slane %v393_v48, 4  ;;  %v406_v2 = vshrl.u32 %v6734_v37, 16 }
  0x51   : > { %v5033_v55 = vcombine.low %v381_v44, %v391_v49  ;;  %v2189_v57 = vor.u32 %v2188_v47, %v2184_v42  ;;  %v398_v61 = vrot.slane %v396_v51, 5  ;;  %v404_v0 = vrot.slane %v402_v52, 5 }
  0x52   : > { %v412_v5 = vshll.u32 %v212_v26, 16  ;;  %v2185_v6 = vsel %vm6560_vm4, %v2180_v56, %v2184_v42  ;;  %v2197_v17 = vshrl.u32 %v5226_v53, 16  ;;  %v2200_v10 = vshll.u32 %v5226_v53, 16 }
  0x53   : > { %5797 = vmatprep.mubr.msk.bf16.mxu1 %vm658_vm3, %v5033_v55  ;;  %v2190_v7 = vrot.slane %v2189_v57, 4  ;;  %v399_v11 = vor.u32 %v398_v61, %v395_v58  ;;  %v408_v13 = vrot.slane %v406_v2, 4  ;;  %v2206_v18 = vshll.u32 %v6748_v59, 16  ;;  %v5286_v58 = vld [vmem:[%s6534_s25 + $0xc] sm:$0xe] }
  0x54   : > { %v414_v14 = vrot.slane %v412_v5, 5  ;;  %v2199_v25 = vrot.slane %v2197_v17, 4  ;;  %v2202_v29 = vrot.slane %v2200_v10, 5  ;;  %v2210_v31 = vshrl.u32 %v6748_v59, 16 }
  0x55   : > { %v2195_v21 = vsel %vm6560_vm4, %v2190_v7, %v2194_v50  ;;  %v400_v39 = vrot.slane %v399_v11, 4  ;;  %v409_v42 = vor.u32 %v408_v13, %v404_v0  ;;  %v2208_v43 = vrot.slane %v2206_v18, 5  ;;  %v213_v50 = vld [vmem:[%s6534_s25 + $0x68] sm:$0x1] }
  0x56   : > { %v5260_v38 = vcombine.low %v2185_v6, %v2195_v21  ;;  %v2203_v44 = vor.u32 %v2202_v29, %v2199_v25  ;;  %v2212_v45 = vrot.slane %v2210_v31, 4  ;;  %v2216_v47 = vshll.u32 %v6755_v9, 16  ;;  %v6793_v29 = vld [vmem:[%s6534_s25 + $0x70] sm:$0xf] }
  0x57   : > { %v417_v26 = vshrl.u32 %v6759_v19, 16  ;;  %v405_v48 = vsel %vm6560_vm4, %v400_v39, %v404_v0  ;;  %v410_v49 = vrot.slane %v409_v42, 4  ;;  %v420_v51 = vshll.u32 %v6759_v19, 16  ;;  %v6780_v0 = vld [vmem:[%s6534_s25 + $0x6c] sm:$0xf] }
  0x58   : > { %5933 = vmatprep.mubr.msk.bf16.mxu0 %vm658_vm3, %v5260_v38  ;;  %v426_v52 = vshll.u32 %v6765_v35, 16  ;;  %v2204_v53 = vrot.slane %v2203_v44, 4  ;;  %v2213_v55 = vor.u32 %v2212_v45, %v2208_v43  ;;  %v2218_v56 = vrot.slane %v2216_v47, 5 }
  0x59   : > { %v419_v57 = vrot.slane %v417_v26, 4  ;;  %v415_v61 = vsel %vm6560_vm4, %v410_v49, %v414_v14  ;;  %v422_v2 = vrot.slane %v420_v51, 5  ;;  %v430_v6 = vshrl.u32 %v6765_v35, 16  ;;  %v214_v26 = vld [vmem:[%s6534_s25 + $0x74] sm:$0x1] }
  0x5a   : > { %v428_v5 = vrot.slane %v426_v52, 5  ;;  %v5034_v7 = vcombine.low %v405_v48, %v415_v61  ;;  %v2209_v17 = vsel %vm6560_vm4, %v2204_v53, %v2208_v43  ;;  %v2214_v10 = vrot.slane %v2213_v55, 4  ;;  %v5287_v48 = vld [vmem:[%s6534_s25 + $0x18] sm:$0xe] }
  0x5b   : > { %v436_v11 = vshll.u32 %v213_v50, 16  ;;  %v423_v14 = vor.u32 %v422_v2, %v419_v57  ;;  %v432_v18 = vrot.slane %v430_v6, 4  ;;  %v5302_v21 = vrot.slane %v5286_v58, 9  ;;  %v6812_v53 = vld [vmem:[%s6534_s25 + $0x78] sm:$0xf] }
  0x5c   : > { %v2774_v25 = vrot.slane %v2772_v62, 4  ;;  %5798 = vmatmul.mubr.msk.bf16.gmra.mrb[12].mxu1 %vm658_vm3, %v5034_v7  ;;  %v2219_v31 = vsel %vm6560_vm4, %v2214_v10, %v2218_v56  ;;  %v441_v39 = vshrl.u32 %v6780_v0, 16  ;;  %v444_v42 = vshll.u32 %v6780_v0, 16  ;;  %v215_v57 = vld [vmem:[%s6534_s25 + $0x80] sm:$0x1] }
  0x5d   : > { %v438_v38 = vrot.slane %v436_v11, 5  ;;  %v5261_v43 = vcombine.low %v2209_v17, %v2219_v31  ;;  %v424_v44 = vrot.slane %v423_v14, 4  ;;  %v433_v45 = vor.u32 %v432_v18, %v428_v5  ;;  %v5288_v10 = vld [vmem:[%s6534_s25 + $0x24] sm:$0xe] }
  0x5e   : > { %v2773_v47 = vsel %vm6786_vm7, %v5302_v21, %v2772_v62  ;;  %v2776_v49 = vsel %vm6786_vm7, %v2774_v25, %v2775_v63  ;;  %v443_v50 = vrot.slane %v441_v39, 4  ;;  %v446_v51 = vrot.slane %v444_v42, 5  ;;  %v6838_v39 = vld [vmem:[%s6534_s25 + $0x84] sm:$0xf] }
  0x5f   : > { %v450_v52 = vshll.u32 %v6793_v29, 16  ;;  %5934 = vmatmul.mubr.msk.bf16.gmra.mrb[12].mxu0 %vm658_vm3, %v5261_v43  ;;  %v429_v15 = vsel %vm6560_vm4, %v424_v44, %v428_v5  ;;  %v434_v62 = vrot.slane %v433_v45, 4  ;;  %v5319_v55 = vcombine.low %v2773_v47, %v2776_v49  ;;  %v6846_v43 = vld [vmem:[%s6534_s25 + $0x88] sm:$0xf] }
  0x60   : > { %v454_v56 = vshrl.u32 %v6793_v29, 16  ;;  %v447_v63 = vor.u32 %v446_v51, %v443_v50  ;;  %v460_v61 = vshll.u32 %v214_v26, 16  ;;  %v5303_v2 = vrot.slane %v5287_v48, 9 }
  0x61   : > { %v452_v58 = vrot.slane %v450_v52, 5  ;;  %v439_v6 = vsel %vm6560_vm4, %v434_v62, %v438_v38  ;;  %5955 = vmatprep.mubr.msk.bf16.mxu0 %vm658_vm3, %v5319_v55  ;;  %v2783_v5 = vsel %vm6786_vm7, %v6603_v30, %v2782_v28  ;;  %v465_v17 = vshrl.u32 %v6812_v53, 16  ;;  %v216_v52 = vld [vmem:[%s6534_s25 + $0x8c] sm:$0x1] }
  0x62   : > { %v456_v7 = vrot.slane %v454_v56, 4  ;;  %v5035_v11 = vcombine.low %v429_v15, %v439_v6  ;;  %v448_v14 = vrot.slane %v447_v63, 4  ;;  %v462_v18 = vrot.slane %v460_v61, 5 }
  0x63   : > { %v2780_v21 = vsel %vm6786_vm7, %v5303_v2, %v2779_v22  ;;  %v467_v38 = vrot.slane %v465_v17, 4  ;;  %v468_v1 = vshll.u32 %v6812_v53, 16  ;;  %v474_v30 = vshll.u32 %v6819_v16, 16  ;;  %v6851_v22 = vld [vmem:[%s8339_s1 + $0xe] sm:$0x3] }
  0x64   : > { %v457_v25 = vor.u32 %v456_v7, %v452_v58  ;;  %v5320_v31 = vcombine.low %v2780_v21, %v2783_v5  ;;  %5801 = vmatprep.mubr.msk.bf16.mxu1 %vm658_vm3, %v5035_v11  ;;  %v453_v28 = vsel %vm6560_vm4, %v448_v14, %v452_v58  ;;  %v478_v60 = vshrl.u32 %v6819_v16, 16  ;;  %v6870_v5 = vld [vmem:[%s6534_s25 + $0x90] sm:$0xf] }
  0x65   : > { %v484_v42 = vshll.u32 %v215_v57, 16  ;;  %v470_v45 = vrot.slane %v468_v1, 5  ;;  %v5304_v47 = vrot.slane %v5288_v10, 9  ;;  %v2786_v26 = vrot.slane %v6610_v46, 5  ;;  %v5289_v57 = vld [vmem:[%s6534_s25 + $0x30] sm:$0xe] }
  0x66   : > { %v458_v44 = vrot.slane %v457_v25, 4  ;;  %v476_v48 = vrot.slane %v474_v30, 5  ;;  %v480_v49 = vrot.slane %v478_v60, 4  ;;  %v2789_v51 = vrot.slane %v6619_v54, 5  ;;  %v6882_v30 = vld [vmem:[%s6534_s25 + $0x94] sm:$0xf] }
  0x67   : > { %v486_v50 = vrot.slane %v484_v42, 5  ;;  %5956 = vmatmul.mubr.msk.bf16.vlgmr.msra.gmra.mrb[0].mxu0 %vm658_vm3, %v5320_v31  ;;  %v471_v62 = vor.u32 %v470_v45, %v467_v38  ;;  %v2787_v55 = vsel %vm6786_vm7, %v5304_v47, %v2786_v26  ;;  %v2788_v56 = vrot.slane %v2786_v26, 4  ;;  %v217_v60 = vld [vmem:[%s6534_s25 + $0x98] sm:$0x1]  ;;  %v5290_v26 = vld [vmem:[%s6534_s25 + $0x3c] sm:$0xe] }
  0x68   : > { %v463_v15 = vsel %vm6560_vm4, %v458_v44, %v462_v18  ;;  %5988 = vmatpush3.bf16.msra.mxu0 %v6570_v41  ;;  %v481_v46 = vor.u32 %v480_v49, %v476_v48  ;;  %v489_v58 = vshrl.u32 %v6838_v39, 16  ;;  %v492_v54 = vshll.u32 %v6838_v39, 16 }
  0x69   : > { %v5036_v63 = vcombine.low %v453_v28, %v463_v15  ;;  %v472_v61 = vrot.slane %v471_v62, 4  ;;  %v2790_v2 = vsel %vm6786_vm7, %v2788_v56, %v2789_v51  ;;  %v498_v6 = vshll.u32 %v6846_v43, 16  ;;  %6355 = vmatprep.subr.msk.bf16.mxu0 %vm707_vm0, %v6851_v22 }
  0x6a   : > { %v502_v7 = vshrl.u32 %v6846_v43, 16  ;;  %v482_v41 = vrot.slane %v481_v46, 4  ;;  %v5321_v17 = vcombine.low %v2787_v55, %v2790_v2  ;;  %v491_v10 = vrot.slane %v489_v58, 4  ;;  %v6902_v46 = vld [vmem:[%s6534_s25 + $0xa0] sm:$0xf] }
  0x6b   : > { %5802 = vmatmul.mubr.msk.bf16.gmra.mrb[16].mxu1 %vm658_vm3, %v5036_v63  ;;  %v494_v11 = vrot.slane %v492_v54, 5  ;;  %v477_v14 = vsel %vm6560_vm4, %v472_v61, %v476_v48  ;;  %v500_v18 = vrot.slane %v498_v6, 5  ;;  %v508_v25 = vshll.u32 %v216_v52, 16  ;;  %v6891_v52 = vld [vmem:[%s6534_s25 + $0x9c] sm:$0xf] }
  0x6c   : > { %v504_v21 = vrot.slane %v502_v7, 4  ;;  %v487_v31 = vsel %vm6560_vm4, %v482_v41, %v486_v50  ;;  %5959 = vmatprep.mubr.msk.bf16.mxu0 %vm658_vm3, %v5321_v17  ;;  %v5305_v1 = vrot.slane %v5289_v57, 9  ;;  %v2793_v28 = vrot.slane %v6639_v33, 5 }
  0x6d   : > { %v495_v38 = vor.u32 %v494_v11, %v491_v10  ;;  %v5037_v42 = vcombine.low %v477_v14, %v487_v31  ;;  %v510_v45 = vrot.slane %v508_v25, 5  ;;  %v2796_v47 = vrot.slane %v6647_v40, 5  ;;  %v218_v10 = vld [vmem:[%s6534_s25 + $0xa4] sm:$0x1]  ;;  %v5291_v11 = vld [vmem:[%s6534_s25 + $0x48] sm:$0xe] }
  0x6e   : > { %v505_v44 = vor.u32 %v504_v21, %v500_v18  ;;  %v2794_v49 = vsel %vm6786_vm7, %v5305_v1, %v2793_v28  ;;  %v2795_v50 = vrot.slane %v2793_v28, 4  ;;  %v513_v51 = vshrl.u32 %v6870_v5, 16 }
  0x6f   : > { %v496_v48 = vrot.slane %v495_v38, 4  ;;  %5805 = vmatprep.mubr.msk.bf16.mxu1 %vm658_vm3, %v5037_v42  ;;  %v516_v15 = vshll.u32 %v6870_v5, 16  ;;  %v522_v62 = vshll.u32 %v6882_v30, 16  ;;  %v526_v40 = vshrl.u32 %v6882_v30, 16 }
  0x70   : > { %v506_v33 = vrot.slane %v505_v44, 4  ;;  %v2797_v56 = vsel %vm6786_vm7, %v2795_v50, %v2796_v47  ;;  %v515_v57 = vrot.slane %v513_v51, 4  ;;  %v532_v63 = vshll.u32 %v217_v60, 16 }
  0x71   : > { %v501_v55 = vsel %vm6560_vm4, %v496_v48, %v500_v18  ;;  %v5322_v54 = vcombine.low %v2794_v49, %v2797_v56  ;;  %v518_v61 = vrot.slane %v516_v15, 5  ;;  %v524_v2 = vrot.slane %v522_v62, 5  ;;  %v6928_v56 = vld [vmem:[%s6534_s25 + $0xac] sm:$0xf] }
  0x72   : > { %v511_v58 = vsel %vm6560_vm4, %v506_v33, %v510_v45  ;;  %v528_v7 = vrot.slane %v526_v40, 4  ;;  %v534_v41 = vrot.slane %v532_v63, 5  ;;  %v5306_v17 = vrot.slane %v5290_v26, 9  ;;  %v6923_v33 = vld [vmem:[%s6534_s25 + $0xa8] sm:$0xf] }
  0x73   : > { %v5038_v6 = vcombine.low %v501_v55, %v511_v58  ;;  %5960 = vmatmul.mubr.msk.bf16.gmra.mrb[4].mxu0 %vm658_vm3, %v5322_v54  ;;  %v519_v14 = vor.u32 %v518_v61, %v515_v57  ;;  %v2800_v18 = vrot.slane %v6664_v20, 5  ;;  %v2803_v21 = vrot.slane %v6669_v34, 5  ;;  %v219_v61 = vld [vmem:[%s6534_s25 + $0xb0] sm:$0x1] }
  0x74   : > { %v537_v25 = vshrl.u32 %v6891_v52, 16  ;;  %v529_v31 = vor.u32 %v528_v7, %v524_v2  ;;  %v540_v38 = vshll.u32 %v6891_v52, 16  ;;  %v546_v1 = vshll.u32 %v6902_v46, 16 }
  0x75   : > { %5806 = vmatmul.mubr.msk.bf16.gmra.mrb[20].mxu1 %vm658_vm3, %v5038_v6  ;;  %v550_v28 = vshrl.u32 %v6902_v46, 16  ;;  %v520_v60 = vrot.slane %v519_v14, 4  ;;  %v2801_v42 = vsel %vm6786_vm7, %v5306_v17, %v2800_v18  ;;  %v2802_v20 = vrot.slane %v2800_v18, 4  ;;  %v6943_v14 = vld [vmem:[%s6534_s25 + $0xb4] sm:$0xf] }
  0x76   : > { %v539_v44 = vrot.slane %v537_v25, 4  ;;  %v530_v34 = vrot.slane %v529_v31, 4  ;;  %v542_v45 = vrot.slane %v540_v38, 5  ;;  %v548_v47 = vrot.slane %v546_v1, 5 }
  0x77   : > { %v552_v26 = vrot.slane %v550_v28, 4  ;;  %v525_v48 = vsel %vm6560_vm4, %v520_v60, %v524_v2  ;;  %v2804_v49 = vsel %vm6786_vm7, %v2802_v20, %v2803_v21  ;;  %v556_v50 = vshll.u32 %v218_v10, 16  ;;  %v5292_v2 = vld [vmem:[%s6534_s25 + $0x54] sm:$0xe] }
  0x78   : > { %v5307_v51 = vrot.slane %v5291_v11, 9  ;;  %v535_v15 = vsel %vm6560_vm4, %v530_v34, %v534_v41  ;;  %v5323_v62 = vcombine.low %v2801_v42, %v2804_v49  ;;  %v543_v40 = vor.u32 %v542_v45, %v539_v44  ;;  %v6952_v42 = vld [vmem:[%s6534_s25 + $0xb8] sm:$0xf]  ;;  %v220_v49 = vld [vmem:[%s6534_s25 + $0xbc] sm:$0x1] }
  0x79   : > { %v553_v55 = vor.u32 %v552_v26, %v548_v47  ;;  %v5039_v57 = vcombine.low %v525_v48, %v535_v15  ;;  %v558_v63 = vrot.slane %v556_v50, 5  ;;  %v2807_v58 = vrot.slane %v6687_v8, 5 }
  0x7a   : > { %v2810_v54 = vrot.slane %v6695_v23, 5  ;;  %5963 = vmatprep.mubr.msk.bf16.mxu0 %vm658_vm3, %v5323_v62  ;;  %v544_v6 = vrot.slane %v543_v40, 4  ;;  %v561_v41 = vshrl.u32 %v6923_v33, 16  ;;  %v564_v17 = vshll.u32 %v6923_v33, 16 }
  0x7b   : > { %v554_v7 = vrot.slane %v553_v55, 4  ;;  %5809 = vmatprep.mubr.msk.bf16.mxu1 %vm658_vm3, %v5039_v57  ;;  %v2808_v10 = vsel %vm6786_vm7, %v5307_v51, %v2807_v58  ;;  %v2809_v11 = vrot.slane %v2807_v58, 4  ;;  %v570_v8 = vshll.u32 %v6928_v56, 16  ;;  %v5293_v55 = vld [vmem:[%s6534_s25 + $0x60] sm:$0xe] }
  0x7c   : > { %v574_v23 = vshrl.u32 %v6928_v56, 16  ;;  %v549_v18 = vsel %vm6560_vm4, %v544_v6, %v548_v47  ;;  %v563_v25 = vrot.slane %v561_v41, 4  ;;  %v566_v31 = vrot.slane %v564_v17, 5  ;;  %v5294_v6 = vld [vmem:[%s6534_s25 + $0x6c] sm:$0xe] }
  0x7d   : > { %v559_v21 = vsel %vm6560_vm4, %v554_v7, %v558_v63  ;;  %v2811_v1 = vsel %vm6786_vm7, %v2809_v11, %v2810_v54  ;;  %v572_v28 = vrot.slane %v570_v8, 5  ;;  %v580_v34 = vshll.u32 %v219_v61, 16  ;;  %v5230_v11 = vld [vmem:[%s6534_s25 + $0x70] sm:$0xf]  ;;  %v5231_v8 = vld [vmem:[%s6534_s25 + $0x74] sm:$0x1] }
  0x7e   : > { %v5040_v38 = vcombine.low %v549_v18, %v559_v21  ;;  %v576_v60 = vrot.slane %v574_v23, 4  ;;  %v5324_v20 = vcombine.low %v2808_v10, %v2811_v1  ;;  %v567_v44 = vor.u32 %v566_v31, %v563_v25 }
  0x7f   : > { %v5308_v45 = vrot.slane %v5292_v2, 9  ;;  %v2814_v26 = vrot.slane %v6718_v4, 5  ;;  %v2817_v48 = vrot.slane %v6724_v12, 5  ;;  %v585_v50 = vshrl.u32 %v6943_v14, 16 }
  0x80   : > { %5810 = vmatmul.mubr.msk.bf16.gmra.mrb[24].mxu1 %vm658_vm3, %v5040_v38  ;;  %v577_v47 = vor.u32 %v576_v60, %v572_v28  ;;  %5964 = vmatmul.mubr.msk.bf16.gmra.mrb[8].mxu0 %vm658_vm3, %v5324_v20  ;;  %v568_v51 = vrot.slane %v567_v44, 4  ;;  %v582_v15 = vrot.slane %v580_v34, 5  ;;  %v588_v62 = vshll.u32 %v6943_v14, 16 }
  0x81   : > { %v594_v40 = vshll.u32 %v6952_v42, 16  ;;  %v2815_v4 = vsel %vm6786_vm7, %v5308_v45, %v2814_v26  ;;  %v2816_v12 = vrot.slane %v2814_v26, 4  ;;  %v587_v63 = vrot.slane %v585_v50, 4 }
  0x82   : > { %v578_v57 = vrot.slane %v577_v47, 4  ;;  %v573_v58 = vsel %vm6560_vm4, %v568_v51, %v572_v28  ;;  %v590_v54 = vrot.slane %v588_v62, 5  ;;  %v598_v2 = vshrl.u32 %v6952_v42, 16  ;;  %v5295_v47 = vld [vmem:[%s6534_s25 + $0x78] sm:$0xe] }
  0x83   : > { %v596_v61 = vrot.slane %v594_v40, 5  ;;  %v2818_v41 = vsel %vm6786_vm7, %v2816_v12, %v2817_v48  ;;  %v604_v17 = vshll.u32 %v220_v49, 16  ;;  %v5309_v10 = vrot.slane %v5293_v55, 9  ;;  %v6414_v51 = vld [vmem:[%s6534_s25] sm:$0xf] }
  0x84   : > { %v583_v7 = vsel %vm6560_vm4, %v578_v57, %v582_v15  ;;  %v5325_v18 = vcombine.low %v2815_v4, %v2818_v41  ;;  %v591_v21 = vor.u32 %v590_v54, %v587_v63  ;;  %v600_v25 = vrot.slane %v598_v2, 4  ;;  %v6990_v15 = vld [vmem:[%s6534_s25 + $0x4] sm:$0xf]  ;;  %v6994_v40 = vld [vmem:[%s6534_s25 + $0x7c] sm:$0xf] }
  0x85   : > { %v5041_v23 = vcombine.low %v573_v58, %v583_v7  ;;  %v606_v31 = vrot.slane %v604_v17, 5  ;;  %v2821_v38 = vrot.slane %v6748_v59, 5  ;;  %v2824_v1 = vrot.slane %v6755_v9, 5  ;;  %v6997_v55 = vld [vmem:[%s6534_s25 + $0x80] sm:$0x1] }
  0x86   : > { %v5310_v28 = vrot.slane %v5294_v6, 9  ;;  %5967 = vmatprep.mubr.msk.bf16.mxu0 %vm658_vm3, %v5325_v18  ;;  %v592_v60 = vrot.slane %v591_v21, 4  ;;  %v601_v20 = vor.u32 %v600_v25, %v596_v61  ;;  %v2828_v44 = vrot.slane %v5230_v11, 5  ;;  %v5236_v57 = vld [vmem:[%s6534_s25 + $0x88] sm:$0xf] }
  0x87   : > { %5813 = vmatprep.mubr.msk.bf16.mxu1 %vm658_vm3, %v5041_v23  ;;  %v2831_v34 = vrot.slane %v5231_v8, 5  ;;  %v2822_v45 = vsel %vm6786_vm7, %v5309_v10, %v2821_v38  ;;  %v2823_v59 = vrot.slane %v2821_v38, 4  ;;  %v5059_v62 = vcombine.low %v6414_v51, %v6990_v15  ;;  %v5237_v54 = vld [vmem:[%s6534_s25 + $0x8c] sm:$0x1]  ;;  %v5239_v17 = vld [vmem:[%s6534_s25 + $0x94] sm:$0xf] }
  0x88   : > { %v597_v9 = vsel %vm6560_vm4, %v592_v60, %v596_v61  ;;  %v602_v26 = vrot.slane %v601_v20, 4  ;;  %v2829_v48 = vsel %vm6786_vm7, %v5310_v28, %v2828_v44  ;;  %v2830_v49 = vrot.slane %v2828_v44, 4  ;;  %v5296_v61 = vld [vmem:[%s6534_s25 + $0x84] sm:$0xe]  ;;  %v5297_v23 = vld [vmem:[%s6534_s25 + $0x90] sm:$0xe] }
  0x89   : > { %v2825_v50 = vsel %vm6786_vm7, %v2823_v59, %v2824_v1  ;;  %v5311_v58 = vrot.slane %v5295_v47, 9  ;;  %v2835_v7 = vrot.slane %v6994_v40, 5  ;;  %v2838_v41 = vrot.slane %v6997_v55, 5  ;;  %v5240_v25 = vld [vmem:[%s6534_s25 + $0x98] sm:$0x1] }
  0x8a   : > { %v607_v4 = vsel %vm6560_vm4, %v602_v26, %v606_v31  ;;  %v5326_v12 = vcombine.low %v2822_v45, %v2825_v50  ;;  %v2832_v63 = vsel %vm6786_vm7, %v2830_v49, %v2831_v34  ;;  %v5312_v10 = vrot.slane %v5296_v61, 9  ;;  %v5242_v31 = vld [vmem:[%s6534_s25 + $0xa0] sm:$0xf]  ;;  %v5243_v60 = vld [vmem:[%s6534_s25 + $0xa4] sm:$0x1] }
  0x8b   : > { %v5042_v2 = vcombine.low %v597_v9, %v607_v4  ;;  %v5327_v6 = vcombine.low %v2829_v48, %v2832_v63  ;;  %v2842_v11 = vrot.slane %v5236_v57, 5  ;;  %v2845_v8 = vrot.slane %v5237_v54, 5  ;;  %v5298_v20 = vld [vmem:[%s6534_s25 + $0x9c] sm:$0xe]  ;;  %v6416_v44 = vld [vmem:[%s6534_s25 + $0xc] sm:$0xf] }
  0x8c   : > { %5968 = vmatmul.mubr.msk.bf16.gmra.mrb[12].mxu0 %vm658_vm3, %v5326_v12  ;;  %v2836_v18 = vsel %vm6786_vm7, %v5311_v58, %v2835_v7  ;;  %v2837_v21 = vrot.slane %v2835_v7, 4  ;;  %v2849_v28 = vrot.slane %v5239_v17, 5  ;;  %v7024_v34 = vld [vmem:[%s6534_s25 + $0x10] sm:$0xf]  ;;  %v6418_v47 = vld [vmem:[%s6534_s25 + $0x18] sm:$0xf] }
  0x8d   : > { %5814 = vmatmul.mubr.msk.bf16.gmra.mrb[28].mxu1 %vm658_vm3, %v5042_v2  ;;  %5971 = vmatprep.mubr.msk.bf16.mxu0 %vm658_vm3, %v5327_v6  ;;  %v2843_v38 = vsel %vm6786_vm7, %v5312_v10, %v2842_v11  ;;  %v2844_v1 = vrot.slane %v2842_v11, 4  ;;  %v5060_v45 = vcombine.low %v6416_v44, %v7024_v34  ;;  %v7031_v9 = vld [vmem:[%s6534_s25 + $0x1c] sm:$0xf]  ;;  %v5313_v48 = vrot.slane %v5297_v23, 9  ;;  %v5245_v57 = vld [vmem:[%s6534_s25 + $0xac] sm:$0xf] }
  0x8e   : > { %5819 = vmatprep.mubr.msk.bf16.mxu1 %vm658_vm3, %v5059_v62  ;;  %v2839_v59 = vsel %vm6786_vm7, %v2837_v21, %v2838_v41  ;;  %v5061_v26 = vcombine.low %v6418_v47, %v7031_v9  ;;  %v2851_v51 = vrot.slane %v2849_v28, 4  ;;  %v2852_v62 = vrot.slane %v5240_v25, 5  ;;  %v6420_v54 = vld [vmem:[%s8339_s1 + $0x4] sm:$0x3]  ;;  %v5248_v2 = vld [vmem:[%s6534_s25 + $0xb8] sm:$0xf] }
  0x8f   : > { %v5328_v49 = vcombine.low %v2836_v18, %v2839_v59  ;;  %v2846_v50 = vsel %vm6786_vm7, %v2844_v1, %v2845_v8  ;;  %v5314_v12 = vrot.slane %v5298_v20, 9  ;;  %v2856_v63 = vrot.slane %v5242_v31, 5  ;;  %v7046_v7 = vld [vmem:[%s8339_s1 + $0x6] sm:$0x3]  ;;  %v5246_v10 = vld [vmem:[%s6534_s25 + $0xb0] sm:$0x1] }
  0x90   : > { %v5329_v4 = vcombine.low %v2843_v38, %v2846_v50  ;;  %v2859_v58 = vrot.slane %v5243_v60, 5  ;;  %v1426_v61 = vsel %vm707_vm0, %v6420_v54, 0  ;;  %v2850_v41 = vsel %vm6786_vm7, %v5313_v48, %v2849_v28  ;;  %v5299_v11 = vld [vmem:[%s6534_s25 + $0xa8] sm:$0xe]  ;;  %v5249_v25 = vld [vmem:[%s6534_s25 + $0xbc] sm:$0x1] }
  0x91   : > { %v2858_v6 = vrot.slane %v2856_v63, 4  ;;  %v2853_v17 = vsel %vm6786_vm7, %v2851_v51, %v2852_v62  ;;  %v2863_v8 = vrot.slane %v5245_v57, 5  ;;  %v2857_v23 = vsel %vm6786_vm7, %v5314_v12, %v2856_v63  ;;  %v5300_v31 = vld [vmem:[%s6534_s25 + $0xb4] sm:$0xe]  ;;  %v6421_v38 = vld [vmem:[%s6534_s25 + $0x24] sm:$0xf] }
  0x92   : > { %v2870_v21 = vrot.slane %v5248_v2, 5  ;;  %v7067_v1 = vld [vmem:[%s6534_s25 + $0x28] sm:$0xf]  ;;  %v5330_v60 = vcombine.low %v2850_v41, %v2853_v17  ;;  %v5315_v44 = vrot.slane %v5299_v11, 9  ;;  %v2866_v59 = vrot.slane %v5246_v10, 5 }
  0x93   : > { %v2860_v18 = vsel %vm6786_vm7, %v2858_v6, %v2859_v58  ;;  %v5062_v28 = vcombine.low %v6421_v38, %v7067_v1  ;;  %v6423_v47 = vld [vmem:[%s6534_s25 + $0x30] sm:$0xf]  ;;  %v2873_v51 = vrot.slane %v5249_v25, 5  ;;  %v5251_v62 = vld [vmem:[%s6534_s25 + $0xc4] sm:$0xf]  ;;  %v2258_v25 = vshrl.u32 %v6994_v40, 16 }
  0x94   : > { %5972 = vmatmul.mubr.msk.bf16.gmra.mrb[16].mxu0 %vm658_vm3, %v5328_v49  ;;  %v5331_v20 = vcombine.low %v2857_v23, %v2860_v18  ;;  %v5316_v49 = vrot.slane %v5300_v31, 9  ;;  %v2872_v50 = vrot.slane %v2870_v21, 4  ;;  %v2864_v57 = vsel %vm6786_vm7, %v5315_v44, %v2863_v8  ;;  %v5301_v12 = vld [vmem:[%s6534_s25 + $0xc0] sm:$0xe]  ;;  %v6425_v41 = vld [vmem:[%s6534_s25 + $0x3c] sm:$0xf] }
  0x95   : > { %5820 = vmatmul.mubr.msk.bf16.vlgmr.msra.gmra.mrb[0].mxu1 %vm658_vm3, %v5060_v45  ;;  %5975 = vmatprep.mubr.msk.bf16.mxu0 %vm658_vm3, %v5329_v4  ;;  %v2865_v45 = vrot.slane %v2863_v8, 4  ;;  %v2877_v63 = vrot.slane %v5251_v62, 5  ;;  %v5317_v6 = vrot.slane %v5301_v12, 9  ;;  %v7092_v17 = vld [vmem:[%s6534_s25 + $0x40] sm:$0xf]  ;;  %v5065_v18 = vcombine.low %v6699_v27, %v6702_v36  ;;  %v6377_v62 = vld [vmem:[%s6534_s25 + $0x24] sm:$0xff]  }
  0x96   : > { %5852 = vmatpush3.bf16.msra.mxu1 %v1426_v61  ;;  %5823 = vmatprep.mubr.msk.bf16.mxu1 %vm658_vm3, %v5061_v26  ;;  %v7072_v26 = vld [vmem:[%s6534_s25 + $0x34] sm:$0xf]  ;;  %v2871_v58 = vsel %vm6786_vm7, %v5316_v49, %v2870_v21  ;;  %v2874_v54 = vsel %vm6786_vm7, %v2872_v50, %v2873_v51  ;;  %v5252_v61 = vld [vmem:[%s6534_s25 + $0xc8] sm:$0x1]  ;;  %v5064_v10 = vcombine.low %v6425_v41, %v7092_v17  ;;  %v2254_v21 = vshll.u32 %v6994_v40, 16 }
  0x97   : > { %6350 = vmatprep.subr.msk.bf16.mxu1 %vm707_vm0, %v7046_v7  ;;  %v5063_v48 = vcombine.low %v6423_v47, %v7072_v26  ;;  %v2867_v4 = vsel %vm6786_vm7, %v2865_v45, %v2866_v59  ;;  %v5333_v11 = vcombine.low %v2871_v58, %v2874_v54  ;;  %v2879_v8 = vrot.slane %v2877_v63, 4  ;;  %v1164_v45 = vld [vmem:[%s6534_s25] sm:$0xe]  ;;  %v1165_v59 = vld [vmem:[%s6534_s25 + $0xc] sm:$0xe] }
  0x98   : > { %v5332_v2 = vcombine.low %v2864_v57, %v2867_v4  ;;  %v2880_v23 = vrot.slane %v5252_v61, 5  ;;  %v2878_v31 = vsel %vm6786_vm7, %v5317_v6, %v2877_v63  ;;  %v7107_v27 = vrot.slane %v2254_v21, 5  ;;  %v1168_v41 = vld [vmem:[%s6534_s25 + $0x30] sm:$0xe] }
  0x99   : > { %v2260_v36 = vrot.slane %v2258_v25, 4  ;;  %v5067_v44 = vcombine.low %v6759_v19, %v6765_v35  ;;  %v2264_v47 = vshll.u32 %v6997_v55, 16  ;;  %v5091_v19 = vrot.slane %v1164_v45, 9 }
  0x9a   : > { %v2881_v38 = vsel %vm6786_vm7, %v2879_v8, %v2880_v23  ;;  %8360 = vst [vmem:[#allocation3_spill] sm:$0xff] %v7107_v27  ;;  %v5092_v35 = vrot.slane %v1165_v59, 9  ;;  %v1231_v4 = vrot.slane %v7031_v9, 5  ;;  %v1238_v12 = vrot.slane %v7067_v1, 5  ;;  %v1169_v8 = vld [vmem:[%s6534_s25 + $0x3c] sm:$0xe] }
  0x9b   : > { %v5334_v40 = vcombine.low %v2878_v31, %v2881_v38  ;;  %v2261_v49 = vor.u32 %v2260_v36, %v7107_v27  ;;  %v7127_v51 = vrot.slane %v2264_v47, 5  ;;  %v5068_v58 = vcombine.low %v6780_v0, %v6793_v29  ;;  %v1170_v31 = vld [vmem:[%s6534_s25 + $0x48] sm:$0xe]  ;;  %v6431_v59 = vld [vmem:[%s6534_s25 + $0x38] sm:$0x1] }
  0x9c   : > { %5976 = vmatmul.mubr.msk.bf16.gmra.mrb[20].mxu0 %vm658_vm3, %v5330_v60  ;;  %v5066_v60 = vcombine.low %v6728_v24, %v6734_v37  ;;  %v6428_v24 = vld [vmem:[%s6534_s25 + $0x14] sm:$0x1]  ;;  %v4066_v54 = vsel %vm707_vm0, %v6851_v22, 0  ;;  %v5069_v61 = vcombine.low %v6812_v53, %v6819_v16  ;;  %v5070_v6 = vcombine.low %v6838_v39, %v6846_v43  ;;  %v6429_v16 = vld [vmem:[%s6534_s25 + $0x20] sm:$0x1] }
  0x9d   : > { %5824 = vmatmul.mubr.msk.bf16.gmra.mrb[4].mxu1 %vm658_vm3, %v5062_v28  ;;  %5979 = vmatprep.mubr.msk.bf16.mxu0 %vm658_vm3, %v5331_v20  ;;  %v1224_v28 = vrot.slane %v7024_v34, 5  ;;  %v6375_v20 = vld [vmem:[%s6534_s25 + $0x18] sm:$0xff]   ;;  %v6427_v34 = vld [vmem:[%s6534_s25 + $0x8] sm:$0x1]  ;;  %v1227_v37 = vrot.slane %v6428_v24, 5  ;;  %8361 = vst [vmem:[#allocation4_spill] sm:$0xff] %v7127_v51  ;;  %v5071_v9 = vcombine.low %v6870_v5, %v6882_v30 }
  0x9e   : > { %5827 = vmatprep.mubr.msk.bf16.mxu1 %vm658_vm3, %v5063_v48  ;;  %v1217_v48 = vrot.slane %v6990_v15, 5  ;;  %v1220_v50 = vrot.slane %v6427_v34, 5  ;;  %v1166_v15 = vld [vmem:[%s6534_s25 + $0x18] sm:$0xe]  ;;  %v7132_v63 = vrot.slane %v2261_v49, 4  ;;  %v1234_v22 = vrot.slane %v6429_v16, 5 }
  0x9f   : > { %v1226_v55 = vrot.slane %v1224_v28, 4  ;;  %v5093_v1 = vrot.slane %v1166_v15, 9  ;;  %v7154_v29 = vsel %vm6786_vm7, %v5092_v35, %v1224_v28  ;;  %v1240_v25 = vrot.slane %v1238_v12, 4  ;;  %v5416_v24 = vld [vmem:[%s6534_s25 + $0x18] sm:$0xf] }
  0xa0   : > { %v1219_v57 = vrot.slane %v1217_v48, 4  ;;  %8362 = vst [vmem:[#allocation5_spill] sm:$0xff] %v7132_v63  ;;  %v7150_v0 = vsel %vm6786_vm7, %v5091_v19, %v1217_v48  ;;  %v1248_v47 = vrot.slane %v6431_v59, 5  ;;  %v7191_v49 = vsel %vm707_vm0, %v7046_v7, 0  ;;  %v5417_v7 = vld [vmem:[%s6534_s25 + $0x1c] sm:$0xf] }
  0xa1   : > { %v7158_v53 = vsel %vm6786_vm7, %v1226_v55, %v1227_v37  ;;  %v7195_v34 = vsel %vm6786_vm7, %v5093_v1, %v1231_v4  ;;  %v6381_v37 = vld [vmem:[%s6534_s25 + $0x3c] sm:$0xff]   ;;  %v5096_v35 = vrot.slane %v1169_v8, 9  ;;  %v6432_v55 = vld [vmem:[%s6534_s25 + $0x44] sm:$0x1]  ;;  %v3587_v8 = vshll.u32 %v5416_v24, 16 }
  0xa2   : > { %v7169_v23 = vsel %vm6786_vm7, %v1219_v57, %v1220_v50  ;;  %v1171_v50 = vld [vmem:[%s6534_s25 + $0x54] sm:$0xe]  ;;  %v1255_v15 = vrot.slane %v6432_v55, 5  ;;  %v5420_v39 = vld [vmem:[%s6534_s25 + $0x28] sm:$0xf] }
  0xa3   : > { %v6439_v5 = vld [vmem:[%s6534_s25 + $0x70] sm:$0xf] }
  0xa4   : > { %5980 = vmatmul.mubr.msk.bf16.gmra.mrb[24].mxu0 %vm658_vm3, %v5332_v2  ;;  %v1167_v2 = vld [vmem:[%s6534_s25 + $0x24] sm:$0xe]  ;;  %v1280_v30 = vrot.slane %v6439_v5, 5 }
  0xa5   : > { %5828 = vmatmul.mubr.msk.bf16.gmra.mrb[8].mxu1 %vm658_vm3, %v5064_v10  ;;  %5983 = vmatprep.mubr.msk.bf16.mxu0 %vm658_vm3, %v5333_v11  ;;  %v1245_v10 = vrot.slane %v7072_v26, 5  ;;  %v6379_v11 = vld [vmem:[%s6534_s25 + $0x30] sm:$0xff]   ;;  %v5094_v21 = vrot.slane %v1167_v2, 9 }
  0xa6   : > { %5831 = vmatprep.mubr.msk.bf16.mxu1 %vm658_vm3, %v5065_v18  ;;  %v7165_v26 = vld [vmem:[%s8339_s1 + $0x10] sm:$0x3]  ;;  %v1233_v18 = vrot.slane %v1231_v4, 4  ;;  %v1282_v48 = vrot.slane %v1280_v30, 4 }
  0xa7   : > { %v1247_v45 = vrot.slane %v1245_v10, 4  ;;  %v7202_v19 = vsel %vm6786_vm7, %v5094_v21, %v1238_v12  ;;  %v3597_v21 = vshrl.u32 %v5417_v7, 16 }
  0xa8   : > { %v7211_v4 = vsel %vm6786_vm7, %v1233_v18, %v1234_v22  ;;  %v3584_v22 = vshrl.u32 %v5416_v24, 16  ;;  %v3593_v18 = vshll.u32 %v5417_v7, 16  ;;  %v5419_v24 = vld [vmem:[%s6534_s25 + $0x24] sm:$0xf] }
  0xa9   : > { %v7224_v1 = vsel %vm6786_vm7, %v1247_v45, %v1248_v47 }
  0xaa   : > { %v3586_v43 = vrot.slane %v3584_v22, 4  ;;  %v7266_v7 = vrot.slane %v3593_v18, 5  ;;  %v3611_v22 = vshll.u32 %v5419_v24, 16  ;;  %v3621_v18 = vshrl.u32 %v5420_v39, 16 }
  0xac   : > { %5984 = vmatmul.mubr.msk.bf16.gmra.mrb[28].mxu0 %vm658_vm3, %v5334_v40  ;;  %v6430_v40 = vld [vmem:[%s6534_s25 + $0x2c] sm:$0x1]  ;;  %v3613_v27 = vrot.slane %v3611_v22, 5 }
  0xad   : > { %5832 = vmatmul.mubr.msk.bf16.gmra.mrb[12].mxu1 %vm658_vm3, %v5066_v60  ;;  %5989 = vmatprep.mubr.msk.bf16.mxu0 %vm658_vm3, %v6375_v20  ;;  %v1241_v28 = vrot.slane %v6430_v40, 5  ;;  %v1252_v60 = vrot.slane %v7092_v17, 5  ;;  %v6435_v40 = vld [vmem:[%s6534_s25 + $0x50] sm:$0x1]  ;;  %v6440_v17 = vld [vmem:[%s6534_s25 + $0x74] sm:$0x1] }
  0xae   : > { %5835 = vmatprep.mubr.msk.bf16.mxu1 %vm658_vm3, %v5067_v44  ;;  %v5095_v44 = vrot.slane %v1168_v41, 9  ;;  %v5098_v41 = vrot.slane %v1171_v50, 9  ;;  %v1172_v50 = vld [vmem:[%s6534_s25 + $0x60] sm:$0xe]  ;;  %v5421_v20 = vld [vmem:[%s6534_s25 + $0x2c] sm:$0x1] }
  0xaf   : > { %v1254_v12 = vrot.slane %v1252_v60, 4  ;;  %v7237_v45 = vsel %vm6786_vm7, %v5096_v35, %v1252_v60  ;;  %v6436_v35 = vld [vmem:[%s6534_s25 + $0x5c] sm:$0x1] }
  0xb0   : > { %v7220_v2 = vsel %vm6786_vm7, %v5095_v44, %v1245_v10  ;;  %v1269_v55 = vrot.slane %v6436_v35, 5  ;;  %v1173_v35 = vld [vmem:[%s6534_s25 + $0x6c] sm:$0xe] }
  0xb1   : > { %v7241_v59 = vsel %vm6786_vm7, %v1254_v12, %v1255_v15  ;;  %v6437_v15 = vld [vmem:[%s6534_s25 + $0x64] sm:$0xf]  ;;  %v3599_v12 = vrot.slane %v3597_v21, 4  ;;  %v5100_v5 = vrot.slane %v1173_v35, 9 }
  0xb2   : > { %v6387_v21 = vld [vmem:[%s6534_s25 + $0x60] sm:$0xff]  }
  0xb4   : > { %5990 = vmatmul.mubr.msk.bf16.vlgmr.msra.gmra.mrb[0].mxu0 %vm658_vm3, %v6377_v62  ;;  %v6433_v62 = vld [vmem:[%s6534_s25 + $0x4c] sm:$0xf] }
  0xb5   : > { %5836 = vmatmul.mubr.msk.bf16.gmra.mrb[16].mxu1 %vm658_vm3, %v5068_v58  ;;  %6022 = vmatpush3.bf16.msra.mxu0 %v4066_v54  ;;  %v1259_v57 = vrot.slane %v6433_v62, 5  ;;  %v7215_v58 = vsel %vm6786_vm7, %v1240_v25, %v1241_v28  ;;  %v5097_v54 = vrot.slane %v1170_v31, 9  ;;  %v1262_v28 = vrot.slane %v6435_v40, 5 }
  0xb6   : > { %5839 = vmatprep.mubr.msk.bf16.mxu1 %vm658_vm3, %v5069_v61  ;;  %5993 = vmatprep.mubr.msk.bf16.mxu0 %vm658_vm3, %v6379_v11  ;;  %v6383_v61 = vld [vmem:[%s6534_s25 + $0x48] sm:$0xff]   ;;  %v6434_v11 = vld [vmem:[%s6534_s25 + $0x58] sm:$0xf]  ;;  %v1273_v62 = vrot.slane %v6437_v15, 5  ;;  %v5423_v15 = vld [vmem:[%s6534_s25 + $0x34] sm:$0xf] }
  0xb7   : > { %6356 = vmatprep.subr.msk.bf16.mxu0 %vm707_vm0, %v7165_v26  ;;  %v1266_v16 = vrot.slane %v6434_v11, 5  ;;  %v1261_v31 = vrot.slane %v1259_v57, 4  ;;  %v7245_v47 = vsel %vm6786_vm7, %v5097_v54, %v1259_v57  ;;  %v5418_v57 = vld [vmem:[%s6534_s25 + $0x20] sm:$0x1]  ;;  %v5422_v54 = vld [vmem:[%s6534_s25 + $0x30] sm:$0xf] }
  0xb8   : > { %v5099_v11 = vrot.slane %v1172_v50, 9  ;;  %v3635_v50 = vshll.u32 %v5422_v54, 16  ;;  %v3603_v25 = vshll.u32 %v5418_v57, 16  ;;  %v3641_v36 = vshll.u32 %v5423_v15, 16 }
  0xb9   : > { %v7256_v60 = vsel %vm6786_vm7, %v5098_v41, %v1266_v16  ;;  %v7272_v41 = vsel %vm6786_vm7, %v1261_v31, %v1262_v28  ;;  %v1275_v31 = vrot.slane %v1273_v62, 4  ;;  %v3632_v28 = vshrl.u32 %v5422_v54, 16 }
  0xba   : > { %v7314_v35 = vrot.slane %v3641_v36, 5 }
  0xbc   : > { %5994 = vmatmul.mubr.msk.bf16.gmra.mrb[4].mxu0 %vm658_vm3, %v6381_v37  ;;  %v1268_v37 = vrot.slane %v1266_v16, 4  ;;  %v6438_v16 = vld [vmem:[%s6534_s25 + $0x68] sm:$0x1] }
  0xbd   : > { %5840 = vmatmul.mubr.msk.bf16.gmra.mrb[20].mxu1 %vm658_vm3, %v5070_v6  ;;  %5997 = vmatprep.mubr.msk.bf16.mxu0 %vm658_vm3, %v6383_v61  ;;  %v3589_v6 = vrot.slane %v3587_v8, 5  ;;  %v6385_v61 = vld [vmem:[%s6534_s25 + $0x54] sm:$0xff]   ;;  %v1276_v40 = vrot.slane %v6438_v16, 5  ;;  %v3617_v8 = vshll.u32 %v5420_v39, 16  ;;  %v3600_v16 = vor.u32 %v3599_v12, %v7266_v7 }
  0xbe   : > { %5843 = vmatprep.mubr.msk.bf16.mxu1 %vm658_vm3, %v5071_v9  ;;  %v3608_v9 = vshrl.u32 %v5419_v24, 16  ;;  %v7281_v44 = vsel %vm6786_vm7, %v1268_v37, %v1269_v55  ;;  %v1283_v24 = vrot.slane %v6440_v17, 5  ;;  %v3645_v39 = vshrl.u32 %v5423_v15, 16 }
  0xbf   : > { %v3590_v10 = vor.u32 %v3589_v6, %v3586_v43  ;;  %v7287_v37 = vrot.slane %v3617_v8, 5  ;;  %v3623_v55 = vrot.slane %v3621_v18, 4  ;;  %v8363_v43 = vcombine.low %v6891_v52, %v6902_v46  ;;  %v6441_v8 = vld [vmem:[%s6534_s25 + $0x7c] sm:$0xf]  ;;  %v7323_v18 = vld [vmem:[%s6534_s25 + $0x38] sm:$0x1] }
  0xc0   : > { %v3610_v38 = vrot.slane %v3608_v9, 4  ;;  %v7296_v17 = vsel %vm6786_vm7, %v5099_v11, %v1273_v62  ;;  %v7300_v57 = vsel %vm6786_vm7, %v1275_v31, %v1276_v40  ;;  %v3634_v6 = vrot.slane %v3632_v28, 4  ;;  %8365 = vst [vmem:[#allocation6_spill] sm:$0xff] %v7323_v18 }
  0xc1   : > { %v3637_v12 = vrot.slane %v3635_v50, 5  ;;  %v8364_v52 = vcombine.low %v6923_v33, %v6928_v56  ;;  %v3591_v46 = vrot.slane %v3590_v10, 4  ;;  %v3601_v54 = vrot.slane %v3600_v16, 4  ;;  %v6389_v33 = vld [vmem:[%s6534_s25 + $0x6c] sm:$0xff]   ;;  %v1175_v16 = vld [vmem:[%s6534_s25 + $0x84] sm:$0xe] }
  0xc2   : > { %v3627_v62 = vshll.u32 %v5421_v20, 16  ;;  %v7308_v11 = vsel %vm6786_vm7, %v5100_v5, %v1280_v30  ;;  %v7312_v40 = vsel %vm6786_vm7, %v1282_v48, %v1283_v24  ;;  %v3647_v9 = vrot.slane %v3645_v39, 4  ;;  %v6390_v48 = vld [vmem:[%s6534_s25 + $0x78] sm:$0xff]  }
  0xc3   : > { %v3614_v10 = vor.u32 %v3613_v27, %v3610_v38  ;;  %v3624_v20 = vor.u32 %v3623_v55, %v7287_v37  ;;  %v1287_v30 = vrot.slane %v6441_v8, 5  ;;  %v3638_v38 = vor.u32 %v3637_v12, %v3634_v6  ;;  %v5425_v5 = vld [vmem:[%s6534_s25 + $0x3c] sm:$0xf] }
  0xc4   : > { %5998 = vmatmul.mubr.msk.bf16.gmra.mrb[8].mxu0 %vm658_vm3, %v6385_v61  ;;  %v3605_v61 = vrot.slane %v3603_v25, 5  ;;  %v1174_v25 = vld [vmem:[%s6534_s25 + $0x78] sm:$0xe]  ;;  %v7339_v50 = vrot.slane %v3627_v62, 5  ;;  %v3648_v39 = vor.u32 %v3647_v9, %v7314_v35  ;;  %v3651_v55 = vshll.u32 %v7323_v18, 16 }
  0xc5   : > { %5844 = vmatmul.mubr.msk.bf16.gmra.mrb[24].mxu1 %vm658_vm3, %v8363_v43  ;;  %6001 = vmatprep.mubr.msk.bf16.mxu0 %vm658_vm3, %v6387_v21  ;;  %v3596_v21 = vsel %vm6560_vm4, %v3591_v46, %v7266_v7  ;;  %v5101_v24 = vrot.slane %v1174_v25, 9  ;;  %v6442_v43 = vld [vmem:[%s6534_s25 + $0x88] sm:$0xf]  ;;  %v7347_v7 = vld [vmem:[%s6534_s25 + $0x40] sm:$0xf]  ;;  %v3615_v12 = vrot.slane %v3614_v10, 4  ;;  %v8367_v62 = vcombine.low %v6943_v14, %v6952_v42 }
  0xc6   : > { %5847 = vmatprep.mubr.msk.bf16.mxu1 %vm658_vm3, %v8364_v52  ;;  %v3606_v31 = vsel %vm6560_vm4, %v3601_v54, %v3605_v61  ;;  %v1294_v6 = vrot.slane %v6442_v43, 5  ;;  %8366 = vst [vmem:[#allocation7_spill] sm:$0xff] %v7347_v7  ;;  %v3625_v52 = vrot.slane %v3624_v20, 4  ;;  %v1289_v46 = vrot.slane %v1287_v30, 4  ;;  %v6443_v54 = vld [vmem:[%s6534_s25 + $0x80] sm:$0x1] }
  0xc7   : > { %v1290_v61 = vrot.slane %v6443_v54, 5  ;;  %v3639_v9 = vrot.slane %v3638_v38, 4  ;;  %v5102_v25 = vrot.slane %v1175_v16, 9  ;;  %v3656_v8 = vshrl.u32 %v5425_v5, 16  ;;  %v6391_v10 = vld [vmem:[%s6534_s25 + $0x84] sm:$0xff]  }
  0xc8   : > { %v3659_v43 = vshll.u32 %v5425_v5, 16  ;;  %v7361_v20 = vcombine.low %v3596_v21, %v3606_v31  ;;  %v7365_v14 = vsel %vm707_vm0, %v7165_v26, 0  ;;  %v3669_v38 = vshrl.u32 %v7347_v7, 16  ;;  %v6392_v21 = vld [vmem:[%s6534_s25 + $0x90] sm:$0xff]   ;;  %v6448_v18 = vld [vmem:[%s6534_s25 + $0xa0] sm:$0xf] }
  0xc9   : > { %v3649_v16 = vrot.slane %v3648_v39, 4  ;;  %v3653_v5 = vrot.slane %v3651_v55, 5  ;;  %v1296_v54 = vrot.slane %v1294_v6, 4  ;;  %v3620_v31 = vsel %vm6560_vm4, %v3615_v12, %v7287_v37 }
  0xca   : > { %v3630_v26 = vsel %vm6560_vm4, %v3625_v52, %v7339_v50  ;;  %v7380_v39 = vsel %vm6786_vm7, %v5101_v24, %v1287_v30  ;;  %v7384_v55 = vsel %vm6786_vm7, %v1289_v46, %v1290_v61  ;;  %v3644_v37 = vsel %vm6560_vm4, %v3639_v9, %v7314_v35  ;;  %v5431_v30 = vld [vmem:[%s6534_s25 + $0x54] sm:$0xf]  ;;  %v7401_v24 = vld [vmem:[%s6534_s25 + $0x58] sm:$0xf]  ;;  %v7406_v61 = vld [vmem:[%s6534_s25 + $0x90] sm:$0xe] }
  0xcb   : > { %v7397_v12 = vsel %vm6786_vm7, %v5102_v25, %v1294_v6  ;;  %v3658_v50 = vrot.slane %v3656_v8, 4  ;;  %v3661_v52 = vrot.slane %v3659_v43, 5  ;;  %v3671_v46 = vrot.slane %v3669_v38, 4 }
  0xcc   : > { %6002 = vmatmul.mubr.msk.bf16.gmra.mrb[12].mxu0 %vm658_vm3, %v6389_v33  ;;  %v8368_v33 = vcombine.low %v7150_v0, %v7169_v23  ;;  %v6444_v0 = vld [vmem:[%s6534_s25 + $0x8c] sm:$0x1]  ;;  %v3654_v36 = vsel %vm6560_vm4, %v3649_v16, %v3653_v5  ;;  %v3704_v25 = vshrl.u32 %v5431_v30, 16  ;;  %v3707_v8 = vshll.u32 %v5431_v30, 16 }
  0xcd   : > { %5848 = vmatmul.mubr.msk.bf16.gmra.mrb[28].mxu1 %vm658_vm3, %v8367_v62  ;;  %6005 = vmatprep.mubr.msk.bf16.mxu0 %vm658_vm3, %v6390_v48  ;;  %v3665_v48 = vshll.u32 %v7347_v7, 16  ;;  %v1297_v23 = vrot.slane %v6444_v0, 5  ;;  %v5428_v62 = vld [vmem:[%s6534_s25 + $0x48] sm:$0xf]  ;;  %v7390_v0 = vld [vmem:[%s6534_s25 + $0x4c] sm:$0xf]  ;;  %v8370_v38 = vcombine.low %v7154_v29, %v7158_v53  ;;  %v7424_v16 = vcombine.low %v3620_v31, %v3630_v26 }
  0xce   : > { %5853 = vmatprep.mubr.msk.bf16.mxu1 %vm658_vm3, %v8368_v33  ;;  %v7387_v33 = vld [vmem:[%s6534_s25 + $0x44] sm:$0x1]  ;;  %v3680_v27 = vshrl.u32 %v5428_v62, 16  ;;  %v3683_v15 = vshll.u32 %v5428_v62, 16  ;;  %v3689_v6 = vshll.u32 %v7390_v0, 16  ;;  %v3693_v9 = vshrl.u32 %v7390_v0, 16 }
  0xcf   : > { %8369 = vst [vmem:[#allocation8_spill] sm:$0xff] %v7387_v33  ;;  %v7403_v28 = vrot.slane %v3665_v48, 5  ;;  %v7412_v35 = vsel %vm6786_vm7, %v1296_v54, %v1297_v23  ;;  %v3713_v43 = vshll.u32 %v7401_v24, 16  ;;  %v3717_v48 = vshrl.u32 %v7401_v24, 16  ;;  %v5434_v31 = vld [vmem:[%s6534_s25 + $0x60] sm:$0xf] }
  0xd0   : > { %v3675_v5 = vshll.u32 %v7387_v33, 16  ;;  %v5103_v54 = vrot.slane %v7406_v61, 9  ;;  %v8371_v23 = vcombine.low %v7195_v34, %v7211_v4  ;;  %v7435_v29 = vcombine.low %v3644_v37, %v3654_v36  ;;  %v6393_v26 = vld [vmem:[%s6534_s25 + $0x9c] sm:$0xff]   ;;  %v6394_v30 = vld [vmem:[%s6534_s25 + $0xa8] sm:$0xff]  }
  0xd1   : > { %v3662_v53 = vor.u32 %v3661_v52, %v3658_v50  ;;  %v3682_v62 = vrot.slane %v3680_v27, 4  ;;  %v7446_v34 = vrot.slane %v3689_v6, 5  ;;  %v3695_v4 = vrot.slane %v3693_v9, 4  ;;  %v6445_v36 = vld [vmem:[%s8339_s1 + $0x8] sm:$0x3] }
  0xd2   : > { %v3706_v27 = vrot.slane %v3704_v25, 4  ;;  %v3709_v37 = vrot.slane %v3707_v8, 5  ;;  %v7455_v50 = vrot.slane %v3713_v43, 5  ;;  %v3719_v52 = vrot.slane %v3717_v48, 4  ;;  %v6446_v6 = vld [vmem:[%s6534_s25 + $0x94] sm:$0xf] }
  0xd3   : > { %v7461_v9 = vld [vmem:[%s6534_s25 + $0x64] sm:$0xf]  ;;  %v3728_v61 = vshrl.u32 %v5434_v31, 16  ;;  %v7463_v22 = vrot.slane %v3662_v53, 4  ;;  %v1308_v25 = vrot.slane %v6448_v18, 5  ;;  %v3696_v43 = vor.u32 %v3695_v4, %v7446_v34 }
  0xd4   : > { %6006 = vmatmul.mubr.msk.bf16.gmra.mrb[16].mxu0 %vm658_vm3, %v6391_v10  ;;  %8372 = vst [vmem:[#allocation9_spill] sm:$0xff] %v7461_v9  ;;  %v3731_v10 = vshll.u32 %v5434_v31, 16  ;;  %v3710_v31 = vor.u32 %v3709_v37, %v3706_v27  ;;  %v3720_v53 = vor.u32 %v3719_v52, %v7455_v50  ;;  %v8373_v18 = vcombine.low %v7202_v19, %v7215_v58  ;;  %v6395_v37 = vld [vmem:[%s6534_s25 + $0xb4] sm:$0xff]  }
  0xd5   : > { %5854 = vmatmul.mubr.msk.bf16.vlgmr.msra.gmra.mrb[0].mxu1 %vm658_vm3, %v8370_v38  ;;  %6009 = vmatprep.mubr.msk.bf16.mxu0 %vm658_vm3, %v6392_v21  ;;  %v3685_v21 = vrot.slane %v3683_v15, 5  ;;  %v7444_v38 = vld [vmem:[%s6534_s25 + $0x50] sm:$0x1]  ;;  %v7453_v15 = vld [vmem:[%s6534_s25 + $0x5c] sm:$0x1]  ;;  %v8374_v27 = vcombine.low %v7220_v2, %v7224_v1  ;;  %v1310_v52 = vrot.slane %v1308_v25, 4 }
  0xd6   : > { %5886 = vmatpush3.bf16.msra.mxu1 %v7191_v49  ;;  %5857 = vmatprep.mubr.msk.bf16.mxu1 %vm658_vm3, %v8371_v23  ;;  %v3672_v49 = vor.u32 %v3671_v46, %v7403_v28  ;;  %v7457_v46 = vrot.slane %v3675_v5, 5  ;;  %v1301_v23 = vrot.slane %v6446_v6, 5  ;;  %v3699_v48 = vshll.u32 %v7444_v38, 16  ;;  %v1177_v5 = vld [vmem:[%s6534_s25 + $0x9c] sm:$0xe] }
  0xd7   : > { %6352 = vmatprep.subr.msk.bf16.mxu1 %vm707_vm0, %v6445_v36  ;;  %v6447_v36 = vld [vmem:[%s6534_s25 + $0x98] sm:$0x1]  ;;  %v3686_v7 = vor.u32 %v3685_v21, %v3682_v62  ;;  %v3723_v6 = vshll.u32 %v7453_v15, 16  ;;  %v3741_v62 = vshrl.u32 %v7461_v9, 16  ;;  %v3733_v4 = vrot.slane %v3731_v10, 5 }
  0xd8   : > { %v1304_v33 = vrot.slane %v6447_v36, 5  ;;  %v3673_v8 = vrot.slane %v3672_v49, 4  ;;  %v3737_v36 = vshll.u32 %v7461_v9, 16  ;;  %v7482_v21 = vsel %vm6786_vm7, %v5103_v54, %v1301_v23  ;;  %v7493_v2 = vld [vmem:[%s6534_s25 + $0x68] sm:$0x1] }
  0xd9   : > { %v3730_v49 = vrot.slane %v3728_v61, 4  ;;  %v3687_v19 = vrot.slane %v3686_v7, 4  ;;  %v5104_v58 = vrot.slane %v1177_v5, 9  ;;  %v3697_v3 = vrot.slane %v3696_v43, 4  ;;  %8375 = vst [vmem:[#allocation10_spill] sm:$0xff] %v7493_v2  ;;  %v6396_v5 = vld [vmem:[%s6534_s25 + $0xc0] sm:$0xff]  }
  0xda   : > { %v3701_v54 = vrot.slane %v3699_v48, 5  ;;  %v3725_v63 = vrot.slane %v3723_v6, 5  ;;  %v1315_v61 = vrot.slane %v6928_v56, 5  ;;  %v3711_v10 = vrot.slane %v3710_v31, 4  ;;  %v1179_v31 = vld [vmem:[%s6534_s25 + $0xb4] sm:$0xe] }
  0xdb   : > { %v3721_v51 = vrot.slane %v3720_v53, 4  ;;  %v7495_v1 = vrot.slane %v3737_v36, 5  ;;  %v3743_v7 = vrot.slane %v3741_v62, 4  ;;  %v3668_v43 = vsel %vm6560_vm4, %v7463_v22, %v7403_v28  ;;  %v6450_v62 = vld [vmem:[%s6534_s25 + $0xb0] sm:$0x1] }
  0xdc   : > { %6010 = vmatmul.mubr.msk.bf16.gmra.mrb[20].mxu0 %vm658_vm3, %v6393_v26  ;;  %v1303_v26 = vrot.slane %v1301_v23, 4  ;;  %v1178_v23 = vld [vmem:[%s6534_s25 + $0xa8] sm:$0xe]  ;;  %v3678_v48 = vsel %vm6560_vm4, %v3673_v8, %v7457_v46  ;;  %v3734_v6 = vor.u32 %v3733_v4, %v3730_v49  ;;  %v3692_v53 = vsel %vm6560_vm4, %v3687_v19, %v7446_v34  ;;  %v5437_v46 = vld [vmem:[%s6534_s25 + $0x6c] sm:$0xf] }
  0xdd   : > { %5858 = vmatmul.mubr.msk.bf16.gmra.mrb[4].mxu1 %vm658_vm3, %v8373_v18  ;;  %6013 = vmatprep.mubr.msk.bf16.mxu0 %vm658_vm3, %v6394_v30  ;;  %v6449_v18 = vld [vmem:[%s6534_s25 + $0xa4] sm:$0x1]  ;;  %v7515_v36 = vsel %vm6786_vm7, %v5104_v58, %v1308_v25  ;;  %v5105_v28 = vrot.slane %v1178_v23, 9  ;;  %v1317_v8 = vrot.slane %v1315_v61, 4  ;;  %v3747_v49 = vshll.u32 %v7493_v2, 16 }
  0xde   : > { %5861 = vmatprep.mubr.msk.bf16.mxu1 %vm658_vm3, %v8374_v27  ;;  %v1311_v30 = vrot.slane %v6449_v18, 5  ;;  %v7507_v56 = vsel %vm6786_vm7, %v1303_v26, %v1304_v33  ;;  %v3702_v33 = vsel %vm6560_vm4, %v3697_v3, %v3701_v54  ;;  %v1318_v26 = vrot.slane %v6450_v62, 5  ;;  %v5440_v18 = vld [vmem:[%s6534_s25 + $0x78] sm:$0xf]  ;;  %v7570_v54 = vld [vmem:[%s6534_s25 + $0xbc] sm:$0x1] }
  0xdf   : > { %v3716_v34 = vsel %vm6560_vm4, %v3711_v10, %v7455_v50  ;;  %v3726_v25 = vsel %vm6560_vm4, %v3721_v51, %v3725_v63  ;;  %v3744_v4 = vor.u32 %v3743_v7, %v7495_v1  ;;  %v5106_v27 = vrot.slane %v1179_v31, 9  ;;  %v7544_v51 = vld [vmem:[%s6534_s25 + $0x70] sm:$0xf]  ;;  %v7574_v10 = vld [vmem:[%s6534_s25 + $0x7c] sm:$0xf] }
  0xe0   : > { %v7519_v22 = vsel %vm6786_vm7, %v1310_v52, %v1311_v30  ;;  %v8377_v3 = vcombine.low %v7237_v45, %v7241_v59  ;;  %v7540_v19 = vrot.slane %v3734_v6, 4  ;;  %v1322_v50 = vrot.slane %v6952_v42, 5  ;;  %8378 = vst [vmem:[#allocation12_spill] sm:$0xff] %v7544_v51  ;;  %8380 = vst [vmem:[#allocation13_spill] sm:$0xff] %v7574_v10  ;;  %v5443_v7 = vld [vmem:[%s6534_s25 + $0x84] sm:$0xf] }
  0xe1   : > { %8376 = vst [vmem:[#allocation11_spill] sm:$0xff] %v7519_v22  ;;  %v3752_v63 = vshrl.u32 %v5437_v46, 16  ;;  %v8379_v45 = vcombine.low %v7245_v47, %v7272_v41  ;;  %v7552_v58 = vcombine.low %v3692_v53, %v3702_v33  ;;  %v7558_v42 = vsel %vm6786_vm7, %v5105_v28, %v1315_v61  ;;  %v6397_v61 = vld [vmem:[%s6534_s25 + $0xcc] sm:$0xff]   ;;  %v7586_v31 = vld [vmem:[%s6534_s25 + $0x88] sm:$0xf] }
  0xe2   : > { %v7561_v30 = vcombine.low %v3716_v34, %v3726_v25  ;;  %v7565_v47 = vsel %vm6786_vm7, %v1317_v8, %v1318_v26  ;;  %v7567_v41 = vrot.slane %v3747_v49, 5  ;;  %v3761_v6 = vshll.u32 %v7544_v51, 16  ;;  %8381 = vst [vmem:[#allocation14_spill] sm:$0xff] %v7586_v31  ;;  %v5446_v62 = vld [vmem:[%s6534_s25 + $0x90] sm:$0xf] }
  0xe3   : > { %v7592_v28 = vrot.slane %v1322_v50, 4  ;;  %v7594_v33 = vrot.slane %v3752_v63, 4  ;;  %v3765_v8 = vshrl.u32 %v7544_v51, 16  ;;  %v3776_v26 = vshrl.u32 %v5440_v18, 16  ;;  %v7601_v25 = vld [vmem:[%s6534_s25 + $0x94] sm:$0xf] }
  0xe4   : > { %6014 = vmatmul.mubr.msk.bf16.gmra.mrb[24].mxu0 %vm658_vm3, %v6395_v37  ;;  %v7538_v37 = vcombine.low %v3668_v43, %v3678_v48  ;;  %v7582_v43 = vsel %vm6786_vm7, %v5106_v27, %v1322_v50  ;;  %v3755_v48 = vshll.u32 %v5437_v46, 16  ;;  %v3779_v49 = vshll.u32 %v5440_v18, 16  ;;  %8382 = vst [vmem:[#allocation15_spill] sm:$0xff] %v7601_v25  ;;  %v7639_v2 = vld [vmem:[%s6534_s25 + $0x8c] sm:$0x1] }
  0xe5   : > { %5862 = vmatmul.mubr.msk.bf16.gmra.mrb[8].mxu1 %vm658_vm3, %v8377_v3  ;;  %6017 = vmatprep.mubr.msk.bf16.mxu0 %vm658_vm3, %v6396_v5  ;;  %v7578_v5 = vrot.slane %v3744_v4, 4  ;;  %v3785_v46 = vshll.u32 %v7574_v10, 16  ;;  %v3789_v34 = vshrl.u32 %v7574_v10, 16  ;;  %v3800_v4 = vshrl.u32 %v5443_v7, 16 }
  0xe6   : > { %5865 = vmatprep.mubr.msk.bf16.mxu1 %vm658_vm3, %v8379_v45  ;;  %v3803_v27 = vshll.u32 %v5443_v7, 16  ;;  %v3809_v3 = vshll.u32 %v7586_v31, 16  ;;  %v3813_v50 = vshrl.u32 %v7586_v31, 16  ;;  %v7611_v45 = vld [vmem:[%s6534_s25 + $0x74] sm:$0x1]  ;;  %v3757_v18 = vrot.slane %v3755_v48, 5 }
  0xe7   : > { %v3824_v52 = vshrl.u32 %v5446_v62, 16  ;;  %v3827_v53 = vshll.u32 %v5446_v62, 16  ;;  %v8383_v7 = vcombine.low %v7256_v60, %v7281_v44  ;;  %v3767_v59 = vrot.slane %v3765_v8, 4  ;;  %v5449_v48 = vld [vmem:[%s6534_s25 + $0x9c] sm:$0xf] }
  0xe8   : > { %v3833_v63 = vshll.u32 %v7601_v25, 16  ;;  %v3837_v23 = vshrl.u32 %v7601_v25, 16  ;;  %v8384_v62 = vcombine.low %v7296_v17, %v7300_v57  ;;  %v7629_v44 = vld [vmem:[%s6534_s25 + $0x80] sm:$0x1]  ;;  %v3778_v60 = vrot.slane %v3776_v26, 4 }
  0xe9   : > { %8385 = vst [vmem:[#allocation16_spill] sm:$0xff] %v7629_v44  ;;  %v3802_v31 = vrot.slane %v3800_v4, 4  ;;  %v3805_v8 = vrot.slane %v3803_v27, 5  ;;  %v7633_v10 = vrot.slane %v3809_v3, 5  ;;  %v3815_v51 = vrot.slane %v3813_v50, 4 }
  0xea   : > { %v7636_v25 = vld [vmem:[%s6534_s25 + $0xa0] sm:$0xf]  ;;  %v3826_v17 = vrot.slane %v3824_v52, 4  ;;  %v3829_v57 = vrot.slane %v3827_v53, 5  ;;  %v3851_v9 = vshll.u32 %v5449_v48, 16  ;;  %v3758_v26 = vor.u32 %v3757_v18, %v7594_v33 }
  0xeb   : > { %v3795_v27 = vshll.u32 %v7629_v44, 16  ;;  %v7648_v3 = vld [vmem:[%s6534_s25 + $0x98] sm:$0x1]  ;;  %v3857_v50 = vshll.u32 %v7636_v25, 16  ;;  %v3861_v52 = vshrl.u32 %v7636_v25, 16  ;;  %v3806_v22 = vor.u32 %v3805_v8, %v3802_v31 }
  0xec   : > { %6018 = vmatmul.mubr.msk.bf16.gmra.mrb[28].mxu0 %vm658_vm3, %v6397_v61  ;;  %v7619_v61 = vrot.slane %v3761_v6, 5  ;;  %v3791_v6 = vrot.slane %v3789_v34, 4  ;;  %v3839_v34 = vrot.slane %v3837_v23, 4  ;;  %v3819_v33 = vshll.u32 %v7639_v2, 16 }
  0xed   : > { %5866 = vmatmul.mubr.msk.bf16.gmra.mrb[12].mxu1 %vm658_vm3, %v8383_v7  ;;  %6023 = vmatprep.mubr.msk.bf16.mxu0 %vm658_vm3, %v7361_v20  ;;  %v3781_v7 = vrot.slane %v3779_v49, 5  ;;  %v7631_v20 = vrot.slane %v3785_v46, 5  ;;  %v3771_v49 = vshll.u32 %v7611_v45, 16  ;;  %v7643_v46 = vrot.slane %v3833_v63, 5 }
  0xee   : > { %5869 = vmatprep.mubr.msk.bf16.mxu1 %vm658_vm3, %v8384_v62  ;;  %v3848_v62 = vshrl.u32 %v5449_v48, 16  ;;  %v3768_v4 = vor.u32 %v3767_v59, %v7619_v61  ;;  %v3816_v23 = vor.u32 %v3815_v51, %v7633_v10  ;;  %v3830_v59 = vor.u32 %v3829_v57, %v3826_v17  ;;  %v7681_v57 = vld [vmem:[%s6534_s25 + $0xa4] sm:$0x1] }
  0xef   : > { %v3782_v53 = vor.u32 %v3781_v7, %v3778_v60  ;;  %v3792_v48 = vor.u32 %v3791_v6, %v7631_v20  ;;  %v3853_v18 = vrot.slane %v3851_v9, 5  ;;  %v8386_v44 = vcombine.low %v7308_v11, %v7312_v40 }
  0xf0   : > { %v3850_v63 = vrot.slane %v3848_v62, 4  ;;  %v8387_v31 = vrot.slane %v7570_v54, 5  ;;  %v3773_v51 = vrot.slane %v3771_v49, 5  ;;  %v3840_v60 = vor.u32 %v3839_v34, %v7643_v46  ;;  %v7684_v34 = vld [vmem:[%s6534_s25 + $0xac] sm:$0xf] }
  0xf1   : > { %v3843_v9 = vshll.u32 %v7648_v3, 16  ;;  %v8388_v11 = vcombine.low %v7380_v39, %v7384_v55  ;;  %v3759_v40 = vrot.slane %v3758_v26, 4  ;;  %v7677_v54 = vrot.slane %v3857_v50, 5 }
  0xf2   : > { %v3783_v7 = vrot.slane %v3782_v53, 4  ;;  %v3793_v6 = vrot.slane %v3792_v48, 4  ;;  %v3797_v8 = vrot.slane %v3795_v27, 5  ;;  %v3821_v17 = vrot.slane %v3819_v33, 5  ;;  %v7694_v48 = vld [vmem:[%s6534_s25 + $0xb0] sm:$0x1] }
  0xf3   : > { %v3807_v39 = vrot.slane %v3806_v22, 4  ;;  %v3817_v55 = vrot.slane %v3816_v23, 4  ;;  %v3831_v62 = vrot.slane %v3830_v59, 4  ;;  %v3854_v49 = vor.u32 %v3853_v18, %v3850_v63 }
  0xf4   : > { %6024 = vmatmul.mubr.msk.bf16.vlgmr.msra.gmra.mrb[0].mxu0 %vm658_vm3, %v7424_v16  ;;  %v7667_v16 = vsel %vm6786_vm7, %v7592_v28, %v8387_v31  ;;  %v3863_v28 = vrot.slane %v3861_v52, 4  ;;  %v3845_v26 = vrot.slane %v3843_v9, 5  ;;  %v3764_v52 = vsel %vm6560_vm4, %v3759_v40, %v7619_v61 }
  0xf5   : > { %5870 = vmatmul.mubr.msk.bf16.gmra.mrb[16].mxu1 %vm658_vm3, %v8386_v44  ;;  %6056 = vmatpush3.bf16.msra.mxu0 %v7365_v14  ;;  %v3769_v14 = vrot.slane %v3768_v4, 4  ;;  %v5452_v44 = vld [vmem:[%s6534_s25 + $0xa8] sm:$0xf]  ;;  %v3867_v22 = vshll.u32 %v7681_v57, 16  ;;  %v3788_v33 = vsel %vm6560_vm4, %v3783_v7, %v7631_v20  ;;  %v3798_v23 = vsel %vm6560_vm4, %v3793_v6, %v3797_v8 }
  0xf6   : > { %5873 = vmatprep.mubr.msk.bf16.mxu1 %vm658_vm3, %v8388_v11  ;;  %6027 = vmatprep.mubr.msk.bf16.mxu0 %vm658_vm3, %v7435_v29  ;;  %v3841_v29 = vrot.slane %v3840_v60, 4  ;;  %v3872_v4 = vshrl.u32 %v5452_v44, 16  ;;  %v3875_v50 = vshll.u32 %v5452_v44, 16  ;;  %v3864_v53 = vor.u32 %v3863_v28, %v7677_v54  ;;  %v5501_v11 = vld [vmem:[%s6534_s25 + $0x48] sm:$0xe] }
  0xf7   : > { %v3774_v27 = vsel %vm6560_vm4, %v3769_v14, %v3773_v51  ;;  %v3881_v59 = vshll.u32 %v7684_v34, 16  ;;  %v3885_v61 = vshrl.u32 %v7684_v34, 16  ;;  %v3812_v63 = vsel %vm6560_vm4, %v3807_v39, %v7633_v10  ;;  %v7759_v39 = vld [vmem:[%s6534_s25 + $0xb8] sm:$0xf] }
  0xf8   : > { %v3822_v18 = vsel %vm6560_vm4, %v3817_v55, %v3821_v17  ;;  %v3836_v20 = vsel %vm6560_vm4, %v3831_v62, %v7643_v46  ;;  %v3855_v31 = vrot.slane %v3854_v49, 4  ;;  %v8389_v51 = vcombine.low %v7397_v12, %v7412_v35 }
  0xf9   : > { %v3874_v10 = vrot.slane %v3872_v4, 4  ;;  %v3877_v60 = vrot.slane %v3875_v50, 5  ;;  %v3891_v9 = vshll.u32 %v7694_v48, 16  ;;  %v8390_v46 = vcombine.low %v7482_v21, %v7507_v56  ;;  %v5455_v21 = vld [vmem:[%s6534_s25 + $0xb4] sm:$0xf] }
  0xfa   : > { %v5122_v12 = vcombine.low %v7558_v42, %v7565_v47  ;;  %v8391_v35 = vsel %vm6560_vm4, %v7578_v5, %v7567_v41  ;;  %v3865_v14 = vrot.slane %v3864_v53, 4  ;;  %v3869_v28 = vrot.slane %v3867_v22, 5  ;;  %v5503_v4 = vld [vmem:[%s6534_s25 + $0x60] sm:$0xe]  ;;  %v5504_v53 = vld [vmem:[%s6534_s25 + $0x6c] sm:$0xe] }
  0xfb   : > { %v5123_v56 = vcombine.low %v7582_v43, %v7667_v16  ;;  %v7742_v44 = vcombine.low %v3764_v52, %v3774_v27  ;;  %v7744_v42 = vrot.slane %v3881_v59, 5  ;;  %v3887_v47 = vrot.slane %v3885_v61, 4  ;;  %v8400_v16 = vld [vmem:[#allocation4_spill] sm:$0xff] }
  0xfc   : > { %6028 = vmatmul.mubr.msk.bf16.gmra.mrb[4].mxu0 %vm658_vm3, %v7538_v37  ;;  %v3846_v37 = vsel %vm6560_vm4, %v3841_v29, %v3845_v26  ;;  %v7746_v41 = vcombine.low %v3788_v33, %v3798_v23  ;;  %v7748_v5 = vcombine.low %v3812_v63, %v3822_v18  ;;  %v3860_v6 = vsel %vm6560_vm4, %v3855_v31, %v7677_v54  ;;  %v8393_v23 = vld [vmem:[#allocation11_spill] sm:$0xff]  ;;  %v5458_v63 = vld [vmem:[%s6534_s25 + $0xc0] sm:$0xf]  ;;  %v8395_v18 = vld [vmem:[#allocation9_spill] sm:$0xff] }
  0xfd   : > { %5874 = vmatmul.mubr.msk.bf16.gmra.mrb[20].mxu1 %vm658_vm3, %v8389_v51  ;;  %6031 = vmatprep.mubr.msk.bf16.mxu0 %vm658_vm3, %v7552_v58  ;;  %v8392_v58 = vsel %vm6560_vm4, %v7540_v19, %v7495_v1  ;;  %v7750_v7 = vcombine.low %v3836_v20, %v3846_v37  ;;  %v5517_v1 = vrot.slane %v5501_v11, 9  ;;  %v5502_v19 = vld [vmem:[%s6534_s25 + $0x54] sm:$0xe]  ;;  %v3878_v8 = vor.u32 %v3877_v60, %v3874_v10  ;;  %v8396_v31 = vld [vmem:[#allocation10_spill] sm:$0xff] }
  0xfe   : > { %5877 = vmatprep.mubr.msk.bf16.mxu1 %vm658_vm3, %v8390_v46  ;;  %v5471_v40 = vcombine.low %v8392_v58, %v8391_v35  ;;  %v7756_v17 = vrot.slane %v3891_v9, 5  ;;  %v3896_v55 = vshrl.u32 %v5455_v21, 16  ;;  %v3870_v62 = vsel %vm6560_vm4, %v3865_v14, %v3869_v28  ;;  %v8397_v9 = vld [vmem:[#allocation12_spill] sm:$0xff]  ;;  %v7808_v35 = vld [vmem:[%s6534_s25 + $0xbc] sm:$0x1] }
  0xff   : > { %v3899_v49 = vshll.u32 %v5455_v21, 16  ;;  %v4355_v29 = vrot.slane %v7390_v0, 5  ;;  %v4358_v26 = vrot.slane %v7444_v38, 5  ;;  %v3888_v50 = vor.u32 %v3887_v47, %v7744_v42  ;;  %v7811_v58 = vld [vmem:[%s6534_s25 + $0xc4] sm:$0xf] }
 0x100   : > { %v5518_v52 = vrot.slane %v5502_v19, 9  ;;  %v4362_v54 = vrot.slane %v7401_v24, 5  ;;  %v4365_v27 = vrot.slane %v7453_v15, 5  ;;  %v3905_v22 = vshll.u32 %v7759_v39, 16  ;;  %v5505_v19 = vld [vmem:[%s6534_s25 + $0x78] sm:$0xe] }
 0x101   : > { %v3909_v33 = vshrl.u32 %v7759_v39, 16  ;;  %v7776_v0 = vsel %vm6786_vm7, %v5517_v1, %v4355_v29  ;;  %v4357_v38 = vrot.slane %v4355_v29, 4  ;;  %v8394_v59 = vcombine.low %v7515_v36, %v8393_v23  ;;  %v8398_v23 = vld [vmem:[#allocation13_spill] sm:$0xff] }
 0x102   : > { %v7783_v24 = vcombine.low %v3860_v6, %v3870_v62  ;;  %v7787_v15 = vsel %vm6786_vm7, %v5518_v52, %v4362_v54  ;;  %v5519_v61 = vrot.slane %v5503_v4, 9  ;;  %v4369_v20 = vrot.slane %v8395_v18, 5  ;;  %v6398_v6 = vld [vmem:[%s6534_s25 + $0xc] sm:$0xff]  }
 0x103   : > { %v7793_v36 = vsel %vm6786_vm7, %v4357_v38, %v4358_v26  ;;  %v4372_v51 = vrot.slane %v8396_v31, 5  ;;  %v5520_v37 = vrot.slane %v5504_v53, 9  ;;  %v4376_v11 = vrot.slane %v8397_v9, 5 }
 0x104   : > { %6032 = vmatmul.mubr.msk.bf16.gmra.mrb[8].mxu0 %vm658_vm3, %v7561_v30  ;;  %v4364_v30 = vrot.slane %v4362_v54, 4  ;;  %v5534_v10 = vcombine.low %v7776_v0, %v7793_v36  ;;  %v4379_v46 = vrot.slane %v7611_v45, 5  ;;  %v7817_v14 = vsel %vm6786_vm7, %v5519_v61, %v4369_v20 }
 0x105   : > { %5878 = vmatmul.mubr.msk.bf16.gmra.mrb[24].mxu1 %vm658_vm3, %v8394_v59  ;;  %6035 = vmatprep.mubr.msk.bf16.mxu0 %vm658_vm3, %v5471_v40  ;;  %v4371_v28 = vrot.slane %v4369_v20, 4  ;;  %v7819_v21 = vrot.slane %v3896_v55, 4  ;;  %v3920_v47 = vshrl.u32 %v5458_v63, 16  ;;  %v7823_v45 = vsel %vm6786_vm7, %v5520_v37, %v4376_v11  ;;  %v5232_v55 = vld [vmem:[%s6534_s25 + $0x78] sm:$0xf]  ;;  %v8399_v59 = vld [vmem:[#allocation16_spill] sm:$0xff] }
 0x106   : > { %5881 = vmatprep.mubr.msk.bf16.mxu1 %vm658_vm3, %v5122_v12  ;;  %v7801_v60 = vsel %vm6786_vm7, %v4364_v30, %v4365_v27  ;;  %v7805_v12 = vrot.slane %v3878_v8, 4  ;;  %v4378_v1 = vrot.slane %v4376_v11, 4  ;;  %v7827_v8 = vrot.slane %v3888_v50, 4 }
 0x107   : > { %v5535_v40 = vcombine.low %v7787_v15, %v7801_v60  ;;  %v7829_v62 = vrot.slane %v3899_v49, 5  ;;  %v3923_v29 = vshll.u32 %v5458_v63, 16  ;;  %v7833_v26 = vsel %vm6786_vm7, %v4371_v28, %v4372_v51  ;;  %v8402_v28 = vld [vmem:[#allocation14_spill] sm:$0xff] }
 0x108   : > { %v7836_v4 = vrot.slane %v3905_v22, 5  ;;  %v7838_v52 = vrot.slane %v3909_v33, 4  ;;  %v5536_v54 = vcombine.low %v7817_v14, %v7833_v26  ;;  %v7844_v27 = vsel %vm6786_vm7, %v4378_v1, %v4379_v46  ;;  %v5506_v33 = vld [vmem:[%s6534_s25 + $0x84] sm:$0xe]  ;;  %v6399_v1 = vld [vmem:[%s6534_s25 + $0x18] sm:$0xff]  }
 0x109   : > { %v3915_v49 = vshll.u32 %v7808_v35, 16  ;;  %v3929_v50 = vshll.u32 %v7811_v58, 16  ;;  %v5537_v53 = vcombine.low %v7823_v45, %v7844_v27  ;;  %v5521_v22 = vrot.slane %v5505_v19, 9  ;;  %v6461_v60 = vld [vmem:[%s6534_s25 + $0xa0] sm:$0xf] }
 0x10a   : > { %v3922_v38 = vrot.slane %v3920_v47, 4  ;;  %v4386_v30 = vrot.slane %v8399_v59, 5  ;;  %v2245_v61 = vshrl.u32 %v5232_v55, 16  ;;  %v3925_v63 = vrot.slane %v3923_v29, 5  ;;  %v5461_v29 = vld [vmem:[%s6534_s25 + $0xcc] sm:$0xf] }
 0x10b   : > { %v3933_v18 = vshrl.u32 %v7811_v58, 16  ;;  %v2248_v43 = vshll.u32 %v5232_v55, 16  ;;  %v5522_v37 = vrot.slane %v5506_v33, 9  ;;  %v3884_v9 = vsel %vm6560_vm4, %v7805_v12, %v7744_v42  ;;  %v7887_v55 = vld [vmem:[%s6534_s25 + $0xd0] sm:$0xf] }
 0x10c   : > { %6036 = vmatmul.mubr.msk.bf16.gmra.mrb[12].mxu0 %vm658_vm3, %v7742_v44  ;;  %v4383_v44 = vrot.slane %v8398_v23, 5  ;;  %v2247_v51 = vrot.slane %v2245_v61, 4  ;;  %v3902_v11 = vor.u32 %v7829_v62, %v7819_v21  ;;  %v4390_v47 = vrot.slane %v8402_v28, 5  ;;  %v6400_v21 = vld [vmem:[%s6534_s25 + $0x24] sm:$0xff]   ;;  %v6465_v27 = vld [vmem:[%s6534_s25 + $0xac] sm:$0xf] }
 0x10d   : > { %5882 = vmatmul.mubr.msk.bf16.gmra.mrb[28].mxu1 %vm658_vm3, %v5123_v56  ;;  %6039 = vmatprep.mubr.msk.bf16.mxu0 %vm658_vm3, %v7746_v41  ;;  %v8401_v56 = vld [vmem:[#allocation5_spill] sm:$0xff]  ;;  %v2250_v46 = vrot.slane %v2248_v43, 5  ;;  %v3894_v19 = vsel %vm6560_vm4, %v7827_v8, %v7756_v17  ;;  %v4393_v12 = vrot.slane %v7639_v2, 5  ;;  %v7895_v62 = vrot.slane %v3929_v50, 5  ;;  %v5507_v8 = vld [vmem:[%s6534_s25 + $0x90] sm:$0xe] }
 0x10e   : > { %5887 = vmatprep.mubr.msk.bf16.mxu1 %vm658_vm3, %v6398_v6  ;;  %v2267_v41 = vsel %vm6560_vm4, %v8401_v56, %v8400_v16  ;;  %v7869_v20 = vsel %vm6786_vm7, %v5521_v22, %v4383_v44  ;;  %v4385_v31 = vrot.slane %v4383_v44, 4  ;;  %v3912_v6 = vor.u32 %v7838_v52, %v7836_v4  ;;  %v7901_v52 = vld [vmem:[%s6534_s25 + $0xc8] sm:$0x1]  ;;  %v8404_v16 = vld [vmem:[#allocation2_spill] sm:$0xff] }
 0x10f   : > { %v3935_v22 = vrot.slane %v3933_v18, 4  ;;  %v2251_v17 = vor.u32 %v2250_v46, %v2247_v51  ;;  %v3917_v23 = vrot.slane %v3915_v49, 5  ;;  %v3926_v44 = vor.u32 %v3925_v63, %v3922_v38  ;;  %v8405_v51 = vld [vmem:[#allocation3_spill] sm:$0xff] }
 0x110   : > { %v7891_v42 = vsel %vm6786_vm7, %v4385_v31, %v4386_v30  ;;  %v7905_v59 = vsel %vm6786_vm7, %v5522_v37, %v4390_v47  ;;  %v4392_v30 = vrot.slane %v4390_v47, 4  ;;  %v3944_v2 = vshrl.u32 %v5461_v29, 16 }
 0x111   : > { %v5538_v33 = vcombine.low %v7869_v20, %v7891_v42  ;;  %v3947_v50 = vshll.u32 %v5461_v29, 16  ;;  %v3953_v61 = vshll.u32 %v7887_v55, 16  ;;  %v2252_v18 = vrot.slane %v2251_v17, 4  ;;  %v6401_v29 = vld [vmem:[%s6534_s25 + $0x30] sm:$0xff]  }
 0x112   : > { %v3957_v49 = vshrl.u32 %v7887_v55, 16  ;;  %v7916_v38 = vsel %vm6786_vm7, %v4392_v30, %v4393_v12  ;;  %v5523_v63 = vrot.slane %v5507_v8, 9  ;;  %v3936_v56 = vor.u32 %v3935_v22, %v7895_v62 }
 0x113   : > { %v3939_v31 = vshll.u32 %v7901_v52, 16  ;;  %v5539_v37 = vcombine.low %v7905_v59, %v7916_v38  ;;  %v5477_v46 = vcombine.low %v3884_v9, %v3894_v19  ;;  %v3903_v28 = vrot.slane %v3902_v11, 4  ;;  %v5508_v11 = vld [vmem:[%s6534_s25 + $0x9c] sm:$0xe] }
 0x114   : > { %6040 = vmatmul.mubr.msk.bf16.gmra.mrb[16].mxu0 %vm658_vm3, %v7748_v5  ;;  %v8403_v5 = vld [vmem:[#allocation15_spill] sm:$0xff]  ;;  %v3913_v47 = vrot.slane %v3912_v6, 4  ;;  %v3927_v12 = vrot.slane %v3926_v44, 4  ;;  %v4400_v8 = vrot.slane %v7648_v3, 5  ;;  %v3946_v30 = vrot.slane %v3944_v2, 4  ;;  %v6402_v19 = vld [vmem:[%s6534_s25 + $0x3c] sm:$0xff]  }
 0x115   : > { %5888 = vmatmul.mubr.msk.bf16.vlgmr.msra.gmra.mrb[0].mxu1 %vm658_vm3, %v6399_v1  ;;  %6043 = vmatprep.mubr.msk.bf16.mxu0 %vm658_vm3, %v7750_v7  ;;  %v4397_v43 = vrot.slane %v8403_v5, 5  ;;  %v2257_v7 = vsel %vm6560_vm4, %v2252_v18, %v8405_v51  ;;  %v3949_v18 = vrot.slane %v3947_v50, 5  ;;  %v7939_v5 = vrot.slane %v3953_v61, 5 }
 0x116   : > { %6090 = vmatpush3.bf16.msra.mxu1 %v8404_v16  ;;  %5891 = vmatprep.mubr.msk.bf16.mxu1 %vm658_vm3, %v6400_v21  ;;  %v7928_v1 = vcombine.low %v2257_v7, %v2267_v41  ;;  %v7932_v21 = vld [vmem:[%s6534_s25 + $0xd4] sm:$0x1]  ;;  %v3959_v9 = vrot.slane %v3957_v49, 4  ;;  %v3937_v41 = vrot.slane %v3936_v56, 4  ;;  %v3941_v6 = vrot.slane %v3939_v31, 5 }
 0x117   : > { %v7936_v22 = vsel %vm6786_vm7, %v5523_v63, %v4397_v43  ;;  %v4399_v17 = vrot.slane %v4397_v43, 4  ;;  %v3908_v63 = vsel %vm6560_vm4, %v3903_v28, %v7836_v4  ;;  %v3918_v2 = vsel %vm6560_vm4, %v3913_v47, %v3917_v23  ;;  %v6452_v16 = vld [vmem:[%s6534_s25 + $0x1c] sm:$0xf]  ;;  %v5509_v28 = vld [vmem:[%s6534_s25 + $0xa8] sm:$0xe] }
 0x118   : > { %v3963_v50 = vshll.u32 %v7932_v21, 16  ;;  %v5524_v61 = vrot.slane %v5508_v11, 9  ;;  %v4404_v49 = vrot.slane %v7636_v25, 5  ;;  %v3932_v4 = vsel %vm6560_vm4, %v3927_v12, %v7895_v62  ;;  %v5497_v62 = vld [vmem:[%s6534_s25 + $0x18] sm:$0xe]  ;;  %v6403_v47 = vld [vmem:[%s6534_s25 + $0x48] sm:$0xff]  }
 0x119   : > { %v7945_v44 = vsel %vm6786_vm7, %v4399_v17, %v4400_v8  ;;  %v3960_v43 = vor.u32 %v3959_v9, %v7939_v5  ;;  %v4407_v23 = vrot.slane %v7681_v57, 5  ;;  %v3942_v25 = vsel %vm6560_vm4, %v3937_v41, %v3941_v6  ;;  %v6453_v11 = vld [vmem:[%s6534_s25 + $0x20] sm:$0x1] }
 0x11a   : > { %v5540_v3 = vcombine.low %v7936_v22, %v7945_v44  ;;  %v4327_v56 = vrot.slane %v6452_v16, 5  ;;  %v7971_v31 = vsel %vm6786_vm7, %v5524_v61, %v4404_v49  ;;  %v4406_v51 = vrot.slane %v4404_v49, 4  ;;  %v5510_v49 = vld [vmem:[%s6534_s25 + $0xb4] sm:$0xe] }
 0x11b   : > { %v5478_v7 = vcombine.low %v3908_v63, %v3918_v2  ;;  %v3961_v17 = vrot.slane %v3960_v43, 4  ;;  %v5525_v41 = vrot.slane %v5509_v28, 9  ;;  %v4411_v6 = vrot.slane %v7684_v34, 5  ;;  %v5498_v2 = vld [vmem:[%s6534_s25 + $0x24] sm:$0xe] }
 0x11c   : > { %6044 = vmatmul.mubr.msk.bf16.gmra.mrb[20].mxu0 %vm658_vm3, %v7783_v24  ;;  %v3950_v24 = vor.u32 %v3949_v18, %v3946_v30  ;;  %v7976_v57 = vsel %vm6786_vm7, %v4406_v51, %v4407_v23  ;;  %v6404_v30 = vld [vmem:[%s6534_s25 + $0x54] sm:$0xff]   ;;  %v5513_v18 = vrot.slane %v5497_v62, 9  ;;  %v4329_v9 = vrot.slane %v4327_v56, 4  ;;  %v6456_v28 = vld [vmem:[%s6534_s25 + $0x2c] sm:$0x1] }
 0x11d   : > { %5892 = vmatmul.mubr.msk.bf16.gmra.mrb[4].mxu1 %vm658_vm3, %v6401_v29  ;;  %6047 = vmatprep.mubr.msk.bf16.mxu0 %vm658_vm3, %v5477_v46  ;;  %v3965_v46 = vrot.slane %v3963_v50, 5  ;;  %v5479_v29 = vcombine.low %v3932_v4, %v3942_v25  ;;  %v5541_v8 = vcombine.low %v7971_v31, %v7976_v57  ;;  %v4414_v63 = vrot.slane %v7694_v48, 5  ;;  %v6454_v50 = vld [vmem:[%s6534_s25 + $0x28] sm:$0xf]  ;;  %v5499_v25 = vld [vmem:[%s6534_s25 + $0x30] sm:$0xe] }
 0x11e   : > { %5895 = vmatprep.mubr.msk.bf16.mxu1 %vm658_vm3, %v6402_v19  ;;  %v3951_v12 = vrot.slane %v3950_v24, 4  ;;  %v4330_v19 = vrot.slane %v6453_v11, 5  ;;  %v4334_v61 = vrot.slane %v6454_v50, 5  ;;  %v7999_v48 = vsel %vm6786_vm7, %v5525_v41, %v4411_v6  ;;  %v6406_v11 = vld [vmem:[%s6534_s25 + $0x6c] sm:$0xff]   ;;  %v8406_v41 = vld [vmem:[#allocation6_spill] sm:$0xff] }
 0x11f   : > { %v3966_v34 = vsel %vm6560_vm4, %v3961_v17, %v3965_v46  ;;  %v4413_v24 = vrot.slane %v4411_v6, 4  ;;  %v4328_v43 = vsel %vm6786_vm7, %v5513_v18, %v4327_v56  ;;  %v5514_v51 = vrot.slane %v5498_v2, 9  ;;  %v5511_v50 = vld [vmem:[%s6534_s25 + $0xc0] sm:$0xe]  ;;  %v6470_v31 = vld [vmem:[%s6534_s25 + $0xc8] sm:$0x1] }
 0x120   : > { %v3956_v4 = vsel %vm6560_vm4, %v3951_v12, %v7939_v5  ;;  %v4331_v23 = vsel %vm6786_vm7, %v4329_v9, %v4330_v19  ;;  %v6455_v5 = vld [vmem:[%s6534_s25 + $0x34] sm:$0xf]  ;;  %v6405_v12 = vld [vmem:[%s6534_s25 + $0x60] sm:$0xff]   ;;  %v5515_v18 = vrot.slane %v5499_v25, 9  ;;  %v4421_v9 = vrot.slane %v7808_v35, 5 }
 0x121   : > { %v4341_v16 = vrot.slane %v6455_v5, 5  ;;  %v8010_v62 = vsel %vm6786_vm7, %v4413_v24, %v4414_v63  ;;  %v5480_v46 = vcombine.low %v3956_v4, %v3966_v34  ;;  %v5530_v17 = vcombine.low %v4328_v43, %v4331_v23  ;;  %v5500_v24 = vld [vmem:[%s6534_s25 + $0x3c] sm:$0xe] }
 0x122   : > { %v5542_v56 = vcombine.low %v7999_v48, %v8010_v62  ;;  %v4344_v6 = vrot.slane %v8406_v41, 5  ;;  %v4335_v35 = vsel %vm6786_vm7, %v5514_v51, %v4334_v61  ;;  %v5527_v5 = vrot.slane %v5511_v50, 9 }
 0x123   : > { %v4343_v19 = vrot.slane %v4341_v16, 4  ;;  %v4342_v23 = vsel %vm6786_vm7, %v5515_v18, %v4341_v16  ;;  %v4428_v51 = vrot.slane %v7901_v52, 5  ;;  %v2408_v57 = vshll.u32 %v6470_v31, 16 }
 0x124   : > { %6048 = vmatmul.mubr.msk.bf16.gmra.mrb[24].mxu0 %vm658_vm3, %v5478_v7  ;;  %v5526_v7 = vrot.slane %v5510_v49, 9 }
 0x125   : > { %5896 = vmatmul.mubr.msk.bf16.gmra.mrb[8].mxu1 %vm658_vm3, %v6403_v47  ;;  %6051 = vmatprep.mubr.msk.bf16.mxu0 %vm658_vm3, %v5479_v29  ;;  %v4337_v47 = vrot.slane %v6456_v28, 5  ;;  %v4418_v29 = vrot.slane %v7759_v39, 5  ;;  %v8407_v39 = vld [vmem:[#allocation7_spill] sm:$0xff]  ;;  %v4345_v25 = vsel %vm6786_vm7, %v4343_v19, %v4344_v6  ;;  %v5516_v28 = vrot.slane %v5500_v24, 9 }
 0x126   : > { %5899 = vmatprep.mubr.msk.bf16.mxu1 %vm658_vm3, %v6404_v30  ;;  %v4336_v30 = vrot.slane %v4334_v61, 4  ;;  %v4348_v49 = vrot.slane %v8407_v39, 5  ;;  %v4425_v61 = vrot.slane %v7811_v58, 5  ;;  %v6457_v39 = vld [vmem:[%s6534_s25 + $0x70] sm:$0xf]  ;;  %v4432_v24 = vrot.slane %v7887_v55, 5 }
 0x127   : > { %v8022_v63 = vsel %vm6786_vm7, %v5526_v7, %v4418_v29  ;;  %v4420_v2 = vrot.slane %v4418_v29, 4  ;;  %v5229_v7 = vld [vmem:[%s6534_s25 + $0x6c] sm:$0xf]  ;;  %v8408_v29 = vld [vmem:[#allocation8_spill] sm:$0xff] }
 0x128   : > { %v4338_v34 = vsel %vm6786_vm7, %v4336_v30, %v4337_v47  ;;  %v4350_v47 = vrot.slane %v4348_v49, 4  ;;  %v6407_v30 = vld [vmem:[%s6534_s25 + $0x78] sm:$0xff]   ;;  %v8053_v16 = vsel %vm6786_vm7, %v5527_v5, %v4425_v61  ;;  %v4427_v18 = vrot.slane %v4425_v61, 4 }
 0x129   : > { %v8029_v4 = vsel %vm6786_vm7, %v4420_v2, %v4421_v9  ;;  %v5532_v9 = vcombine.low %v4342_v23, %v4345_v25  ;;  %v2221_v19 = vshrl.u32 %v5229_v7, 16  ;;  %v2224_v41 = vshll.u32 %v5229_v7, 16 }
 0x12a   : > { %v5543_v43 = vcombine.low %v8022_v63, %v8029_v4  ;;  %v8058_v58 = vsel %vm6786_vm7, %v4427_v18, %v4428_v51  ;;  %v4349_v6 = vsel %vm6786_vm7, %v5516_v28, %v4348_v49  ;;  %v4435_v49 = vrot.slane %v7932_v21, 5  ;;  %v6409_v51 = vld [vmem:[%s6534_s25 + $0x90] sm:$0xff]   ;;  %v6410_v21 = vld [vmem:[%s6534_s25 + $0x9c] sm:$0xff]  }
 0x12b   : > { %v5544_v50 = vcombine.low %v8053_v16, %v8058_v58  ;;  %v2223_v23 = vrot.slane %v2221_v19, 4  ;;  %v2226_v25 = vrot.slane %v2224_v41, 5  ;;  %v4434_v7 = vrot.slane %v4432_v24, 4 }
 0x12c   : > { %6052 = vmatmul.mubr.msk.bf16.gmra.mrb[28].mxu0 %vm658_vm3, %v5480_v46  ;;  %v5531_v46 = vcombine.low %v4335_v35, %v4338_v34  ;;  %v2230_v35 = vshll.u32 %v6457_v39, 16  ;;  %v2234_v34 = vshrl.u32 %v6457_v39, 16 }
 0x12d   : > { %5900 = vmatmul.mubr.msk.bf16.gmra.mrb[12].mxu1 %vm658_vm3, %v6405_v12  ;;  %6057 = vmatprep.mubr.msk.bf16.mxu0 %vm658_vm3, %v5530_v17  ;;  %v4351_v12 = vrot.slane %v8408_v29, 5  ;;  %v5512_v17 = vld [vmem:[%s6534_s25 + $0xcc] sm:$0xe]  ;;  %v8080_v55 = vsel %vm6786_vm7, %v4434_v7, %v4435_v49 }
 0x12e   : > { %5903 = vmatprep.mubr.msk.bf16.mxu1 %vm658_vm3, %v6406_v11  ;;  %v6408_v11 = vld [vmem:[%s6534_s25 + $0x84] sm:$0xff]   ;;  %v5528_v52 = vrot.slane %v5512_v17, 9  ;;  %v2236_v28 = vrot.slane %v2234_v34, 4  ;;  %v6458_v17 = vld [vmem:[%s6534_s25 + $0x74] sm:$0x1] }
 0x12f   : > { %v4352_v2 = vsel %vm6786_vm7, %v4350_v47, %v4351_v12  ;;  %v5235_v47 = vld [vmem:[%s6534_s25 + $0x84] sm:$0xf]  ;;  %v2227_v12 = vor.u32 %v2226_v25, %v2223_v23  ;;  %v6412_v34 = vld [vmem:[%s6534_s25 + $0xb4] sm:$0xff]  }
 0x130   : > { %v8075_v5 = vsel %vm6786_vm7, %v5528_v52, %v4432_v24  ;;  %v5533_v61 = vcombine.low %v4349_v6, %v4352_v2  ;;  %v2272_v18 = vshll.u32 %v5235_v47, 16  ;;  %v5238_v6 = vld [vmem:[%s6534_s25 + $0x90] sm:$0xf]  ;;  %v6411_v2 = vld [vmem:[%s6534_s25 + $0xa8] sm:$0xff]  }
 0x131   : > { %v5545_v29 = vcombine.low %v8075_v5, %v8080_v55  ;;  %v2228_v52 = vrot.slane %v2227_v12, 4  ;;  %v2293_v23 = vshrl.u32 %v5238_v6, 16  ;;  %v2296_v25 = vshll.u32 %v5238_v6, 16 }
 0x132   : > { %v2326_v12 = vshll.u32 %v6461_v60, 16 }
 0x133   : > { %v2298_v14 = vrot.slane %v2296_v25, 5  ;;  %v6464_v25 = vld [vmem:[%s6534_s25 + $0xa4] sm:$0x1] }
 0x134   : > { %6058 = vmatmul.mubr.msk.bf16.vlgmr.msra.gmra.mrb[0].mxu0 %vm658_vm3, %v5531_v46  ;;  %v2232_v46 = vrot.slane %v2230_v35, 5  ;;  %v5241_v35 = vld [vmem:[%s6534_s25 + $0x9c] sm:$0xf]  ;;  %v8122_v6 = vrot.slane %v2326_v12, 5 }
 0x135   : > { %5904 = vmatmul.mubr.msk.bf16.gmra.mrb[16].mxu1 %vm658_vm3, %v6407_v30  ;;  %6061 = vmatprep.mubr.msk.bf16.mxu0 %vm658_vm3, %v5532_v9  ;;  %v2240_v30 = vshll.u32 %v6458_v17, 16  ;;  %v2269_v9 = vshrl.u32 %v5235_v47, 16  ;;  %v2320_v47 = vshll.u32 %v5241_v35, 16  ;;  %v6462_v17 = vld [vmem:[%s6534_s25 + $0x8c] sm:$0x1] }
 0x136   : > { %5907 = vmatprep.mubr.msk.bf16.mxu1 %vm658_vm3, %v6408_v11  ;;  %v2237_v13 = vor.u32 %v2236_v28, %v2232_v46  ;;  %v6459_v11 = vld [vmem:[%s6534_s25 + $0x88] sm:$0xf]  ;;  %v2233_v7 = vsel %vm6560_vm4, %v2228_v52, %v2232_v46 }
 0x137   : > { %v2278_v19 = vshll.u32 %v6459_v11, 16  ;;  %v2282_v41 = vshrl.u32 %v6459_v11, 16  ;;  %v2242_v0 = vrot.slane %v2240_v30, 5  ;;  %v2271_v36 = vrot.slane %v2269_v9, 4 }
 0x138   : > { %v2238_v39 = vrot.slane %v2237_v13, 4  ;;  %v2288_v30 = vshll.u32 %v6462_v17, 16  ;;  %v2295_v9 = vrot.slane %v2293_v23, 4  ;;  %v2322_v11 = vrot.slane %v2320_v47, 5 }
 0x139   : > { %v8099_v24 = vrot.slane %v2278_v19, 5  ;;  %v2284_v49 = vrot.slane %v2282_v41, 4  ;;  %v6413_v19 = vld [vmem:[%s6534_s25 + $0xc0] sm:$0xff]  }
 0x13a   : > { %v2243_v46 = vsel %vm6560_vm4, %v2238_v39, %v2242_v0  ;;  %v5244_v39 = vld [vmem:[%s6534_s25 + $0xa8] sm:$0xf] }
 0x13b   : > { %v2285_v13 = vor.u32 %v2284_v49, %v8099_v24  ;;  %v5262_v41 = vcombine.low %v2233_v7, %v2243_v46  ;;  %v2336_v7 = vshll.u32 %v6464_v25, 16  ;;  %v2344_v45 = vshll.u32 %v5244_v39, 16 }
 0x13c   : > { %6062 = vmatmul.mubr.msk.bf16.gmra.mrb[4].mxu0 %vm658_vm3, %v5533_v61  ;;  %v6460_v61 = vld [vmem:[%s6534_s25 + $0x94] sm:$0xf] }
 0x13d   : > { %5908 = vmatmul.mubr.msk.bf16.gmra.mrb[20].mxu1 %vm658_vm3, %v6409_v51  ;;  %6065 = vmatprep.mubr.msk.bf16.mxu0 %vm658_vm3, %v5534_v10  ;;  %v2274_v10 = vrot.slane %v2272_v18, 5  ;;  %v2302_v51 = vshll.u32 %v6460_v61, 16  ;;  %v2306_v28 = vshrl.u32 %v6460_v61, 16  ;;  %v2286_v0 = vrot.slane %v2285_v13, 4 }
 0x13e   : > { %5911 = vmatprep.mubr.msk.bf16.mxu1 %vm658_vm3, %v6410_v21  ;;  %v2317_v21 = vshrl.u32 %v5241_v35, 16  ;;  %v6463_v35 = vld [vmem:[%s6534_s25 + $0x98] sm:$0x1]  ;;  %v2341_v61 = vshrl.u32 %v5244_v39, 16  ;;  %v5250_v39 = vld [vmem:[%s6534_s25 + $0xc0] sm:$0xf] }
 0x13f   : > { %v2275_v15 = vor.u32 %v2274_v10, %v2271_v36  ;;  %v8119_v26 = vrot.slane %v2302_v51, 5  ;;  %v2290_v36 = vrot.slane %v2288_v30, 5  ;;  %v2299_v10 = vor.u32 %v2298_v14, %v2295_v9  ;;  %v5247_v51 = vld [vmem:[%s6534_s25 + $0xb4] sm:$0xf] }
 0x140   : > { %v2319_v18 = vrot.slane %v2317_v21, 4  ;;  %v2354_v21 = vshrl.u32 %v6465_v27, 16  ;;  %v2365_v20 = vshrl.u32 %v5247_v51, 16  ;;  %v2368_v42 = vshll.u32 %v5247_v51, 16 }
 0x141   : > { %v2276_v52 = vrot.slane %v2275_v15, 4  ;;  %v2291_v46 = vsel %vm6560_vm4, %v2286_v0, %v2290_v36  ;;  %v2300_v15 = vrot.slane %v2299_v10, 4  ;;  %v2338_v30 = vrot.slane %v2336_v7, 5 }
 0x142   : > { %v2323_v23 = vor.u32 %v2322_v11, %v2319_v18  ;;  %v2343_v9 = vrot.slane %v2341_v61, 4  ;;  %v2356_v11 = vrot.slane %v2354_v21, 4  ;;  %v6469_v61 = vld [vmem:[%s6534_s25 + $0xbc] sm:$0x1] }
 0x143   : > { %v2281_v47 = vsel %vm6560_vm4, %v2276_v52, %v8099_v24  ;;  %v2305_v0 = vsel %vm6560_vm4, %v2300_v15, %v8119_v26  ;;  %v2384_v22 = vshll.u32 %v6469_v61, 16 }
 0x144   : > { %6066 = vmatmul.mubr.msk.bf16.gmra.mrb[8].mxu0 %vm658_vm3, %v5535_v40  ;;  %v2330_v40 = vshrl.u32 %v6461_v60, 16  ;;  %v2324_v17 = vrot.slane %v2323_v23, 4  ;;  %v5264_v24 = vcombine.low %v2281_v47, %v2291_v46 }
 0x145   : > { %5912 = vmatmul.mubr.msk.bf16.gmra.mrb[24].mxu1 %vm658_vm3, %v6411_v2  ;;  %6069 = vmatprep.mubr.msk.bf16.mxu0 %vm658_vm3, %v5536_v54  ;;  %v2308_v54 = vrot.slane %v2306_v28, 4 }
 0x146   : > { %5915 = vmatprep.mubr.msk.bf16.mxu1 %vm658_vm3, %v6412_v34  ;;  %v2332_v2 = vrot.slane %v2330_v40, 4  ;;  %v2312_v34 = vshll.u32 %v6463_v35, 16  ;;  %v2329_v10 = vsel %vm6560_vm4, %v2324_v17, %v8122_v6  ;;  %v2410_v17 = vrot.slane %v2408_v57, 5 }
 0x147   : > { %v2309_v49 = vor.u32 %v2308_v54, %v8119_v26  ;;  %v2346_v54 = vrot.slane %v2344_v45, 5  ;;  %v6467_v26 = vld [vmem:[%s6534_s25 + $0xb0] sm:$0x1] }
 0x148   : > { %v2333_v28 = vor.u32 %v2332_v2, %v8122_v6  ;;  %v2314_v60 = vrot.slane %v2312_v34, 5  ;;  %v2360_v35 = vshll.u32 %v6467_v26, 16  ;;  %v2389_v34 = vshrl.u32 %v5250_v39, 16 }
 0x149   : > { %v2310_v13 = vrot.slane %v2309_v49, 4  ;;  %v2347_v38 = vor.u32 %v2346_v54, %v2343_v9  ;;  %v2392_v6 = vshll.u32 %v5250_v39, 16  ;;  %v6468_v49 = vld [vmem:[%s6534_s25 + $0xc4] sm:$0xf] }
 0x14a   : > { %v2334_v14 = vrot.slane %v2333_v28, 4  ;;  %v2398_v23 = vshll.u32 %v6468_v49, 16  ;;  %v2402_v25 = vshrl.u32 %v6468_v49, 16  ;;  %v2362_v45 = vrot.slane %v2360_v35, 5 }
 0x14b   : > { %v2315_v36 = vsel %vm6560_vm4, %v2310_v13, %v2314_v60  ;;  %v2348_v51 = vrot.slane %v2347_v38, 4  ;;  %v2386_v60 = vrot.slane %v2384_v22, 5 }
 0x14c   : > { %6070 = vmatmul.mubr.msk.bf16.gmra.mrb[12].mxu0 %vm658_vm3, %v5537_v53  ;;  %v2350_v53 = vshll.u32 %v6465_v27, 16  ;;  %v2339_v59 = vsel %vm6560_vm4, %v2334_v14, %v2338_v30  ;;  %v5265_v44 = vcombine.low %v2305_v0, %v2315_v36  ;;  %v2391_v27 = vrot.slane %v2389_v34, 4 }
 0x14d   : > { %5916 = vmatmul.mubr.msk.bf16.gmra.mrb[28].mxu1 %vm658_vm3, %v6413_v19  ;;  %6073 = vmatprep.mubr.msk.bf16.mxu0 %vm658_vm3, %v5538_v33  ;;  %v6466_v33 = vld [vmem:[%s6534_s25 + $0xb8] sm:$0xf]  ;;  %v2367_v19 = vrot.slane %v2365_v20, 4  ;;  %v2400_v21 = vrot.slane %v2398_v23, 5  ;;  %v2404_v47 = vrot.slane %v2402_v25, 4 }
 0x14e   : > { %5937 = vmatprep.mubr.msk.bf16.mxu1 %vm658_vm3, %v5262_v41  ;;  %v2374_v12 = vshll.u32 %v6466_v33, 16  ;;  %v2378_v40 = vshrl.u32 %v6466_v33, 16  ;;  %v2352_v18 = vrot.slane %v2350_v53, 5  ;;  %v2370_v41 = vrot.slane %v2368_v42, 5 }
 0x14f   : > { %v2394_v53 = vrot.slane %v2392_v6, 5 }
 0x150   : > { %v2376_v52 = vrot.slane %v2374_v12, 5  ;;  %v2380_v2 = vrot.slane %v2378_v40, 4  ;;  %v2353_v20 = vsel %vm6560_vm4, %v2348_v51, %v2352_v18  ;;  %v2405_v12 = vor.u32 %v2404_v47, %v2400_v21 }
 0x151   : > { %v2395_v33 = vor.u32 %v2394_v53, %v2391_v27 }
 0x152   : > { %v2381_v7 = vor.u32 %v2380_v2, %v2376_v52  ;;  %v2406_v13 = vrot.slane %v2405_v12, 4  ;;  %v8225_v2 = vld [vmem:[%s8340_s2] ss:$0 sm:$0xff] }
 0x153   : > { %v2396_v40 = vrot.slane %v2395_v33, 4 }
 0x154   : > { %6074 = vmatmul.mubr.msk.bf16.gmra.mrb[16].mxu0 %vm658_vm3, %v5539_v37  ;;  %v2357_v37 = vor.u32 %v2356_v11, %v2352_v18  ;;  %v2382_v15 = vrot.slane %v2381_v7, 4  ;;  %v2411_v9 = vsel %vm6560_vm4, %v2406_v13, %v2410_v17 }
 0x155   : > { %5938 = vmatmul.mubr.msk.bf16.vlgmr.msra.gmra.mrb[16].mxu1 %vm658_vm3, %v7928_v1  ;;  %6077 = vmatprep.mubr.msk.bf16.mxu0 %vm658_vm3, %v5540_v3  ;;  %v2371_v1 = vor.u32 %v2370_v41, %v2367_v19  ;;  %v5266_v3 = vcombine.low %v2329_v10, %v2339_v59  ;;  %v2401_v30 = vsel %vm6560_vm4, %v2396_v40, %v2400_v21 }
 0x156   : > { %5941 = vmatprep.mubr.msk.bf16.mxu1 %vm658_vm3, %v5264_v24  ;;  %v2358_v28 = vrot.slane %v2357_v37, 4  ;;  %v2387_v48 = vsel %vm6560_vm4, %v2382_v15, %v2386_v60  ;;  %v5269_v14 = vcombine.low %v2401_v30, %v2411_v9 }
 0x157   : > { %v2372_v46 = vrot.slane %v2371_v1, 4 }
 0x158   : > { %v2363_v42 = vsel %vm6560_vm4, %v2358_v28, %v2362_v45 }
 0x159   : > { %v5267_v62 = vcombine.low %v2353_v20, %v2363_v42 }
 0x15c   : > { %6078 = vmatmul.mubr.msk.bf16.gmra.mrb[20].mxu0 %vm658_vm3, %v5541_v8  ;;  %v2377_v8 = vsel %vm6560_vm4, %v2372_v46, %v2376_v52 }
 0x15d   : > { %5942 = vmatmul.mubr.msk.bf16.gmra.mrb[20].mxu1 %vm658_vm3, %v5265_v44  ;;  %6081 = vmatprep.mubr.msk.bf16.mxu0 %vm658_vm3, %v5542_v56  ;;  %v5268_v56 = vcombine.low %v2377_v8, %v2387_v48 }
 0x15e   : > { %5945 = vmatprep.mubr.msk.bf16.mxu1 %vm658_vm3, %v5266_v3 }
 0x164   : > { %6082 = vmatmul.mubr.msk.bf16.gmra.mrb[24].mxu0 %vm658_vm3, %v5543_v43 }
 0x165   : > { %5946 = vmatmul.mubr.msk.bf16.gmra.mrb[24].mxu1 %vm658_vm3, %v5267_v62  ;;  %6085 = vmatprep.mubr.msk.bf16.mxu0 %vm658_vm3, %v5544_v50 }
 0x166   : > { %5949 = vmatprep.mubr.msk.bf16.mxu1 %vm658_vm3, %v5268_v56 }
 0x16c   : > { %6086 = vmatmul.mubr.msk.bf16.gmra.mrb[28].mxu0 %vm658_vm3, %v5545_v29 }
 0x16d   : > { %5950 = vmatmul.mubr.msk.bf16.gmra.mrb[28].mxu1 %vm658_vm3, %v5269_v14 }
 0x1e8   : > { %v5889_v63 = vpop.f32.mrb[0].mxu1 }
 0x1e9   : > { %v1821_v4 = vpop.f32.mrb[1].mxu1 }
 0x1ea   : > { %v5890_v43 = vpop.f32.mrb[2].mxu1 }
 0x1eb   : > { %v1824_v16 = vpop.f32.mrb[3].mxu1 }
 0x1f0   : > { %v5893_v58 = vpop.f32.mrb[4].mxu1 }
 0x1f1   : > { %v1837_v50 = vpop.f32.mrb[5].mxu1 }
 0x1f2   : > { %v5894_v54 = vpop.f32.mrb[6].mxu1 }
 0x1f3   : > { %v1840_v18 = vpop.f32.mrb[7].mxu1 }
 0x1f8   : > { %v5897_v11 = vpop.f32.mrb[8].mxu1 }
 0x1f9   : > { %v1853_v32 = vpop.f32.mrb[9].mxu1 }
 0x1fa   : > { %v8210_v24 = vpop.f32.mrb[10].mxu1 }
 0x1fb   : > { %v8212_v19 = vpop.f32.mrb[11].mxu1 }
 0x200   : > { %v8214_v5 = vpop.f32.mrb[12].mxu1 }
 0x201   : > { %v8216_v55 = vpop.f32.mrb[13].mxu1 }
 0x202   : > { %v8218_v29 = vpop.f32.mrb[14].mxu1 }
 0x203   : > { %v8220_v41 = vpop.f32.mrb[15].mxu1 }
 0x207   : > { %v6059_v52 = vpop.f32.mrb[0].mxu0 }
 0x208   : > { %v6091_v39 = vadd.f32 %v6059_v52, %v5889_v63  ;;  %v4572_v0 = vpop.f32.mrb[1].mxu0 }
 0x209   : > { %v6092_v36 = vadd.f32 %v4572_v0, %v1821_v4  ;;  %v6060_v10 = vpop.f32.mrb[2].mxu0 }
 0x20a   : > { %v4740_v59 = vadd.f32 %v6091_v39, %v8225_v2  ;;  %v6093_v38 = vadd.f32 %v6060_v10, %v5890_v43  ;;  %v4575_v37 = vpop.f32.mrb[3].mxu0 }
 0x20b   : > { %v4738_v26 = vadd.f32 %v6092_v36, %v8225_v2  ;;  %v6094_v35 = vadd.f32 %v4575_v37, %v1824_v16 }
 0x20c   : > { %v4772_v34 = vmax.f32 %v4740_v59, 0.0  ;;  %v4741_v6 = vadd.f32 %v6093_v38, %v8225_v2 }
 0x20d   : > { %v4770_v49 = vmax.f32 %v4738_v26, 0.0  ;;  %v4739_v23 = vadd.f32 %v6094_v35, %v8225_v2 }
 0x20e   : > { %v5600_v25 = vpack.c.bf16 %v4772_v34, %v4772_v34  ;;  %v4773_v1 = vmax.f32 %v4741_v6, 0.0 }
 0x20f   : > { %v5598_v7 = vpack.c.bf16 %v4770_v49, %v4770_v49  ;;  %v4771_v61 = vmax.f32 %v4739_v23, 0.0  ;;  %v6063_v22 = vpop.f32.mrb[4].mxu0 }
 0x210   : > { %4933 = vst.msk [vmem:[%s8234_s20 + $0x8] sm:$0xf] %vm4930_vm8, %v5600_v25  ;;  %v5601_v44 = vpack.c.bf16 %v4773_v1, %v4773_v1  ;;  %v6095_v3 = vadd.f32 %v6063_v22, %v5893_v58  ;;  %v4588_v51 = vpop.f32.mrb[5].mxu0 }
 0x211   : > { %4931 = vst.msk [vmem:[%s8234_s20] sm:$0xf] %vm4930_vm8, %v5598_v7  ;;  %v5599_v28 = vpack.c.bf16 %v4771_v61, %v4771_v61  ;;  %v6096_v45 = vadd.f32 %v4588_v51, %v1837_v50  ;;  %v6064_v27 = vpop.f32.mrb[6].mxu0 }
 0x212   : > { %4934 = vst.msk [vmem:[%s8234_s20 + $0xc] sm:$0xf] %vm4930_vm8, %v5601_v44  ;;  %v4744_v53 = vadd.f32 %v6095_v3, %v8225_v2  ;;  %v6097_v21 = vadd.f32 %v6064_v27, %v5894_v54  ;;  %v4591_v47 = vpop.f32.mrb[7].mxu0 }
 0x213   : > { %4932 = vst.msk [vmem:[%s8234_s20 + $0x4] sm:$0xf] %vm4930_vm8, %v5599_v28  ;;  %v4742_v46 = vadd.f32 %v6096_v45, %v8225_v2  ;;  %v6098_v15 = vadd.f32 %v4591_v47, %v1840_v18 }
 0x214   : > { %v4776_v60 = vmax.f32 %v4744_v53, 0.0  ;;  %v4745_v20 = vadd.f32 %v6097_v21, %v8225_v2 }
 0x215   : > { %v4774_v42 = vmax.f32 %v4742_v46, 0.0  ;;  %v4743_v33 = vadd.f32 %v6098_v15, %v8225_v2 }
 0x216   : > { %v5604_v12 = vpack.c.bf16 %v4776_v60, %v4776_v60  ;;  %v4777_v31 = vmax.f32 %v4745_v20, 0.0 }
 0x217   : > { %v5602_v57 = vpack.c.bf16 %v4774_v42, %v4774_v42  ;;  %v4775_v8 = vmax.f32 %v4743_v33, 0.0  ;;  %v6067_v48 = vpop.f32.mrb[8].mxu0 }
 0x218   : > { %4937 = vst.msk [vmem:[%s8234_s20 + $0x18] sm:$0xf] %vm4930_vm8, %v5604_v12  ;;  %v5605_v62 = vpack.c.bf16 %v4777_v31, %v4777_v31  ;;  %v6099_v56 = vadd.f32 %v6067_v48, %v5897_v11  ;;  %v4604_v40 = vpop.f32.mrb[9].mxu0 }
 0x219   : > { %4935 = vst.msk [vmem:[%s8234_s20 + $0x10] sm:$0xf] %vm4930_vm8, %v5602_v57  ;;  %v5603_v13 = vpack.c.bf16 %v4775_v8, %v4775_v8  ;;  %v6100_v17 = vadd.f32 %v4604_v40, %v1853_v32  ;;  %v6068_v30 = vpop.f32.mrb[10].mxu0 }
 0x21a   : > { %4938 = vst.msk [vmem:[%s8234_s20 + $0x1c] sm:$0xf] %vm4930_vm8, %v5605_v62  ;;  %v4748_v9 = vadd.f32 %v6099_v56, %v8225_v2  ;;  %v6101_v14 = vadd.f32 %v6068_v30, %v8210_v24  ;;  %v4607_v63 = vpop.f32.mrb[11].mxu0 }
 0x21b   : > { %4936 = vst.msk [vmem:[%s8234_s20 + $0x14] sm:$0xf] %vm4930_vm8, %v5603_v13  ;;  %v4746_v4 = vadd.f32 %v6100_v17, %v8225_v2  ;;  %v6102_v43 = vadd.f32 %v4607_v63, %v8212_v19 }
 0x21c   : > { %v4780_v16 = vmax.f32 %v4748_v9, 0.0  ;;  %v4749_v58 = vadd.f32 %v6101_v14, %v8225_v2 }
 0x21d   : > { %v4778_v50 = vmax.f32 %v4746_v4, 0.0  ;;  %v4747_v54 = vadd.f32 %v6102_v43, %v8225_v2 }
 0x21e   : > { %v5608_v18 = vpack.c.bf16 %v4780_v16, %v4780_v16  ;;  %v4781_v11 = vmax.f32 %v4749_v58, 0.0 }
 0x21f   : > { %v5606_v32 = vpack.c.bf16 %v4778_v50, %v4778_v50  ;;  %v4779_v24 = vmax.f32 %v4747_v54, 0.0  ;;  %v6071_v52 = vpop.f32.mrb[12].mxu0 }
 0x220   : > { %4941 = vst.msk [vmem:[%s8234_s20 + $0x28] sm:$0xf] %vm4930_vm8, %v5608_v18  ;;  %v5609_v39 = vpack.c.bf16 %v4781_v11, %v4781_v11  ;;  %v6103_v0 = vadd.f32 %v6071_v52, %v8214_v5  ;;  %v4620_v36 = vpop.f32.mrb[13].mxu0 }
 0x221   : > { %4939 = vst.msk [vmem:[%s8234_s20 + $0x20] sm:$0xf] %vm4930_vm8, %v5606_v32  ;;  %v5607_v19 = vpack.c.bf16 %v4779_v24, %v4779_v24  ;;  %v6104_v10 = vadd.f32 %v4620_v36, %v8216_v55  ;;  %v6072_v59 = vpop.f32.mrb[14].mxu0 }
 0x222   : > { %4942 = vst.msk [vmem:[%s8234_s20 + $0x2c] sm:$0xf] %vm4930_vm8, %v5609_v39  ;;  %v4752_v38 = vadd.f32 %v6103_v0, %v8225_v2  ;;  %v6105_v37 = vadd.f32 %v6072_v59, %v8218_v29  ;;  %v4623_v26 = vpop.f32.mrb[15].mxu0 }
 0x223   : > { %4940 = vst.msk [vmem:[%s8234_s20 + $0x24] sm:$0xf] %vm4930_vm8, %v5607_v19  ;;  %v4750_v5 = vadd.f32 %v6104_v10, %v8225_v2  ;;  %v6106_v35 = vadd.f32 %v4623_v26, %v8220_v41 }
 0x224   : > { %v4784_v34 = vmax.f32 %v4752_v38, 0.0  ;;  %v4753_v6 = vadd.f32 %v6105_v37, %v8225_v2 }
 0x225   : > { %v4782_v55 = vmax.f32 %v4750_v5, 0.0  ;;  %v4751_v49 = vadd.f32 %v6106_v35, %v8225_v2 }
 0x226   : > { %v5612_v23 = vpack.c.bf16 %v4784_v34, %v4784_v34  ;;  %v4785_v25 = vmax.f32 %v4753_v6, 0.0 }
 0x227   : > { %v5610_v1 = vpack.c.bf16 %v4782_v55, %v4782_v55  ;;  %v4783_v29 = vmax.f32 %v4751_v49, 0.0  ;;  %v6075_v7 = vpop.f32.mrb[16].mxu0 }
 0x228   : > { %4945 = vst.msk [vmem:[%s8234_s20 + $0x38] sm:$0xf] %vm4930_vm8, %v5612_v23  ;;  %v5613_v61 = vpack.c.bf16 %v4785_v25, %v4785_v25  ;;  %v5939_v22 = vpop.f32.mrb[16].mxu1  ;;  %v4636_v44 = vpop.f32.mrb[17].mxu0 }
 0x229   : > { %4943 = vst.msk [vmem:[%s8234_s20 + $0x30] sm:$0xf] %vm4930_vm8, %v5610_v1  ;;  %v5611_v41 = vpack.c.bf16 %v4783_v29, %v4783_v29  ;;  %v6107_v3 = vadd.f32 %v6075_v7, %v5939_v22  ;;  %v2611_v51 = vpop.f32.mrb[17].mxu1  ;;  %v6076_v28 = vpop.f32.mrb[18].mxu0 }
 0x22a   : > { %4946 = vst.msk [vmem:[%s8234_s20 + $0x3c] sm:$0xf] %vm4930_vm8, %v5613_v61  ;;  %v6108_v45 = vadd.f32 %v4636_v44, %v2611_v51  ;;  %v5940_v27 = vpop.f32.mrb[18].mxu1  ;;  %v4639_v53 = vpop.f32.mrb[19].mxu0 }
 0x22b   : > { %4944 = vst.msk [vmem:[%s8234_s20 + $0x34] sm:$0xf] %vm4930_vm8, %v5611_v41  ;;  %v4756_v21 = vadd.f32 %v6107_v3, %v8225_v2  ;;  %v6109_v47 = vadd.f32 %v6076_v28, %v5940_v27  ;;  %v2614_v46 = vpop.f32.mrb[19].mxu1 }
 0x22c   : > { %v4754_v15 = vadd.f32 %v6108_v45, %v8225_v2  ;;  %v6110_v60 = vadd.f32 %v4639_v53, %v2614_v46 }
 0x22d   : > { %v4788_v20 = vmax.f32 %v4756_v21, 0.0  ;;  %v4757_v42 = vadd.f32 %v6109_v47, %v8225_v2 }
 0x22e   : > { %v4786_v33 = vmax.f32 %v4754_v15, 0.0  ;;  %v4755_v12 = vadd.f32 %v6110_v60, %v8225_v2 }
 0x22f   : > { %v5616_v31 = vpack.c.bf16 %v4788_v20, %v4788_v20  ;;  %v4789_v57 = vmax.f32 %v4757_v42, 0.0  ;;  %v6079_v8 = vpop.f32.mrb[20].mxu0 }
 0x230   : > { %v5614_v48 = vpack.c.bf16 %v4786_v33, %v4786_v33  ;;  %v4787_v62 = vmax.f32 %v4755_v12, 0.0  ;;  %v5943_v56 = vpop.f32.mrb[20].mxu1  ;;  %v4652_v40 = vpop.f32.mrb[21].mxu0 }
 0x231   : > { %4949 = vst.msk [vmem:[%s8234_s20 + $0x48] sm:$0xf] %vm4930_vm8, %v5616_v31  ;;  %v5617_v13 = vpack.c.bf16 %v4789_v57, %v4789_v57  ;;  %v6111_v17 = vadd.f32 %v6079_v8, %v5943_v56  ;;  %v2627_v30 = vpop.f32.mrb[21].mxu1  ;;  %v6080_v9 = vpop.f32.mrb[22].mxu0 }
 0x232   : > { %4947 = vst.msk [vmem:[%s8234_s20 + $0x40] sm:$0xf] %vm4930_vm8, %v5614_v48  ;;  %v5615_v14 = vpack.c.bf16 %v4787_v62, %v4787_v62  ;;  %v6112_v63 = vadd.f32 %v4652_v40, %v2627_v30  ;;  %v5944_v4 = vpop.f32.mrb[22].mxu1  ;;  %v4655_v43 = vpop.f32.mrb[23].mxu0 }
 0x233   : > { %4950 = vst.msk [vmem:[%s8234_s20 + $0x4c] sm:$0xf] %vm4930_vm8, %v5617_v13  ;;  %v4760_v16 = vadd.f32 %v6111_v17, %v8225_v2  ;;  %v6113_v58 = vadd.f32 %v6080_v9, %v5944_v4  ;;  %v2630_v50 = vpop.f32.mrb[23].mxu1 }
 0x234   : > { %4948 = vst.msk [vmem:[%s8234_s20 + $0x44] sm:$0xf] %vm4930_vm8, %v5615_v14  ;;  %v4758_v54 = vadd.f32 %v6112_v63, %v8225_v2  ;;  %v6114_v18 = vadd.f32 %v4655_v43, %v2630_v50 }
 0x235   : > { %v4792_v11 = vmax.f32 %v4760_v16, 0.0  ;;  %v4761_v32 = vadd.f32 %v6113_v58, %v8225_v2 }
 0x236   : > { %v4790_v24 = vmax.f32 %v4758_v54, 0.0  ;;  %v4759_v52 = vadd.f32 %v6114_v18, %v8225_v2 }
 0x237   : > { %v5620_v39 = vpack.c.bf16 %v4792_v11, %v4792_v11  ;;  %v4793_v0 = vmax.f32 %v4761_v32, 0.0  ;;  %v6083_v36 = vpop.f32.mrb[24].mxu0 }
 0x238   : > { %v5618_v19 = vpack.c.bf16 %v4790_v24, %v4790_v24  ;;  %v4791_v10 = vmax.f32 %v4759_v52, 0.0  ;;  %v5947_v59 = vpop.f32.mrb[24].mxu1  ;;  %v4668_v38 = vpop.f32.mrb[25].mxu0 }
 0x239   : > { %4953 = vst.msk [vmem:[%s8234_s20 + $0x58] sm:$0xf] %vm4930_vm8, %v5620_v39  ;;  %v5621_v37 = vpack.c.bf16 %v4793_v0, %v4793_v0  ;;  %v6115_v26 = vadd.f32 %v6083_v36, %v5947_v59  ;;  %v2643_v5 = vpop.f32.mrb[25].mxu1  ;;  %v6084_v35 = vpop.f32.mrb[26].mxu0 }
 0x23a   : > { %4951 = vst.msk [vmem:[%s8234_s20 + $0x50] sm:$0xf] %vm4930_vm8, %v5618_v19  ;;  %v5619_v34 = vpack.c.bf16 %v4791_v10, %v4791_v10  ;;  %v6116_v6 = vadd.f32 %v4668_v38, %v2643_v5  ;;  %v5948_v55 = vpop.f32.mrb[26].mxu1  ;;  %v4671_v49 = vpop.f32.mrb[27].mxu0 }
 0x23b   : > { %4954 = vst.msk [vmem:[%s8234_s20 + $0x5c] sm:$0xf] %vm4930_vm8, %v5621_v37  ;;  %v4764_v23 = vadd.f32 %v6115_v26, %v8225_v2  ;;  %v6117_v25 = vadd.f32 %v6084_v35, %v5948_v55  ;;  %v2646_v1 = vpop.f32.mrb[27].mxu1 }
 0x23c   : > { %4952 = vst.msk [vmem:[%s8234_s20 + $0x54] sm:$0xf] %vm4930_vm8, %v5619_v34  ;;  %v4762_v29 = vadd.f32 %v6116_v6, %v8225_v2  ;;  %v6118_v7 = vadd.f32 %v4671_v49, %v2646_v1 }
 0x23d   : > { %v4796_v61 = vmax.f32 %v4764_v23, 0.0  ;;  %v4765_v22 = vadd.f32 %v6117_v25, %v8225_v2 }
 0x23e   : > { %v4794_v44 = vmax.f32 %v4762_v29, 0.0  ;;  %v4763_v41 = vadd.f32 %v6118_v7, %v8225_v2 }
 0x23f   : > { %v5624_v3 = vpack.c.bf16 %v4796_v61, %v4796_v61  ;;  %v4797_v51 = vmax.f32 %v4765_v22, 0.0  ;;  %v6087_v28 = vpop.f32.mrb[28].mxu0 }
 0x240   : > { %v5622_v45 = vpack.c.bf16 %v4794_v44, %v4794_v44  ;;  %v4795_v27 = vmax.f32 %v4763_v41, 0.0  ;;  %v5951_v53 = vpop.f32.mrb[28].mxu1  ;;  %v4684_v21 = vpop.f32.mrb[29].mxu0 }
 0x241   : > { %4957 = vst.msk [vmem:[%s8234_s20 + $0x68] sm:$0xf] %vm4930_vm8, %v5624_v3  ;;  %v5625_v47 = vpack.c.bf16 %v4797_v51, %v4797_v51  ;;  %v6119_v46 = vadd.f32 %v6087_v28, %v5951_v53  ;;  %v2659_v15 = vpop.f32.mrb[29].mxu1  ;;  %v6088_v60 = vpop.f32.mrb[30].mxu0 }
 0x242   : > { %4955 = vst.msk [vmem:[%s8234_s20 + $0x60] sm:$0xf] %vm4930_vm8, %v5622_v45  ;;  %v5623_v20 = vpack.c.bf16 %v4795_v27, %v4795_v27  ;;  %v6120_v42 = vadd.f32 %v4684_v21, %v2659_v15  ;;  %v5952_v33 = vpop.f32.mrb[30].mxu1  ;;  %v4687_v12 = vpop.f32.mrb[31].mxu0 }
 0x243   : > { %4958 = vst.msk [vmem:[%s8234_s20 + $0x6c] sm:$0xf] %vm4930_vm8, %v5625_v47  ;;  %v4768_v31 = vadd.f32 %v6119_v46, %v8225_v2  ;;  %v6121_v57 = vadd.f32 %v6088_v60, %v5952_v33  ;;  %v2662_v8 = vpop.f32.mrb[31].mxu1 }
 0x244   : > { %4956 = vst.msk [vmem:[%s8234_s20 + $0x64] sm:$0xf] %vm4930_vm8, %v5623_v20  ;;  %v4766_v48 = vadd.f32 %v6120_v42, %v8225_v2  ;;  %v6122_v62 = vadd.f32 %v4687_v12, %v2662_v8 }
 0x245   : > { %v4800_v56 = vmax.f32 %v4768_v31, 0.0  ;;  %v4769_v40 = vadd.f32 %v6121_v57, %v8225_v2 }
 0x246   : > { %v4798_v13 = vmax.f32 %v4766_v48, 0.0  ;;  %v4767_v17 = vadd.f32 %v6122_v62, %v8225_v2 }
 0x247   : > { %v5628_v30 = vpack.c.bf16 %v4800_v56, %v4800_v56  ;;  %v4801_v9 = vmax.f32 %v4769_v40, 0.0 }
 0x248   : > { %v5626_v14 = vpack.c.bf16 %v4798_v13, %v4798_v13  ;;  %v4799_v63 = vmax.f32 %v4767_v17, 0.0 }
 0x249   : > { %4961 = vst.msk [vmem:[%s8234_s20 + $0x78] sm:$0xf] %vm4930_vm8, %v5628_v30  ;;  %v5629_v4 = vpack.c.bf16 %v4801_v9, %v4801_v9 }
 0x24a   : > { %4959 = vst.msk [vmem:[%s8234_s20 + $0x70] sm:$0xf] %vm4930_vm8, %v5626_v14  ;;  %v5627_v43 = vpack.c.bf16 %v4799_v63, %v4799_v63 }
 0x24b   : > { %4962 = vst.msk [vmem:[%s8234_s20 + $0x7c] sm:$0xf] %vm4930_vm8, %v5629_v4 }
 0x24c   : > { %4960 = vst.msk [vmem:[%s8234_s20 + $0x74] sm:$0xf] %vm4930_vm8, %v5627_v43 }
 0x24d PF: > { %s13_s12 = sadd.s32 1, %s6477_s12  }
 0x24e   : > { %p10_p4 = scmp.ge.s32.totalorder %s13_s12, 4  }
 0x250   :  { %12 = sbr.rel (!%p10_p4) target bundleno = 1 (0x1), region = 72 }

</bundles_post_ra>
